<compile_context>
chip_gen: v6e
topology: v6e:2x2x1
jax: 0.10.0
libtpu: 0.0.40
codegen_flags: <defaults>
</compile_context>

<pallas_src>
import functools
import numpy as np

import jax
import jax.numpy as jnp
from jax.experimental import pallas as pl
from jax.experimental.pallas import tpu as pltpu


# ----------------------------- small helpers --------------------------------

def _pick_block_m(M):
    """Largest row tile (multiple of 8) dividing M.  Sized by VMEM budget, not by
    step count (review: forcing >=2 grid steps buys nothing on single-TC chips)."""
    for bm in (1024, 512, 256, 128, 64, 32, 16, 8):
        if bm <= M and M % bm == 0:
            return bm
    return M


def _gelu_tanh(x):
    # TODO(synk): PyTorch nn.GELU defaults to exact erf; the tanh approximation
    # (runs on the EUP slot, ~1e-3 abs error) is used per the perf review, so
    # parity with the reference module is tolerance-based, not bitwise.
    c = 0.7978845608028654  # sqrt(2/pi)
    return 0.5 * x * (1.0 + jnp.tanh(c * (x + 0.044715 * x * x * x)))


# ------------------------- kernel A: LN1 + QKV -------------------------------

def _ln_linear_kernel(x_ref, g_ref, b_ref, w_ref, wb_ref, o_ref, *, eps):
    x = x_ref[...].astype(jnp.float32)
    mu = jnp.mean(x, axis=-1, keepdims=True)
    var = jnp.mean(jnp.square(x - mu), axis=-1, keepdims=True)
    xn = (x - mu) * jax.lax.rsqrt(var + eps)
    xn = xn * g_ref[...] + b_ref[...]
    y = jnp.dot(xn.astype(w_ref.dtype), w_ref[...],
                preferred_element_type=jnp.float32)
    o_ref[...] = (y + wb_ref[...]).astype(o_ref.dtype)


def ln_linear(x, gamma, beta, w, wb, eps=1e-5):
    """out = LayerNorm(x) @ w + wb.  w is bf16 (MXU), accumulation in f32,
    output emitted in bf16 (interstage tensor -> halves HBM traffic)."""
    M, C = x.shape
    N = w.shape[1]
    bm = _pick_block_m(M)
    # NOTE(v7x/v5e): at real Swin widths raise vmem_limit_bytes and single-buffer the
    # constant weight specs (pl.Buffered(1)); unnecessary at these toy dims.
    return pl.pallas_call(
        functools.partial(_ln_linear_kernel, eps=eps),
        out_shape=jax.ShapeDtypeStruct((M, N), jnp.bfloat16),
        grid=(M // bm,),
        in_specs=[pl.BlockSpec((bm, C), lambda i: (i, 0)),
                  pl.BlockSpec((1, C), lambda i: (0, 0)),
                  pl.BlockSpec((1, C), lambda i: (0, 0)),
                  pl.BlockSpec((C, N), lambda i: (0, 0)),
                  pl.BlockSpec((1, N), lambda i: (0, 0))],
        out_specs=pl.BlockSpec((bm, N), lambda i: (i, 0)),
        compiler_params=pltpu.CompilerParams(dimension_semantics=("parallel",)),
    )(x, gamma.reshape(1, C), beta.reshape(1, C), w, wb.reshape(1, N))


# -------------------- kernel B: window attention + proj ----------------------

def _window_attn_kernel(*refs, num_heads, use_mask):
    if use_mask:
        qkv_ref, bias_ref, mask_ref, pw_ref, pb_ref, o_ref, head_acc = refs
    else:
        qkv_ref, bias_ref, pw_ref, pb_ref, o_ref, head_acc = refs

    qkv = qkv_ref[0, 0]                    # (N, 3C) bf16 — MXU-native operands
    N, threeC = qkv.shape
    C = threeC // 3
    Dh = C // num_heads

    if use_mask:
        mask = mask_ref[0].astype(jnp.float32)      # (N, N)

    # Static unroll over heads; each head's only live carry is its write into the
    # head_acc scratch (bounds per-head temporaries).  Head extraction is a static
    # lane slice of the bf16 slab (comment: at production widths, put heads on a
    # leading axis / grid axis to remove it entirely).
    for h in range(num_heads):
        qh = qkv[:, h * Dh:(h + 1) * Dh]
        kh = qkv[:, C + h * Dh:C + (h + 1) * Dh]
        vh = qkv[:, 2 * C + h * Dh:2 * C + (h + 1) * Dh]
        # scale already folded into q columns of qkv_w at parameter-prep time.
        s = jax.lax.dot_general(qh, kh, (((1,), (1,)), ((), ())),
                                preferred_element_type=jnp.float32)   # (N, N) f32
        s = s + bias_ref[h]
        if use_mask:
            s = s + mask
        s = s - jnp.max(s, axis=-1, keepdims=True)
        p = jnp.exp(s)
        p = p * pl.reciprocal(jnp.sum(p, axis=-1, keepdims=True), approx=True)
        oh = jax.lax.dot_general(p.astype(qkv.dtype), vh,
                                 (((1,), (0,)), ((), ())),
                                 preferred_element_type=jnp.float32)  # (N, Dh)
        head_acc[:, h * Dh:(h + 1) * Dh] = oh.astype(head_acc.dtype)

    # Single full-contraction output projection (replaces num_heads K=Dh matmuls
    # + weight broadcasts + VALU accumulate passes of the previous version).
    out = jnp.dot(head_acc[...], pw_ref[...], preferred_element_type=jnp.float32)
    o_ref[0, 0] = (out + pb_ref[...]).astype(o_ref.dtype)


def window_attention(qkv_win, rel_bias, mask, proj_w, proj_b, num_heads):
    """qkv_win: (B, nW, N, 3C) bf16; rel_bias: (nH, N, N) f32; mask: (nW, N, N)|None.
    Returns proj(window-MHA) as (B, nW, N, C) bf16."""
    B, nW, N, threeC = qkv_win.shape
    C = threeC // 3
    in_specs = [pl.BlockSpec((1, 1, N, threeC), lambda b, w: (b, w, 0, 0)),
                pl.BlockSpec((num_heads, N, N), lambda b, w: (0, 0, 0))]
    args = [qkv_win, rel_bias]
    if mask is not None:            # mask operand dropped entirely for shift==0
        in_specs.append(pl.BlockSpec((1, N, N), lambda b, w: (w, 0, 0)))
        args.append(mask)
    in_specs += [pl.BlockSpec((C, C), lambda b, w: (0, 0)),
                 pl.BlockSpec((1, C), lambda b, w: (0, 0))]
    args += [proj_w, proj_b.reshape(1, C)]
    return pl.pallas_call(
        functools.partial(_window_attn_kernel, num_heads=num_heads,
                          use_mask=mask is not None),
        out_shape=jax.ShapeDtypeStruct((B, nW, N, C), jnp.bfloat16),
        grid=(B, nW),
        in_specs=in_specs,
        out_specs=pl.BlockSpec((1, 1, N, C), lambda b, w: (b, w, 0, 0)),
        scratch_shapes=[pltpu.VMEM((N, C), jnp.bfloat16)],
        compiler_params=pltpu.CompilerParams(
            dimension_semantics=("parallel", "parallel")),
    )(*args)


# ------------- kernel C: residual + LN2 + fc1 + GELU + fc2 + residual --------

def _mlp_block_kernel(x_ref, a_ref, g_ref, b_ref, w1_ref, b1_ref, w2_ref, b2_ref,
                      o_ref, *, eps):
    x = x_ref[...].astype(jnp.float32) + a_ref[...].astype(jnp.float32)  # residual 1
    mu = jnp.mean(x, axis=-1, keepdims=True)
    var = jnp.mean(jnp.square(x - mu), axis=-1, keepdims=True)
    xn = (x - mu) * jax.lax.rsqrt(var + eps)
    xn = xn * g_ref[...] + b_ref[...]
    h = jnp.dot(xn.astype(w1_ref.dtype), w1_ref[...],
                preferred_element_type=jnp.float32)
    h = _gelu_tanh(h + b1_ref[...])
    y = jnp.dot(h.astype(w2_ref.dtype), w2_ref[...],
                preferred_element_type=jnp.float32)
    o_ref[...] = (x + y + b2_ref[...]).astype(o_ref.dtype)               # residual 2


def mlp_block(x, attn, gamma, beta, w1, b1, w2, b2, eps=1e-5):
    M, C = x.shape
    Hd = w1.shape[1]
    bm = _pick_block_m(M)
    # NOTE(v5e): at real widths the f32 (bm, Hd) hidden tensor + double-buffered
    # weights exceed the 16 MiB scoped-VMEM default -> raise vmem_limit_bytes there.
    return pl.pallas_call(
        functools.partial(_mlp_block_kernel, eps=eps),
        out_shape=jax.ShapeDtypeStruct((M, C), x.dtype),
        grid=(M // bm,),
        in_specs=[pl.BlockSpec((bm, C), lambda i: (i, 0)),
                  pl.BlockSpec((bm, C), lambda i: (i, 0)),
                  pl.BlockSpec((1, C), lambda i: (0, 0)),
                  pl.BlockSpec((1, C), lambda i: (0, 0)),
                  pl.BlockSpec((C, Hd), lambda i: (0, 0)),
                  pl.BlockSpec((1, Hd), lambda i: (0, 0)),
                  pl.BlockSpec((Hd, C), lambda i: (0, 0)),
                  pl.BlockSpec((1, C), lambda i: (0, 0))],
        out_specs=pl.BlockSpec((bm, C), lambda i: (i, 0)),
        compiler_params=pltpu.CompilerParams(dimension_semantics=("parallel",)),
    )(x, attn, gamma.reshape(1, C), beta.reshape(1, C),
      w1, b1.reshape(1, Hd), w2, b2.reshape(1, C))


# ------------------------------ XLA glue -------------------------------------

def window_partition(x, ws):
    B, H, W, C = x.shape
    x = x.reshape(B, H // ws, ws, W // ws, ws, C)
    x = jnp.transpose(x, (0, 1, 3, 2, 4, 5))
    return x.reshape(-1, ws * ws, C)


def window_reverse(windows, ws, H, W):
    B = windows.shape[0] // ((H * W) // (ws * ws))
    x = windows.reshape(B, H // ws, W // ws, ws, ws, -1)
    x = jnp.transpose(x, (0, 1, 3, 2, 4, 5))
    return x.reshape(B, H, W, -1)


def relative_position_index(ws):
    coords = np.stack(np.meshgrid(np.arange(ws), np.arange(ws), indexing="ij"))
    coords_flat = coords.reshape(2, -1)
    rel = coords_flat[:, :, None] - coords_flat[:, None, :]
    rel = rel.transpose(1, 2, 0).astype(np.int64)
    rel[:, :, 0] += ws - 1
    rel[:, :, 1] += ws - 1
    rel[:, :, 0] *= 2 * ws - 1
    return rel.sum(-1)  # (N, N)


def compute_attn_mask(H, W, ws, shift):
    N = ws * ws
    nW = (H // ws) * (W // ws)
    if shift == 0:
        return np.zeros((nW, N, N), np.float32)
    img_mask = np.zeros((1, H, W, 1), np.float32)
    slices = (slice(0, -ws), slice(-ws, -shift), slice(-shift, None))
    cnt = 0
    for hs in slices:
        for wsl in slices:
            img_mask[:, hs, wsl, :] = cnt
            cnt += 1
    mw = img_mask.reshape(1, H // ws, ws, W // ws, ws, 1)
    mw = mw.transpose(0, 1, 3, 2, 4, 5).reshape(-1, N)
    attn_mask = mw[:, None, :] - mw[:, :, None]
    return np.where(attn_mask != 0, -100.0, 0.0).astype(np.float32)


def init_block_params(key, dim, num_heads, ws, mlp_ratio):
    hidden = int(dim * mlp_ratio)
    N = ws * ws
    scale = (dim // num_heads) ** -0.5
    ks = jax.random.split(key, 5)

    def nrm(k, shape, std=0.02):
        return (std * jax.random.normal(k, shape)).astype(jnp.float32)

    # Precompute the relative-position bias (pure function of the parameters).
    rpb_table = nrm(ks[1], ((2 * ws - 1) ** 2, num_heads))
    rel_idx = relative_position_index(ws)
    rel_bias = rpb_table[rel_idx.reshape(-1)].reshape(N, N, num_heads)
    rel_bias = jnp.transpose(rel_bias, (2, 0, 1)).astype(jnp.float32)   # (nH, N, N)

    # Fold the attention scale 1/sqrt(Dh) into the q columns of the QKV projection
    # (mathematically identical to (x@Wq+bq)*scale, zero runtime cost).
    qkv_w = nrm(ks[0], (dim, 3 * dim))
    qkv_w = qkv_w.at[:, :dim].multiply(scale)
    qkv_b = jnp.zeros((3 * dim,), jnp.float32)
    qkv_b = qkv_b.at[:dim].multiply(scale)

    return {
        "norm1_g": jnp.ones((dim,), jnp.float32),
        "norm1_b": jnp.zeros((dim,), jnp.float32),
        "qkv_w": qkv_w.astype(jnp.bfloat16),
        "qkv_b": qkv_b,
        "rel_bias": rel_bias,
        "proj_w": nrm(ks[2], (dim, dim)).astype(jnp.bfloat16),
        "proj_b": jnp.zeros((dim,), jnp.float32),
        "norm2_g": jnp.ones((dim,), jnp.float32),
        "norm2_b": jnp.zeros((dim,), jnp.float32),
        "fc1_w": nrm(ks[3], (dim, hidden)).astype(jnp.bfloat16),
        "fc1_b": jnp.zeros((hidden,), jnp.float32),
        "fc2_w": nrm(ks[4], (hidden, dim)).astype(jnp.bfloat16),
        "fc2_b": jnp.zeros((dim,), jnp.float32),
    }


def swin_block_forward(x, p, H, W, num_heads, ws, shift, attn_mask):
    B, L, C = x.shape
    N = ws * ws
    nW = L // N

    # (0) cyclic shift applied to the C-wide input (3x less data than rolling qkv);
    #     LN1 + QKV are per-token, so this is identical to shifting after them.
    if shift > 0:
        x_sh = jnp.roll(x.reshape(B, H, W, C), shift=(-shift, -shift), axis=(1, 2))
        x_sh = x_sh.reshape(B, L, C)
    else:
        x_sh = x

    # (1) fused LayerNorm1 + QKV projection (bf16 output, scale pre-folded).
    qkv = ln_linear(x_sh.reshape(B * L, C), p["norm1_g"], p["norm1_b"],
                    p["qkv_w"], p["qkv_b"])                          # (B*L, 3C) bf16
    qkv_win = window_partition(qkv.reshape(B, H, W, 3 * C), ws)     # bf16 layout glue
    qkv_win = qkv_win.reshape(B, nW, N, 3 * C)

    # (2) fused per-window MHA (+rel-pos bias, +shift mask, softmax) + output proj.
    attn = window_attention(qkv_win, p["rel_bias"], attn_mask,
                            p["proj_w"], p["proj_b"], num_heads)     # (B,nW,N,C) bf16
    attn = window_reverse(attn.reshape(B * nW, N, C), ws, H, W)      # (B, H, W, C)
    if shift > 0:
        attn = jnp.roll(attn, shift=(shift, shift), axis=(1, 2))

    # (3) fused: (x + attn) residual, LayerNorm2, fc1, GELU, fc2, + residual.
    out = mlp_block(x.reshape(B * L, C), attn.reshape(B * L, C),
                    p["norm2_g"], p["norm2_b"],
                    p["fc1_w"], p["fc1_b"], p["fc2_w"], p["fc2_b"])
    return out.reshape(B, L, C)


def basic_layer_forward(x, block_params, H, W, num_heads, ws, masks):
    for i, p in enumerate(block_params):
        shift = 0 if i % 2 == 0 else ws // 2
        x = swin_block_forward(x, p, H, W, num_heads, ws, shift, masks[i])
    # upsample=None (BasicLayer constructor default) -> nothing further to do.
    return x


# --------------------------------- main --------------------------------------

if __name__ == "__main__":
    dim = 32
    out_dim = 32          # unused (no upsample)
    H = W = 8             # input_resolution
    depth = 2
    num_heads = 4
    ws = 4                # window_size
    mlp_ratio = 4.0
    B = 2
    L = H * W

    key = jax.random.PRNGKey(0)
    kx, kp = jax.random.split(key)
    x = jax.random.normal(kx, (B, L, dim), jnp.float32)

    pkeys = jax.random.split(kp, depth)
    block_params = [init_block_params(pkeys[i], dim, num_heads, ws, mlp_ratio)
                    for i in range(depth)]

    # shift==0 blocks get no mask operand at all (saves a DMA + add per window).
    masks = [None if i % 2 == 0
             else jnp.asarray(compute_attn_mask(H, W, ws, ws // 2))
             for i in range(depth)]

    fwd = jax.jit(lambda xx: basic_layer_forward(
        xx, block_params, H, W, num_heads, ws, masks))

    out = fwd(x)
    jax.block_until_ready(out)
    assert out.shape == (B, L, dim), out.shape
    assert bool(jnp.all(jnp.isfinite(out)))
    print("KERNEL_OK")
</pallas_src>

<mosaic_0001>
module attributes {stable_mosaic.version = 11 : i64} {
  func.func @_ln_linear_kernel(%arg0: i32, %arg1: memref<128x32xf32, #tpu.memory_space<vmem>>, %arg2: memref<1x32xf32, #tpu.memory_space<vmem>>, %arg3: memref<1x32xf32, #tpu.memory_space<vmem>>, %arg4: memref<32x96xbf16, #tpu.memory_space<vmem>>, %arg5: memref<1x96xf32, #tpu.memory_space<vmem>>, %arg6: memref<128x96xbf16, #tpu.memory_space<vmem>>) attributes {dimension_semantics = [#tpu.dimension_semantics<parallel>], iteration_bounds = array<i64: 1>, scalar_prefetch = 0 : i64, scratch_operands = 0 : i64, tpu.core_type = #tpu.core_type<tc>, window_params = [{transform_indices = @transform_0, window_bounds = array<i64: 128, 32>}, {pipeline_mode = #tpu.pipeline_mode<synchronous>, transform_indices = @transform_1, window_bounds = array<i64: 1, 32>}, {pipeline_mode = #tpu.pipeline_mode<synchronous>, transform_indices = @transform_2, window_bounds = array<i64: 1, 32>}, {pipeline_mode = #tpu.pipeline_mode<synchronous>, transform_indices = @transform_3, window_bounds = array<i64: 32, 96>}, {pipeline_mode = #tpu.pipeline_mode<synchronous>, transform_indices = @transform_4, window_bounds = array<i64: 1, 96>}, {transform_indices = @transform_5, window_bounds = array<i64: 128, 96>}]} {
    %c0 = arith.constant 0 : index
    %c0_0 = arith.constant 0 : index
    %0 = vector.load %arg1[%c0, %c0_0] : memref<128x32xf32, #tpu.memory_space<vmem>>, vector<128x32xf32>
    %cst = arith.constant dense<0.000000e+00> : vector<128xf32>
    %1 = vector.multi_reduction <add>, %0, %cst [1] : vector<128x32xf32> to vector<128xf32>
    %2 = vector.shape_cast %1 : vector<128xf32> to vector<128x1xf32>
    %cst_1 = arith.constant 3.200000e+01 : f32
    %3 = vector.broadcast %cst_1 : f32 to vector<128x1xf32>
    %4 = arith.divf %2, %3 : vector<128x1xf32>
    %5 = vector.broadcast %4 : vector<128x1xf32> to vector<128x32xf32>
    %6 = arith.subf %0, %5 : vector<128x32xf32>
    %7 = arith.mulf %6, %6 : vector<128x32xf32>
    %cst_2 = arith.constant dense<0.000000e+00> : vector<128xf32>
    %8 = vector.multi_reduction <add>, %7, %cst_2 [1] : vector<128x32xf32> to vector<128xf32>
    %9 = vector.shape_cast %8 : vector<128xf32> to vector<128x1xf32>
    %cst_3 = arith.constant 3.200000e+01 : f32
    %10 = vector.broadcast %cst_3 : f32 to vector<128x1xf32>
    %11 = arith.divf %9, %10 : vector<128x1xf32>
    %12 = vector.broadcast %4 : vector<128x1xf32> to vector<128x32xf32>
    %13 = arith.subf %0, %12 : vector<128x32xf32>
    %cst_4 = arith.constant 9.99999974E-6 : f32
    %14 = vector.broadcast %cst_4 : f32 to vector<128x1xf32>
    %15 = arith.addf %11, %14 : vector<128x1xf32>
    %16 = math.rsqrt %15 : vector<128x1xf32>
    %17 = vector.broadcast %16 : vector<128x1xf32> to vector<128x32xf32>
    %18 = arith.mulf %13, %17 : vector<128x32xf32>
    %c0_5 = arith.constant 0 : index
    %c0_6 = arith.constant 0 : index
    %19 = vector.load %arg2[%c0_5, %c0_6] : memref<1x32xf32, #tpu.memory_space<vmem>>, vector<1x32xf32>
    %20 = vector.broadcast %19 : vector<1x32xf32> to vector<128x32xf32>
    %21 = arith.mulf %18, %20 : vector<128x32xf32>
    %c0_7 = arith.constant 0 : index
    %c0_8 = arith.constant 0 : index
    %22 = vector.load %arg3[%c0_7, %c0_8] : memref<1x32xf32, #tpu.memory_space<vmem>>, vector<1x32xf32>
    %23 = vector.broadcast %22 : vector<1x32xf32> to vector<128x32xf32>
    %24 = arith.addf %21, %23 : vector<128x32xf32>
    %25 = arith.truncf %24 : vector<128x32xf32> to vector<128x32xbf16>
    %c0_9 = arith.constant 0 : index
    %c0_10 = arith.constant 0 : index
    %26 = vector.load %arg4[%c0_9, %c0_10] : memref<32x96xbf16, #tpu.memory_space<vmem>>, vector<32x96xbf16>
    %cst_11 = arith.constant dense<0.000000e+00> : vector<128x96xf32>
    %27 = tpu.matmul %25, %26, %cst_11 {dimension_numbers = #tpu.dot_dimension_numbers<[1], [0], [0], [1], [0, 0, 1, 1], [], []>} : vector<128x32xbf16>, vector<32x96xbf16>, vector<128x96xf32> -> vector<128x96xf32>
    %c0_12 = arith.constant 0 : index
    %c0_13 = arith.constant 0 : index
    %28 = vector.load %arg5[%c0_12, %c0_13] : memref<1x96xf32, #tpu.memory_space<vmem>>, vector<1x96xf32>
    %29 = vector.broadcast %28 : vector<1x96xf32> to vector<128x96xf32>
    %30 = arith.addf %27, %29 : vector<128x96xf32>
    %31 = arith.truncf %30 : vector<128x96xf32> to vector<128x96xbf16>
    %c0_14 = arith.constant 0 : index
    %c0_15 = arith.constant 0 : index
    %32 = vector.load %arg6[%c0_14, %c0_15] : memref<128x96xbf16, #tpu.memory_space<vmem>>, vector<128x96xbf16>
    tpu.vector_store %arg6[%c0_14, %c0_15], %31 {strides = array<i32>} : memref<128x96xbf16, #tpu.memory_space<vmem>>, vector<128x96xbf16>,
    return
  }
  func.func @transform_0(%arg0: i32) -> (i32, i32) {
    %c0_i32 = arith.constant 0 : i32
    %c0_i32_0 = arith.constant 0 : i32
    return %arg0, %c0_i32 : i32, i32
  }
  func.func @transform_1(%arg0: i32) -> (i32, i32) {
    %c0_i32 = arith.constant 0 : i32
    %c0_i32_0 = arith.constant 0 : i32
    %c0_i32_1 = arith.constant 0 : i32
    return %c0_i32, %c0_i32_0 : i32, i32
  }
  func.func @transform_2(%arg0: i32) -> (i32, i32) {
    %c0_i32 = arith.constant 0 : i32
    %c0_i32_0 = arith.constant 0 : i32
    %c0_i32_1 = arith.constant 0 : i32
    return %c0_i32, %c0_i32_0 : i32, i32
  }
  func.func @transform_3(%arg0: i32) -> (i32, i32) {
    %c0_i32 = arith.constant 0 : i32
    %c0_i32_0 = arith.constant 0 : i32
    %c0_i32_1 = arith.constant 0 : i32
    return %c0_i32, %c0_i32_0 : i32, i32
  }
  func.func @transform_4(%arg0: i32) -> (i32, i32) {
    %c0_i32 = arith.constant 0 : i32
    %c0_i32_0 = arith.constant 0 : i32
    %c0_i32_1 = arith.constant 0 : i32
    return %c0_i32, %c0_i32_0 : i32, i32
  }
  func.func @transform_5(%arg0: i32) -> (i32, i32) {
    %c0_i32 = arith.constant 0 : i32
    %c0_i32_0 = arith.constant 0 : i32
    return %arg0, %c0_i32 : i32, i32
  }
}

module attributes {stable_mosaic.version = 11 : i64} {
  func.func @_window_attn_kernel(%arg0: i32, %arg1: i32, %arg2: memref<1x1x16x96xbf16, #tpu.memory_space<vmem>>, %arg3: memref<4x16x16xf32, #tpu.memory_space<vmem>>, %arg4: memref<32x32xbf16, #tpu.memory_space<vmem>>, %arg5: memref<1x32xf32, #tpu.memory_space<vmem>>, %arg6: memref<1x1x16x32xbf16, #tpu.memory_space<vmem>>, %arg7: memref<16x32xbf16, #tpu.memory_space<vmem>>) attributes {dimension_semantics = [#tpu.dimension_semantics<parallel>, #tpu.dimension_semantics<parallel>], iteration_bounds = array<i64: 2, 4>, scalar_prefetch = 0 : i64, scratch_operands = 1 : i64, tpu.core_type = #tpu.core_type<tc>, window_params = [{transform_indices = @transform_0, window_bounds = array<i64: 1, 1, 16, 96>}, {pipeline_mode = #tpu.pipeline_mode<synchronous>, transform_indices = @transform_1, window_bounds = array<i64: 4, 16, 16>}, {pipeline_mode = #tpu.pipeline_mode<synchronous>, transform_indices = @transform_2, window_bounds = array<i64: 32, 32>}, {pipeline_mode = #tpu.pipeline_mode<synchronous>, transform_indices = @transform_3, window_bounds = array<i64: 1, 32>}, {transform_indices = @transform_4, window_bounds = array<i64: 1, 1, 16, 32>}]} {
    %c0 = arith.constant 0 : index
    %c0_0 = arith.constant 0 : index
    %c0_1 = arith.constant 0 : index
    %c0_2 = arith.constant 0 : index
    %0 = vector.load %arg2[%c0, %c0_0, %c0_1, %c0_2] : memref<1x1x16x96xbf16, #tpu.memory_space<vmem>>, vector<1x1x16x96xbf16>
    %1 = vector.shape_cast %0 : vector<1x1x16x96xbf16> to vector<16x96xbf16>
    %2 = vector.extract_strided_slice %1 {offsets = [0, 0], sizes = [16, 8], strides = [1, 1]} : vector<16x96xbf16> to vector<16x8xbf16>
    %3 = vector.extract_strided_slice %1 {offsets = [0, 32], sizes = [16, 8], strides = [1, 1]} : vector<16x96xbf16> to vector<16x8xbf16>
    %4 = vector.extract_strided_slice %1 {offsets = [0, 64], sizes = [16, 8], strides = [1, 1]} : vector<16x96xbf16> to vector<16x8xbf16>
    %cst = arith.constant dense<0.000000e+00> : vector<16x16xf32>
    %5 = tpu.matmul %2, %3, %cst {dimension_numbers = #tpu.dot_dimension_numbers<[1], [1], [0], [0], [0, 0, 1, 0], [], []>} : vector<16x8xbf16>, vector<16x8xbf16>, vector<16x16xf32> -> vector<16x16xf32>
    %c0_3 = arith.constant 0 : index
    %c0_4 = arith.constant 0 : index
    %c0_5 = arith.constant 0 : index
    %6 = vector.load %arg3[%c0_3, %c0_4, %c0_5] : memref<4x16x16xf32, #tpu.memory_space<vmem>>, vector<1x16x16xf32>
    %7 = vector.shape_cast %6 : vector<1x16x16xf32> to vector<16x16xf32>
    %8 = arith.addf %5, %7 : vector<16x16xf32>
    %cst_6 = arith.constant dense<0xFF800000> : vector<16xf32>
    %9 = vector.multi_reduction <maximumf>, %8, %cst_6 [1] : vector<16x16xf32> to vector<16xf32>
    %10 = vector.shape_cast %9 : vector<16xf32> to vector<16x1xf32>
    %11 = vector.broadcast %10 : vector<16x1xf32> to vector<16x16xf32>
    %12 = arith.subf %8, %11 : vector<16x16xf32>
    %13 = math.exp %12 : vector<16x16xf32>
    %cst_7 = arith.constant dense<0.000000e+00> : vector<16xf32>
    %14 = vector.multi_reduction <add>, %13, %cst_7 [1] : vector<16x16xf32> to vector<16xf32>
    %15 = vector.shape_cast %14 : vector<16xf32> to vector<16x1xf32>
    %16 = tpu.reciprocal %15 {approx = true} : vector<16x1xf32> -> vector<16x1xf32>
    %17 = vector.broadcast %16 : vector<16x1xf32> to vector<16x16xf32>
    %18 = arith.mulf %13, %17 : vector<16x16xf32>
    %19 = arith.truncf %18 : vector<16x16xf32> to vector<16x16xbf16>
    %cst_8 = arith.constant dense<0.000000e+00> : vector<16x8xf32>
    %20 = tpu.matmul %19, %4, %cst_8 {dimension_numbers = #tpu.dot_dimension_numbers<[1], [0], [0], [1], [0, 0, 1, 1], [], []>} : vector<16x16xbf16>, vector<16x8xbf16>, vector<16x8xf32> -> vector<16x8xf32>
    %21 = arith.truncf %20 : vector<16x8xf32> to vector<16x8xbf16>
    %c0_9 = arith.constant 0 : index
    %c0_10 = arith.constant 0 : index
    %22 = vector.load %arg7[%c0_9, %c0_10] : memref<16x32xbf16, #tpu.memory_space<vmem>>, vector<16x8xbf16>
    tpu.vector_store %arg7[%c0_9, %c0_10], %21 {strides = array<i32>} : memref<16x32xbf16, #tpu.memory_space<vmem>>, vector<16x8xbf16>,
    %23 = vector.extract_strided_slice %1 {offsets = [0, 8], sizes = [16, 8], strides = [1, 1]} : vector<16x96xbf16> to vector<16x8xbf16>
    %24 = vector.extract_strided_slice %1 {offsets = [0, 40], sizes = [16, 8], strides = [1, 1]} : vector<16x96xbf16> to vector<16x8xbf16>
    %25 = vector.extract_strided_slice %1 {offsets = [0, 72], sizes = [16, 8], strides = [1, 1]} : vector<16x96xbf16> to vector<16x8xbf16>
    %cst_11 = arith.constant dense<0.000000e+00> : vector<16x16xf32>
    %26 = tpu.matmul %23, %24, %cst_11 {dimension_numbers = #tpu.dot_dimension_numbers<[1], [1], [0], [0], [0, 0, 1, 0], [], []>} : vector<16x8xbf16>, vector<16x8xbf16>, vector<16x16xf32> -> vector<16x16xf32>
    %c1 = arith.constant 1 : index
    %c0_12 = arith.constant 0 : index
    %c0_13 = arith.constant 0 : index
    %27 = vector.load %arg3[%c1, %c0_12, %c0_13] : memref<4x16x16xf32, #tpu.memory_space<vmem>>, vector<1x16x16xf32>
    %28 = vector.shape_cast %27 : vector<1x16x16xf32> to vector<16x16xf32>
    %29 = arith.addf %26, %28 : vector<16x16xf32>
    %cst_14 = arith.constant dense<0xFF800000> : vector<16xf32>
    %30 = vector.multi_reduction <maximumf>, %29, %cst_14 [1] : vector<16x16xf32> to vector<16xf32>
    %31 = vector.shape_cast %30 : vector<16xf32> to vector<16x1xf32>
    %32 = vector.broadcast %31 : vector<16x1xf32> to vector<16x16xf32>
    %33 = arith.subf %29, %32 : vector<16x16xf32>
    %34 = math.exp %33 : vector<16x16xf32>
    %cst_15 = arith.constant dense<0.000000e+00> : vector<16xf32>
    %35 = vector.multi_reduction <add>, %34, %cst_15 [1] : vector<16x16xf32> to vector<16xf32>
    %36 = vector.shape_cast %35 : vector<16xf32> to vector<16x1xf32>
    %37 = tpu.reciprocal %36 {approx = true} : vector<16x1xf32> -> vector<16x1xf32>
    %38 = vector.broadcast %37 : vector<16x1xf32> to vector<16x16xf32>
    %39 = arith.mulf %34, %38 : vector<16x16xf32>
    %40 = arith.truncf %39 : vector<16x16xf32> to vector<16x16xbf16>
    %cst_16 = arith.constant dense<0.000000e+00> : vector<16x8xf32>
    %41 = tpu.matmul %40, %25, %cst_16 {dimension_numbers = #tpu.dot_dimension_numbers<[1], [0], [0], [1], [0, 0, 1, 1], [], []>} : vector<16x16xbf16>, vector<16x8xbf16>, vector<16x8xf32> -> vector<16x8xf32>
    %42 = arith.truncf %41 : vector<16x8xf32> to vector<16x8xbf16>
    %c0_17 = arith.constant 0 : index
    %c8 = arith.constant 8 : index
    %43 = vector.load %arg7[%c0_17, %c8] : memref<16x32xbf16, #tpu.memory_space<vmem>>, vector<16x8xbf16>
    tpu.vector_store %arg7[%c0_17, %c8], %42 {strides = array<i32>} : memref<16x32xbf16, #tpu.memory_space<vmem>>, vector<16x8xbf16>,
    %44 = vector.extract_strided_slice %1 {offsets = [0, 16], sizes = [16, 8], strides = [1, 1]} : vector<16x96xbf16> to vector<16x8xbf16>
    %45 = vector.extract_strided_slice %1 {offsets = [0, 48], sizes = [16, 8], strides = [1, 1]} : vector<16x96xbf16> to vector<16x8xbf16>
    %46 = vector.extract_strided_slice %1 {offsets = [0, 80], sizes = [16, 8], strides = [1, 1]} : vector<16x96xbf16> to vector<16x8xbf16>
    %cst_18 = arith.constant dense<0.000000e+00> : vector<16x16xf32>
    %47 = tpu.matmul %44, %45, %cst_18 {dimension_numbers = #tpu.dot_dimension_numbers<[1], [1], [0], [0], [0, 0, 1, 0], [], []>} : vector<16x8xbf16>, vector<16x8xbf16>, vector<16x16xf32> -> vector<16x16xf32>
    %c2 = arith.constant 2 : index
    %c0_19 = arith.constant 0 : index
    %c0_20 = arith.constant 0 : index
    %48 = vector.load %arg3[%c2, %c0_19, %c0_20] : memref<4x16x16xf32, #tpu.memory_space<vmem>>, vector<1x16x16xf32>
    %49 = vector.shape_cast %48 : vector<1x16x16xf32> to vector<16x16xf32>
    %50 = arith.addf %47, %49 : vector<16x16xf32>
    %cst_21 = arith.constant dense<0xFF800000> : vector<16xf32>
    %51 = vector.multi_reduction <maximumf>, %50, %cst_21 [1] : vector<16x16xf32> to vector<16xf32>
    %52 = vector.shape_cast %51 : vector<16xf32> to vector<16x1xf32>
    %53 = vector.broadcast %52 : vector<16x1xf32> to vector<16x16xf32>
    %54 = arith.subf %50, %53 : vector<16x16xf32>
    %55 = math.exp %54 : vector<16x16xf32>
    %cst_22 = arith.constant dense<0.000000e+00> : vector<16xf32>
    %56 = vector.multi_reduction <add>, %55, %cst_22 [1] : vector<16x16xf32> to vector<16xf32>
    %57 = vector.shape_cast %56 : vector<16xf32> to vector<16x1xf32>
    %58 = tpu.reciprocal %57 {approx = true} : vector<16x1xf32> -> vector<16x1xf32>
    %59 = vector.broadcast %58 : vector<16x1xf32> to vector<16x16xf32>
    %60 = arith.mulf %55, %59 : vector<16x16xf32>
    %61 = arith.truncf %60 : vector<16x16xf32> to vector<16x16xbf16>
    %cst_23 = arith.constant dense<0.000000e+00> : vector<16x8xf32>
    %62 = tpu.matmul %61, %46, %cst_23 {dimension_numbers = #tpu.dot_dimension_numbers<[1], [0], [0], [1], [0, 0, 1, 1], [], []>} : vector<16x16xbf16>, vector<16x8xbf16>, vector<16x8xf32> -> vector<16x8xf32>
    %63 = arith.truncf %62 : vector<16x8xf32> to vector<16x8xbf16>
    %c0_24 = arith.constant 0 : index
    %c16 = arith.constant 16 : index
    %64 = vector.load %arg7[%c0_24, %c16] : memref<16x32xbf16, #tpu.memory_space<vmem>>, vector<16x8xbf16>
    tpu.vector_store %arg7[%c0_24, %c16], %63 {strides = array<i32>} : memref<16x32xbf16, #tpu.memory_space<vmem>>, vector<16x8xbf16>,
    %65 = vector.extract_strided_slice %1 {offsets = [0, 24], sizes = [16, 8], strides = [1, 1]} : vector<16x96xbf16> to vector<16x8xbf16>
    %66 = vector.extract_strided_slice %1 {offsets = [0, 56], sizes = [16, 8], strides = [1, 1]} : vector<16x96xbf16> to vector<16x8xbf16>
    %67 = vector.extract_strided_slice %1 {offsets = [0, 88], sizes = [16, 8], strides = [1, 1]} : vector<16x96xbf16> to vector<16x8xbf16>
    %cst_25 = arith.constant dense<0.000000e+00> : vector<16x16xf32>
    %68 = tpu.matmul %65, %66, %cst_25 {dimension_numbers = #tpu.dot_dimension_numbers<[1], [1], [0], [0], [0, 0, 1, 0], [], []>} : vector<16x8xbf16>, vector<16x8xbf16>, vector<16x16xf32> -> vector<16x16xf32>
    %c3 = arith.constant 3 : index
    %c0_26 = arith.constant 0 : index
    %c0_27 = arith.constant 0 : index
    %69 = vector.load %arg3[%c3, %c0_26, %c0_27] : memref<4x16x16xf32, #tpu.memory_space<vmem>>, vector<1x16x16xf32>
    %70 = vector.shape_cast %69 : vector<1x16x16xf32> to vector<16x16xf32>
    %71 = arith.addf %68, %70 : vector<16x16xf32>
    %cst_28 = arith.constant dense<0xFF800000> : vector<16xf32>
    %72 = vector.multi_reduction <maximumf>, %71, %cst_28 [1] : vector<16x16xf32> to vector<16xf32>
    %73 = vector.shape_cast %72 : vector<16xf32> to vector<16x1xf32>
    %74 = vector.broadcast %73 : vector<16x1xf32> to vector<16x16xf32>
    %75 = arith.subf %71, %74 : vector<16x16xf32>
    %76 = math.exp %75 : vector<16x16xf32>
    %cst_29 = arith.constant dense<0.000000e+00> : vector<16xf32>
    %77 = vector.multi_reduction <add>, %76, %cst_29 [1] : vector<16x16xf32> to vector<16xf32>
    %78 = vector.shape_cast %77 : vector<16xf32> to vector<16x1xf32>
    %79 = tpu.reciprocal %78 {approx = true} : vector<16x1xf32> -> vector<16x1xf32>
    %80 = vector.broadcast %79 : vector<16x1xf32> to vector<16x16xf32>
    %81 = arith.mulf %76, %80 : vector<16x16xf32>
    %82 = arith.truncf %81 : vector<16x16xf32> to vector<16x16xbf16>
    %cst_30 = arith.constant dense<0.000000e+00> : vector<16x8xf32>
    %83 = tpu.matmul %82, %67, %cst_30 {dimension_numbers = #tpu.dot_dimension_numbers<[1], [0], [0], [1], [0, 0, 1, 1], [], []>} : vector<16x16xbf16>, vector<16x8xbf16>, vector<16x8xf32> -> vector<16x8xf32>
    %84 = arith.truncf %83 : vector<16x8xf32> to vector<16x8xbf16>
    %c0_31 = arith.constant 0 : index
    %c24 = arith.constant 24 : index
    %85 = vector.load %arg7[%c0_31, %c24] : memref<16x32xbf16, #tpu.memory_space<vmem>>, vector<16x8xbf16>
    tpu.vector_store %arg7[%c0_31, %c24], %84 {strides = array<i32>} : memref<16x32xbf16, #tpu.memory_space<vmem>>, vector<16x8xbf16>,
    %c0_32 = arith.constant 0 : index
    %c0_33 = arith.constant 0 : index
    %86 = vector.load %arg7[%c0_32, %c0_33] : memref<16x32xbf16, #tpu.memory_space<vmem>>, vector<16x32xbf16>
    %c0_34 = arith.constant 0 : index
    %c0_35 = arith.constant 0 : index
    %87 = vector.load %arg4[%c0_34, %c0_35] : memref<32x32xbf16, #tpu.memory_space<vmem>>, vector<32x32xbf16>
    %cst_36 = arith.constant dense<0.000000e+00> : vector<16x32xf32>
    %88 = tpu.matmul %86, %87, %cst_36 {dimension_numbers = #tpu.dot_dimension_numbers<[1], [0], [0], [1], [0, 0, 1, 1], [], []>} : vector<16x32xbf16>, vector<32x32xbf16>, vector<16x32xf32> -> vector<16x32xf32>
    %c0_37 = arith.constant 0 : index
    %c0_38 = arith.constant 0 : index
    %89 = vector.load %arg5[%c0_37, %c0_38] : memref<1x32xf32, #tpu.memory_space<vmem>>, vector<1x32xf32>
    %90 = vector.broadcast %89 : vector<1x32xf32> to vector<16x32xf32>
    %91 = arith.addf %88, %90 : vector<16x32xf32>
    %92 = arith.truncf %91 : vector<16x32xf32> to vector<16x32xbf16>
    %c0_39 = arith.constant 0 : index
    %c0_40 = arith.constant 0 : index
    %c0_41 = arith.constant 0 : index
    %c0_42 = arith.constant 0 : index
    %93 = vector.load %arg6[%c0_39, %c0_40, %c0_41, %c0_42] : memref<1x1x16x32xbf16, #tpu.memory_space<vmem>>, vector<1x1x16x32xbf16>
    %94 = vector.shape_cast %93 : vector<1x1x16x32xbf16> to vector<16x32xbf16>
    %95 = vector.shape_cast %92 : vector<16x32xbf16> to vector<1x1x16x32xbf16>
    tpu.vector_store %arg6[%c0_39, %c0_40, %c0_41, %c0_42], %95 {strides = array<i32>} : memref<1x1x16x32xbf16, #tpu.memory_space<vmem>>, vector<1x1x16x32xbf16>,
    return
  }
  func.func @transform_0(%arg0: i32, %arg1: i32) -> (i32, i32, i32, i32) {
    %c0_i32 = arith.constant 0 : i32
    %c0_i32_0 = arith.constant 0 : i32
    %c0_i32_1 = arith.constant 0 : i32
    return %arg0, %arg1, %c0_i32, %c0_i32_0 : i32, i32, i32, i32
  }
  func.func @transform_1(%arg0: i32, %arg1: i32) -> (i32, i32, i32) {
    %c0_i32 = arith.constant 0 : i32
    %c0_i32_0 = arith.constant 0 : i32
    %c0_i32_1 = arith.constant 0 : i32
    %c0_i32_2 = arith.constant 0 : i32
    return %c0_i32, %c0_i32_0, %c0_i32_1 : i32, i32, i32
  }
  func.func @transform_2(%arg0: i32, %arg1: i32) -> (i32, i32) {
    %c0_i32 = arith.constant 0 : i32
    %c0_i32_0 = arith.constant 0 : i32
    %c0_i32_1 = arith.constant 0 : i32
    return %c0_i32, %c0_i32_0 : i32, i32
  }
  func.func @transform_3(%arg0: i32, %arg1: i32) -> (i32, i32) {
    %c0_i32 = arith.constant 0 : i32
    %c0_i32_0 = arith.constant 0 : i32
    %c0_i32_1 = arith.constant 0 : i32
    return %c0_i32, %c0_i32_0 : i32, i32
  }
  func.func @transform_4(%arg0: i32, %arg1: i32) -> (i32, i32, i32, i32) {
    %c0_i32 = arith.constant 0 : i32
    %c0_i32_0 = arith.constant 0 : i32
    %c0_i32_1 = arith.constant 0 : i32
    return %arg0, %arg1, %c0_i32, %c0_i32_0 : i32, i32, i32, i32
  }
}

module attributes {stable_mosaic.version = 11 : i64} {
  func.func @_mlp_block_kernel(%arg0: i32, %arg1: memref<128x32xf32, #tpu.memory_space<vmem>>, %arg2: memref<128x32xbf16, #tpu.memory_space<vmem>>, %arg3: memref<1x32xf32, #tpu.memory_space<vmem>>, %arg4: memref<1x32xf32, #tpu.memory_space<vmem>>, %arg5: memref<32x128xbf16, #tpu.memory_space<vmem>>, %arg6: memref<1x128xf32, #tpu.memory_space<vmem>>, %arg7: memref<128x32xbf16, #tpu.memory_space<vmem>>, %arg8: memref<1x32xf32, #tpu.memory_space<vmem>>, %arg9: memref<128x32xf32, #tpu.memory_space<vmem>>) attributes {dimension_semantics = [#tpu.dimension_semantics<parallel>], iteration_bounds = array<i64: 1>, scalar_prefetch = 0 : i64, scratch_operands = 0 : i64, tpu.core_type = #tpu.core_type<tc>, window_params = [{transform_indices = @transform_0, window_bounds = array<i64: 128, 32>}, {transform_indices = @transform_1, window_bounds = array<i64: 128, 32>}, {pipeline_mode = #tpu.pipeline_mode<synchronous>, transform_indices = @transform_2, window_bounds = array<i64: 1, 32>}, {pipeline_mode = #tpu.pipeline_mode<synchronous>, transform_indices = @transform_3, window_bounds = array<i64: 1, 32>}, {pipeline_mode = #tpu.pipeline_mode<synchronous>, transform_indices = @transform_4, window_bounds = array<i64: 32, 128>}, {pipeline_mode = #tpu.pipeline_mode<synchronous>, transform_indices = @transform_5, window_bounds = array<i64: 1, 128>}, {pipeline_mode = #tpu.pipeline_mode<synchronous>, transform_indices = @transform_6, window_bounds = array<i64: 128, 32>}, {pipeline_mode = #tpu.pipeline_mode<synchronous>, transform_indices = @transform_7, window_bounds = array<i64: 1, 32>}, {transform_indices = @transform_8, window_bounds = array<i64: 128, 32>}]} {
    %c0 = arith.constant 0 : index
    %c0_0 = arith.constant 0 : index
    %0 = vector.load %arg1[%c0, %c0_0] : memref<128x32xf32, #tpu.memory_space<vmem>>, vector<128x32xf32>
    %c0_1 = arith.constant 0 : index
    %c0_2 = arith.constant 0 : index
    %1 = vector.load %arg2[%c0_1, %c0_2] : memref<128x32xbf16, #tpu.memory_space<vmem>>, vector<128x32xbf16>
    %2 = arith.extf %1 : vector<128x32xbf16> to vector<128x32xf32>
    %3 = arith.addf %0, %2 : vector<128x32xf32>
    %cst = arith.constant dense<0.000000e+00> : vector<128xf32>
    %4 = vector.multi_reduction <add>, %3, %cst [1] : vector<128x32xf32> to vector<128xf32>
    %5 = vector.shape_cast %4 : vector<128xf32> to vector<128x1xf32>
    %cst_3 = arith.constant 3.200000e+01 : f32
    %6 = vector.broadcast %cst_3 : f32 to vector<128x1xf32>
    %7 = arith.divf %5, %6 : vector<128x1xf32>
    %8 = vector.broadcast %7 : vector<128x1xf32> to vector<128x32xf32>
    %9 = arith.subf %3, %8 : vector<128x32xf32>
    %10 = arith.mulf %9, %9 : vector<128x32xf32>
    %cst_4 = arith.constant dense<0.000000e+00> : vector<128xf32>
    %11 = vector.multi_reduction <add>, %10, %cst_4 [1] : vector<128x32xf32> to vector<128xf32>
    %12 = vector.shape_cast %11 : vector<128xf32> to vector<128x1xf32>
    %cst_5 = arith.constant 3.200000e+01 : f32
    %13 = vector.broadcast %cst_5 : f32 to vector<128x1xf32>
    %14 = arith.divf %12, %13 : vector<128x1xf32>
    %15 = vector.broadcast %7 : vector<128x1xf32> to vector<128x32xf32>
    %16 = arith.subf %3, %15 : vector<128x32xf32>
    %cst_6 = arith.constant 9.99999974E-6 : f32
    %17 = vector.broadcast %cst_6 : f32 to vector<128x1xf32>
    %18 = arith.addf %14, %17 : vector<128x1xf32>
    %19 = math.rsqrt %18 : vector<128x1xf32>
    %20 = vector.broadcast %19 : vector<128x1xf32> to vector<128x32xf32>
    %21 = arith.mulf %16, %20 : vector<128x32xf32>
    %c0_7 = arith.constant 0 : index
    %c0_8 = arith.constant 0 : index
    %22 = vector.load %arg3[%c0_7, %c0_8] : memref<1x32xf32, #tpu.memory_space<vmem>>, vector<1x32xf32>
    %23 = vector.broadcast %22 : vector<1x32xf32> to vector<128x32xf32>
    %24 = arith.mulf %21, %23 : vector<128x32xf32>
    %c0_9 = arith.constant 0 : index
    %c0_10 = arith.constant 0 : index
    %25 = vector.load %arg4[%c0_9, %c0_10] : memref<1x32xf32, #tpu.memory_space<vmem>>, vector<1x32xf32>
    %26 = vector.broadcast %25 : vector<1x32xf32> to vector<128x32xf32>
    %27 = arith.addf %24, %26 : vector<128x32xf32>
    %28 = arith.truncf %27 : vector<128x32xf32> to vector<128x32xbf16>
    %c0_11 = arith.constant 0 : index
    %c0_12 = arith.constant 0 : index
    %29 = vector.load %arg5[%c0_11, %c0_12] : memref<32x128xbf16, #tpu.memory_space<vmem>>, vector<32x128xbf16>
    %cst_13 = arith.constant dense<0.000000e+00> : vector<128x128xf32>
    %30 = tpu.matmul %28, %29, %cst_13 {dimension_numbers = #tpu.dot_dimension_numbers<[1], [0], [0], [1], [0, 0, 1, 1], [], []>} : vector<128x32xbf16>, vector<32x128xbf16>, vector<128x128xf32> -> vector<128x128xf32>
    %c0_14 = arith.constant 0 : index
    %c0_15 = arith.constant 0 : index
    %31 = vector.load %arg6[%c0_14, %c0_15] : memref<1x128xf32, #tpu.memory_space<vmem>>, vector<1x128xf32>
    %32 = vector.broadcast %31 : vector<1x128xf32> to vector<128x128xf32>
    %33 = arith.addf %30, %32 : vector<128x128xf32>
    %cst_16 = arith.constant 5.000000e-01 : f32
    %34 = vector.broadcast %cst_16 : f32 to vector<128x128xf32>
    %35 = arith.mulf %34, %33 : vector<128x128xf32>
    %cst_17 = arith.constant 4.471500e-02 : f32
    %36 = vector.broadcast %cst_17 : f32 to vector<128x128xf32>
    %37 = arith.mulf %36, %33 : vector<128x128xf32>
    %38 = arith.mulf %37, %33 : vector<128x128xf32>
    %39 = arith.mulf %38, %33 : vector<128x128xf32>
    %40 = arith.addf %33, %39 : vector<128x128xf32>
    %cst_18 = arith.constant 0.797884583 : f32
    %41 = vector.broadcast %cst_18 : f32 to vector<128x128xf32>
    %42 = arith.mulf %41, %40 : vector<128x128xf32>
    %43 = math.tanh %42 : vector<128x128xf32>
    %cst_19 = arith.constant 1.000000e+00 : f32
    %44 = vector.broadcast %cst_19 : f32 to vector<128x128xf32>
    %45 = arith.addf %44, %43 : vector<128x128xf32>
    %46 = arith.mulf %35, %45 : vector<128x128xf32>
    %47 = arith.truncf %46 : vector<128x128xf32> to vector<128x128xbf16>
    %c0_20 = arith.constant 0 : index
    %c0_21 = arith.constant 0 : index
    %48 = vector.load %arg7[%c0_20, %c0_21] : memref<128x32xbf16, #tpu.memory_space<vmem>>, vector<128x32xbf16>
    %cst_22 = arith.constant dense<0.000000e+00> : vector<128x32xf32>
    %49 = tpu.matmul %47, %48, %cst_22 {dimension_numbers = #tpu.dot_dimension_numbers<[1], [0], [0], [1], [0, 0, 1, 1], [], []>} : vector<128x128xbf16>, vector<128x32xbf16>, vector<128x32xf32> -> vector<128x32xf32>
    %50 = arith.addf %3, %49 : vector<128x32xf32>
    %c0_23 = arith.constant 0 : index
    %c0_24 = arith.constant 0 : index
    %51 = vector.load %arg8[%c0_23, %c0_24] : memref<1x32xf32, #tpu.memory_space<vmem>>, vector<1x32xf32>
    %52 = vector.broadcast %51 : vector<1x32xf32> to vector<128x32xf32>
    %53 = arith.addf %50, %52 : vector<128x32xf32>
    %c0_25 = arith.constant 0 : index
    %c0_26 = arith.constant 0 : index
    %54 = vector.load %arg9[%c0_25, %c0_26] : memref<128x32xf32, #tpu.memory_space<vmem>>, vector<128x32xf32>
    tpu.vector_store %arg9[%c0_25, %c0_26], %53 {strides = array<i32>} : memref<128x32xf32, #tpu.memory_space<vmem>>, vector<128x32xf32>,
    return
  }
  func.func @transform_0(%arg0: i32) -> (i32, i32) {
    %c0_i32 = arith.constant 0 : i32
    %c0_i32_0 = arith.constant 0 : i32
    return %arg0, %c0_i32 : i32, i32
  }
  func.func @transform_1(%arg0: i32) -> (i32, i32) {
    %c0_i32 = arith.constant 0 : i32
    %c0_i32_0 = arith.constant 0 : i32
    return %arg0, %c0_i32 : i32, i32
  }
  func.func @transform_2(%arg0: i32) -> (i32, i32) {
    %c0_i32 = arith.constant 0 : i32
    %c0_i32_0 = arith.constant 0 : i32
    %c0_i32_1 = arith.constant 0 : i32
    return %c0_i32, %c0_i32_0 : i32, i32
  }
  func.func @transform_3(%arg0: i32) -> (i32, i32) {
    %c0_i32 = arith.constant 0 : i32
    %c0_i32_0 = arith.constant 0 : i32
    %c0_i32_1 = arith.constant 0 : i32
    return %c0_i32, %c0_i32_0 : i32, i32
  }
  func.func @transform_4(%arg0: i32) -> (i32, i32) {
    %c0_i32 = arith.constant 0 : i32
    %c0_i32_0 = arith.constant 0 : i32
    %c0_i32_1 = arith.constant 0 : i32
    return %c0_i32, %c0_i32_0 : i32, i32
  }
  func.func @transform_5(%arg0: i32) -> (i32, i32) {
    %c0_i32 = arith.constant 0 : i32
    %c0_i32_0 = arith.constant 0 : i32
    %c0_i32_1 = arith.constant 0 : i32
    return %c0_i32, %c0_i32_0 : i32, i32
  }
  func.func @transform_6(%arg0: i32) -> (i32, i32) {
    %c0_i32 = arith.constant 0 : i32
    %c0_i32_0 = arith.constant 0 : i32
    %c0_i32_1 = arith.constant 0 : i32
    return %c0_i32, %c0_i32_0 : i32, i32
  }
  func.func @transform_7(%arg0: i32) -> (i32, i32) {
    %c0_i32 = arith.constant 0 : i32
    %c0_i32_0 = arith.constant 0 : i32
    %c0_i32_1 = arith.constant 0 : i32
    return %c0_i32, %c0_i32_0 : i32, i32
  }
  func.func @transform_8(%arg0: i32) -> (i32, i32) {
    %c0_i32 = arith.constant 0 : i32
    %c0_i32_0 = arith.constant 0 : i32
    return %arg0, %c0_i32 : i32, i32
  }
}

module attributes {stable_mosaic.version = 11 : i64} {
  func.func @_window_attn_kernel(%arg0: i32, %arg1: i32, %arg2: memref<1x1x16x96xbf16, #tpu.memory_space<vmem>>, %arg3: memref<4x16x16xf32, #tpu.memory_space<vmem>>, %arg4: memref<1x16x16xf32, #tpu.memory_space<vmem>>, %arg5: memref<32x32xbf16, #tpu.memory_space<vmem>>, %arg6: memref<1x32xf32, #tpu.memory_space<vmem>>, %arg7: memref<1x1x16x32xbf16, #tpu.memory_space<vmem>>, %arg8: memref<16x32xbf16, #tpu.memory_space<vmem>>) attributes {dimension_semantics = [#tpu.dimension_semantics<parallel>, #tpu.dimension_semantics<parallel>], iteration_bounds = array<i64: 2, 4>, scalar_prefetch = 0 : i64, scratch_operands = 1 : i64, tpu.core_type = #tpu.core_type<tc>, window_params = [{transform_indices = @transform_0, window_bounds = array<i64: 1, 1, 16, 96>}, {pipeline_mode = #tpu.pipeline_mode<synchronous>, transform_indices = @transform_1, window_bounds = array<i64: 4, 16, 16>}, {transform_indices = @transform_2, window_bounds = array<i64: 1, 16, 16>}, {pipeline_mode = #tpu.pipeline_mode<synchronous>, transform_indices = @transform_3, window_bounds = array<i64: 32, 32>}, {pipeline_mode = #tpu.pipeline_mode<synchronous>, transform_indices = @transform_4, window_bounds = array<i64: 1, 32>}, {transform_indices = @transform_5, window_bounds = array<i64: 1, 1, 16, 32>}]} {
    %c0 = arith.constant 0 : index
    %c0_0 = arith.constant 0 : index
    %c0_1 = arith.constant 0 : index
    %c0_2 = arith.constant 0 : index
    %0 = vector.load %arg2[%c0, %c0_0, %c0_1, %c0_2] : memref<1x1x16x96xbf16, #tpu.memory_space<vmem>>, vector<1x1x16x96xbf16>
    %1 = vector.shape_cast %0 : vector<1x1x16x96xbf16> to vector<16x96xbf16>
    %c0_3 = arith.constant 0 : index
    %c0_4 = arith.constant 0 : index
    %c0_5 = arith.constant 0 : index
    %2 = vector.load %arg4[%c0_3, %c0_4, %c0_5] : memref<1x16x16xf32, #tpu.memory_space<vmem>>, vector<1x16x16xf32>
    %3 = vector.shape_cast %2 : vector<1x16x16xf32> to vector<16x16xf32>
    %4 = vector.extract_strided_slice %1 {offsets = [0, 0], sizes = [16, 8], strides = [1, 1]} : vector<16x96xbf16> to vector<16x8xbf16>
    %5 = vector.extract_strided_slice %1 {offsets = [0, 32], sizes = [16, 8], strides = [1, 1]} : vector<16x96xbf16> to vector<16x8xbf16>
    %6 = vector.extract_strided_slice %1 {offsets = [0, 64], sizes = [16, 8], strides = [1, 1]} : vector<16x96xbf16> to vector<16x8xbf16>
    %cst = arith.constant dense<0.000000e+00> : vector<16x16xf32>
    %7 = tpu.matmul %4, %5, %cst {dimension_numbers = #tpu.dot_dimension_numbers<[1], [1], [0], [0], [0, 0, 1, 0], [], []>} : vector<16x8xbf16>, vector<16x8xbf16>, vector<16x16xf32> -> vector<16x16xf32>
    %c0_6 = arith.constant 0 : index
    %c0_7 = arith.constant 0 : index
    %c0_8 = arith.constant 0 : index
    %8 = vector.load %arg3[%c0_6, %c0_7, %c0_8] : memref<4x16x16xf32, #tpu.memory_space<vmem>>, vector<1x16x16xf32>
    %9 = vector.shape_cast %8 : vector<1x16x16xf32> to vector<16x16xf32>
    %10 = arith.addf %7, %9 : vector<16x16xf32>
    %11 = arith.addf %10, %3 : vector<16x16xf32>
    %cst_9 = arith.constant dense<0xFF800000> : vector<16xf32>
    %12 = vector.multi_reduction <maximumf>, %11, %cst_9 [1] : vector<16x16xf32> to vector<16xf32>
    %13 = vector.shape_cast %12 : vector<16xf32> to vector<16x1xf32>
    %14 = vector.broadcast %13 : vector<16x1xf32> to vector<16x16xf32>
    %15 = arith.subf %11, %14 : vector<16x16xf32>
    %16 = math.exp %15 : vector<16x16xf32>
    %cst_10 = arith.constant dense<0.000000e+00> : vector<16xf32>
    %17 = vector.multi_reduction <add>, %16, %cst_10 [1] : vector<16x16xf32> to vector<16xf32>
    %18 = vector.shape_cast %17 : vector<16xf32> to vector<16x1xf32>
    %19 = tpu.reciprocal %18 {approx = true} : vector<16x1xf32> -> vector<16x1xf32>
    %20 = vector.broadcast %19 : vector<16x1xf32> to vector<16x16xf32>
    %21 = arith.mulf %16, %20 : vector<16x16xf32>
    %22 = arith.truncf %21 : vector<16x16xf32> to vector<16x16xbf16>
    %cst_11 = arith.constant dense<0.000000e+00> : vector<16x8xf32>
    %23 = tpu.matmul %22, %6, %cst_11 {dimension_numbers = #tpu.dot_dimension_numbers<[1], [0], [0], [1], [0, 0, 1, 1], [], []>} : vector<16x16xbf16>, vector<16x8xbf16>, vector<16x8xf32> -> vector<16x8xf32>
    %24 = arith.truncf %23 : vector<16x8xf32> to vector<16x8xbf16>
    %c0_12 = arith.constant 0 : index
    %c0_13 = arith.constant 0 : index
    %25 = vector.load %arg8[%c0_12, %c0_13] : memref<16x32xbf16, #tpu.memory_space<vmem>>, vector<16x8xbf16>
    tpu.vector_store %arg8[%c0_12, %c0_13], %24 {strides = array<i32>} : memref<16x32xbf16, #tpu.memory_space<vmem>>, vector<16x8xbf16>,
    %26 = vector.extract_strided_slice %1 {offsets = [0, 8], sizes = [16, 8], strides = [1, 1]} : vector<16x96xbf16> to vector<16x8xbf16>
    %27 = vector.extract_strided_slice %1 {offsets = [0, 40], sizes = [16, 8], strides = [1, 1]} : vector<16x96xbf16> to vector<16x8xbf16>
    %28 = vector.extract_strided_slice %1 {offsets = [0, 72], sizes = [16, 8], strides = [1, 1]} : vector<16x96xbf16> to vector<16x8xbf16>
    %cst_14 = arith.constant dense<0.000000e+00> : vector<16x16xf32>
    %29 = tpu.matmul %26, %27, %cst_14 {dimension_numbers = #tpu.dot_dimension_numbers<[1], [1], [0], [0], [0, 0, 1, 0], [], []>} : vector<16x8xbf16>, vector<16x8xbf16>, vector<16x16xf32> -> vector<16x16xf32>
    %c1 = arith.constant 1 : index
    %c0_15 = arith.constant 0 : index
    %c0_16 = arith.constant 0 : index
    %30 = vector.load %arg3[%c1, %c0_15, %c0_16] : memref<4x16x16xf32, #tpu.memory_space<vmem>>, vector<1x16x16xf32>
    %31 = vector.shape_cast %30 : vector<1x16x16xf32> to vector<16x16xf32>
    %32 = arith.addf %29, %31 : vector<16x16xf32>
    %33 = arith.addf %32, %3 : vector<16x16xf32>
    %cst_17 = arith.constant dense<0xFF800000> : vector<16xf32>
    %34 = vector.multi_reduction <maximumf>, %33, %cst_17 [1] : vector<16x16xf32> to vector<16xf32>
    %35 = vector.shape_cast %34 : vector<16xf32> to vector<16x1xf32>
    %36 = vector.broadcast %35 : vector<16x1xf32> to vector<16x16xf32>
    %37 = arith.subf %33, %36 : vector<16x16xf32>
    %38 = math.exp %37 : vector<16x16xf32>
    %cst_18 = arith.constant dense<0.000000e+00> : vector<16xf32>
    %39 = vector.multi_reduction <add>, %38, %cst_18 [1] : vector<16x16xf32> to vector<16xf32>
    %40 = vector.shape_cast %39 : vector<16xf32> to vector<16x1xf32>
    %41 = tpu.reciprocal %40 {approx = true} : vector<16x1xf32> -> vector<16x1xf32>
    %42 = vector.broadcast %41 : vector<16x1xf32> to vector<16x16xf32>
    %43 = arith.mulf %38, %42 : vector<16x16xf32>
    %44 = arith.truncf %43 : vector<16x16xf32> to vector<16x16xbf16>
    %cst_19 = arith.constant dense<0.000000e+00> : vector<16x8xf32>
    %45 = tpu.matmul %44, %28, %cst_19 {dimension_numbers = #tpu.dot_dimension_numbers<[1], [0], [0], [1], [0, 0, 1, 1], [], []>} : vector<16x16xbf16>, vector<16x8xbf16>, vector<16x8xf32> -> vector<16x8xf32>
    %46 = arith.truncf %45 : vector<16x8xf32> to vector<16x8xbf16>
    %c0_20 = arith.constant 0 : index
    %c8 = arith.constant 8 : index
    %47 = vector.load %arg8[%c0_20, %c8] : memref<16x32xbf16, #tpu.memory_space<vmem>>, vector<16x8xbf16>
    tpu.vector_store %arg8[%c0_20, %c8], %46 {strides = array<i32>} : memref<16x32xbf16, #tpu.memory_space<vmem>>, vector<16x8xbf16>,
    %48 = vector.extract_strided_slice %1 {offsets = [0, 16], sizes = [16, 8], strides = [1, 1]} : vector<16x96xbf16> to vector<16x8xbf16>
    %49 = vector.extract_strided_slice %1 {offsets = [0, 48], sizes = [16, 8], strides = [1, 1]} : vector<16x96xbf16> to vector<16x8xbf16>
    %50 = vector.extract_strided_slice %1 {offsets = [0, 80], sizes = [16, 8], strides = [1, 1]} : vector<16x96xbf16> to vector<16x8xbf16>
    %cst_21 = arith.constant dense<0.000000e+00> : vector<16x16xf32>
    %51 = tpu.matmul %48, %49, %cst_21 {dimension_numbers = #tpu.dot_dimension_numbers<[1], [1], [0], [0], [0, 0, 1, 0], [], []>} : vector<16x8xbf16>, vector<16x8xbf16>, vector<16x16xf32> -> vector<16x16xf32>
    %c2 = arith.constant 2 : index
    %c0_22 = arith.constant 0 : index
    %c0_23 = arith.constant 0 : index
    %52 = vector.load %arg3[%c2, %c0_22, %c0_23] : memref<4x16x16xf32, #tpu.memory_space<vmem>>, vector<1x16x16xf32>
    %53 = vector.shape_cast %52 : vector<1x16x16xf32> to vector<16x16xf32>
    %54 = arith.addf %51, %53 : vector<16x16xf32>
    %55 = arith.addf %54, %3 : vector<16x16xf32>
    %cst_24 = arith.constant dense<0xFF800000> : vector<16xf32>
    %56 = vector.multi_reduction <maximumf>, %55, %cst_24 [1] : vector<16x16xf32> to vector<16xf32>
    %57 = vector.shape_cast %56 : vector<16xf32> to vector<16x1xf32>
    %58 = vector.broadcast %57 : vector<16x1xf32> to vector<16x16xf32>
    %59 = arith.subf %55, %58 : vector<16x16xf32>
    %60 = math.exp %59 : vector<16x16xf32>
    %cst_25 = arith.constant dense<0.000000e+00> : vector<16xf32>
    %61 = vector.multi_reduction <add>, %60, %cst_25 [1] : vector<16x16xf32> to vector<16xf32>
    %62 = vector.shape_cast %61 : vector<16xf32> to vector<16x1xf32>
    %63 = tpu.reciprocal %62 {approx = true} : vector<16x1xf32> -> vector<16x1xf32>
    %64 = vector.broadcast %63 : vector<16x1xf32> to vector<16x16xf32>
    %65 = arith.mulf %60, %64 : vector<16x16xf32>
    %66 = arith.truncf %65 : vector<16x16xf32> to vector<16x16xbf16>
    %cst_26 = arith.constant dense<0.000000e+00> : vector<16x8xf32>
    %67 = tpu.matmul %66, %50, %cst_26 {dimension_numbers = #tpu.dot_dimension_numbers<[1], [0], [0], [1], [0, 0, 1, 1], [], []>} : vector<16x16xbf16>, vector<16x8xbf16>, vector<16x8xf32> -> vector<16x8xf32>
    %68 = arith.truncf %67 : vector<16x8xf32> to vector<16x8xbf16>
    %c0_27 = arith.constant 0 : index
    %c16 = arith.constant 16 : index
    %69 = vector.load %arg8[%c0_27, %c16] : memref<16x32xbf16, #tpu.memory_space<vmem>>, vector<16x8xbf16>
    tpu.vector_store %arg8[%c0_27, %c16], %68 {strides = array<i32>} : memref<16x32xbf16, #tpu.memory_space<vmem>>, vector<16x8xbf16>,
    %70 = vector.extract_strided_slice %1 {offsets = [0, 24], sizes = [16, 8], strides = [1, 1]} : vector<16x96xbf16> to vector<16x8xbf16>
    %71 = vector.extract_strided_slice %1 {offsets = [0, 56], sizes = [16, 8], strides = [1, 1]} : vector<16x96xbf16> to vector<16x8xbf16>
    %72 = vector.extract_strided_slice %1 {offsets = [0, 88], sizes = [16, 8], strides = [1, 1]} : vector<16x96xbf16> to vector<16x8xbf16>
    %cst_28 = arith.constant dense<0.000000e+00> : vector<16x16xf32>
    %73 = tpu.matmul %70, %71, %cst_28 {dimension_numbers = #tpu.dot_dimension_numbers<[1], [1], [0], [0], [0, 0, 1, 0], [], []>} : vector<16x8xbf16>, vector<16x8xbf16>, vector<16x16xf32> -> vector<16x16xf32>
    %c3 = arith.constant 3 : index
    %c0_29 = arith.constant 0 : index
    %c0_30 = arith.constant 0 : index
    %74 = vector.load %arg3[%c3, %c0_29, %c0_30] : memref<4x16x16xf32, #tpu.memory_space<vmem>>, vector<1x16x16xf32>
    %75 = vector.shape_cast %74 : vector<1x16x16xf32> to vector<16x16xf32>
    %76 = arith.addf %73, %75 : vector<16x16xf32>
    %77 = arith.addf %76, %3 : vector<16x16xf32>
    %cst_31 = arith.constant dense<0xFF800000> : vector<16xf32>
    %78 = vector.multi_reduction <maximumf>, %77, %cst_31 [1] : vector<16x16xf32> to vector<16xf32>
    %79 = vector.shape_cast %78 : vector<16xf32> to vector<16x1xf32>
    %80 = vector.broadcast %79 : vector<16x1xf32> to vector<16x16xf32>
    %81 = arith.subf %77, %80 : vector<16x16xf32>
    %82 = math.exp %81 : vector<16x16xf32>
    %cst_32 = arith.constant dense<0.000000e+00> : vector<16xf32>
    %83 = vector.multi_reduction <add>, %82, %cst_32 [1] : vector<16x16xf32> to vector<16xf32>
    %84 = vector.shape_cast %83 : vector<16xf32> to vector<16x1xf32>
    %85 = tpu.reciprocal %84 {approx = true} : vector<16x1xf32> -> vector<16x1xf32>
    %86 = vector.broadcast %85 : vector<16x1xf32> to vector<16x16xf32>
    %87 = arith.mulf %82, %86 : vector<16x16xf32>
    %88 = arith.truncf %87 : vector<16x16xf32> to vector<16x16xbf16>
    %cst_33 = arith.constant dense<0.000000e+00> : vector<16x8xf32>
    %89 = tpu.matmul %88, %72, %cst_33 {dimension_numbers = #tpu.dot_dimension_numbers<[1], [0], [0], [1], [0, 0, 1, 1], [], []>} : vector<16x16xbf16>, vector<16x8xbf16>, vector<16x8xf32> -> vector<16x8xf32>
    %90 = arith.truncf %89 : vector<16x8xf32> to vector<16x8xbf16>
    %c0_34 = arith.constant 0 : index
    %c24 = arith.constant 24 : index
    %91 = vector.load %arg8[%c0_34, %c24] : memref<16x32xbf16, #tpu.memory_space<vmem>>, vector<16x8xbf16>
    tpu.vector_store %arg8[%c0_34, %c24], %90 {strides = array<i32>} : memref<16x32xbf16, #tpu.memory_space<vmem>>, vector<16x8xbf16>,
    %c0_35 = arith.constant 0 : index
    %c0_36 = arith.constant 0 : index
    %92 = vector.load %arg8[%c0_35, %c0_36] : memref<16x32xbf16, #tpu.memory_space<vmem>>, vector<16x32xbf16>
    %c0_37 = arith.constant 0 : index
    %c0_38 = arith.constant 0 : index
    %93 = vector.load %arg5[%c0_37, %c0_38] : memref<32x32xbf16, #tpu.memory_space<vmem>>, vector<32x32xbf16>
    %cst_39 = arith.constant dense<0.000000e+00> : vector<16x32xf32>
    %94 = tpu.matmul %92, %93, %cst_39 {dimension_numbers = #tpu.dot_dimension_numbers<[1], [0], [0], [1], [0, 0, 1, 1], [], []>} : vector<16x32xbf16>, vector<32x32xbf16>, vector<16x32xf32> -> vector<16x32xf32>
    %c0_40 = arith.constant 0 : index
    %c0_41 = arith.constant 0 : index
    %95 = vector.load %arg6[%c0_40, %c0_41] : memref<1x32xf32, #tpu.memory_space<vmem>>, vector<1x32xf32>
    %96 = vector.broadcast %95 : vector<1x32xf32> to vector<16x32xf32>
    %97 = arith.addf %94, %96 : vector<16x32xf32>
    %98 = arith.truncf %97 : vector<16x32xf32> to vector<16x32xbf16>
    %c0_42 = arith.constant 0 : index
    %c0_43 = arith.constant 0 : index
    %c0_44 = arith.constant 0 : index
    %c0_45 = arith.constant 0 : index
    %99 = vector.load %arg7[%c0_42, %c0_43, %c0_44, %c0_45] : memref<1x1x16x32xbf16, #tpu.memory_space<vmem>>, vector<1x1x16x32xbf16>
    %100 = vector.shape_cast %99 : vector<1x1x16x32xbf16> to vector<16x32xbf16>
    %101 = vector.shape_cast %98 : vector<16x32xbf16> to vector<1x1x16x32xbf16>
    tpu.vector_store %arg7[%c0_42, %c0_43, %c0_44, %c0_45], %101 {strides = array<i32>} : memref<1x1x16x32xbf16, #tpu.memory_space<vmem>>, vector<1x1x16x32xbf16>,
    return
  }
  func.func @transform_0(%arg0: i32, %arg1: i32) -> (i32, i32, i32, i32) {
    %c0_i32 = arith.constant 0 : i32
    %c0_i32_0 = arith.constant 0 : i32
    %c0_i32_1 = arith.constant 0 : i32
    return %arg0, %arg1, %c0_i32, %c0_i32_0 : i32, i32, i32, i32
  }
  func.func @transform_1(%arg0: i32, %arg1: i32) -> (i32, i32, i32) {
    %c0_i32 = arith.constant 0 : i32
    %c0_i32_0 = arith.constant 0 : i32
    %c0_i32_1 = arith.constant 0 : i32
    %c0_i32_2 = arith.constant 0 : i32
    return %c0_i32, %c0_i32_0, %c0_i32_1 : i32, i32, i32
  }
  func.func @transform_2(%arg0: i32, %arg1: i32) -> (i32, i32, i32) {
    %c0_i32 = arith.constant 0 : i32
    %c0_i32_0 = arith.constant 0 : i32
    %c0_i32_1 = arith.constant 0 : i32
    return %arg1, %c0_i32, %c0_i32_0 : i32, i32, i32
  }
  func.func @transform_3(%arg0: i32, %arg1: i32) -> (i32, i32) {
    %c0_i32 = arith.constant 0 : i32
    %c0_i32_0 = arith.constant 0 : i32
    %c0_i32_1 = arith.constant 0 : i32
    return %c0_i32, %c0_i32_0 : i32, i32
  }
  func.func @transform_4(%arg0: i32, %arg1: i32) -> (i32, i32) {
    %c0_i32 = arith.constant 0 : i32
    %c0_i32_0 = arith.constant 0 : i32
    %c0_i32_1 = arith.constant 0 : i32
    return %c0_i32, %c0_i32_0 : i32, i32
  }
  func.func @transform_5(%arg0: i32, %arg1: i32) -> (i32, i32, i32, i32) {
    %c0_i32 = arith.constant 0 : i32
    %c0_i32_0 = arith.constant 0 : i32
    %c0_i32_1 = arith.constant 0 : i32
    return %arg0, %arg1, %c0_i32, %c0_i32_0 : i32, i32, i32, i32
  }
}

</mosaic_0001>

<bundles_post_ra>
// kernel: _lambda_.6
= control target key start
LH: loop header
LB: loop body
LE: loop exit
PB: predicated region body
PF: predicated region fallthrough
CT: control target
= control target key end

     0   :  { %vm37_vm0 = vcmask 261120   ;;  %vm509_vm1 = vcmask 781312   ;;  %s1014_s0 = inlined_call_operand.vmem [shape: f32[128,32], index: 0, kind: input, shape index: {}]   ;;  %s1015_s3 = inlined_call_operand.vmem [shape: bf16[32,96], index: 3, kind: input, shape index: {}]   ;;  %s1016_s1 = inlined_call_operand.vmem [shape: f32[1,32], index: 1, kind: input, shape index: {}]   ;;  %s1017_s2 = inlined_call_operand.vmem [shape: f32[1,32], index: 2, kind: input, shape index: {}]   ;;  %s1018_s4 = inlined_call_operand.vmem [shape: f32[1,96], index: 4, kind: input, shape index: {}]   ;;  %s1019_s5 = inlined_call_operand.vmem [shape: bf16[128,96], index: 5, kind: output, shape index: {}]  }
   0x1   :  { %v21_v0 = vld [vmem:[%s1014_s0] sm:$0xff]  ;;  %v22_v2 = vld [vmem:[%s1014_s0 + $0x8] sm:$0xff]  ;;  %v23_v8 = vld [vmem:[%s1014_s0 + $0x10] sm:$0xff] }
   0x2   :  { %v29_v1 = vld [vmem:[%s1014_s0 + $0x40] sm:$0xff]  ;;  %v38_v3 = vsel %vm37_vm0, %v21_v0, 0.0  ;;  %v30_v5 = vld [vmem:[%s1014_s0 + $0x48] sm:$0xff]  ;;  %v41_v6 = vsel %vm37_vm0, %v22_v2, 0.0  ;;  %v24_v9 = vld [vmem:[%s1014_s0 + $0x18] sm:$0xff]  ;;  %v44_v10 = vsel %vm37_vm0, %v23_v8, 0.0 }
   0x3   :  { %v62_v4 = vsel %vm37_vm0, %v29_v1, 0.0  ;;  %39 = vadd.xlane.f32.xlu0 %v38_v3  ;;  %v65_v7 = vsel %vm37_vm0, %v30_v5, 0.0  ;;  %v47_v11 = vsel %vm37_vm0, %v24_v9, 0.0  ;;  %v700_v12 = vld [vmem:[%s1014_s0 + $0x50] sm:$0xff]  ;;  %v705_v13 = vld [vmem:[%s1014_s0 + $0x58] sm:$0xff]  ;;  %v714_v16 = vld [vmem:[%s1014_s0 + $0x20] sm:$0xff] }
   0x4   :  { %63 = vadd.xlane.f32.xlu1 %v62_v4  ;;  %v68_v14 = vsel %vm37_vm0, %v700_v12, 0.0  ;;  %v71_v15 = vsel %vm37_vm0, %v705_v13, 0.0  ;;  %v719_v17 = vld [vmem:[%s1014_s0 + $0x28] sm:$0xff]  ;;  %v50_v18 = vsel %vm37_vm0, %v714_v16, 0.0  ;;  %v728_v20 = vld [vmem:[%s1014_s0 + $0x60] sm:$0xff]  ;;  %v742_v24 = vld [vmem:[%s1014_s0 + $0x30] sm:$0xff] }
   0x5   :  { %v53_v19 = vsel %vm37_vm0, %v719_v17, 0.0  ;;  %v733_v21 = vld [vmem:[%s1014_s0 + $0x68] sm:$0xff]  ;;  %v74_v22 = vsel %vm37_vm0, %v728_v20, 0.0  ;;  %v747_v25 = vld [vmem:[%s1014_s0 + $0x38] sm:$0xff]  ;;  %v56_v26 = vsel %vm37_vm0, %v742_v24, 0.0  ;;  %v756_v28 = vld [vmem:[%s1014_s0 + $0x70] sm:$0xff] }
   0x6   :  { %v77_v23 = vsel %vm37_vm0, %v733_v21, 0.0  ;;  %v59_v27 = vsel %vm37_vm0, %v747_v25, 0.0  ;;  %v761_v29 = vld [vmem:[%s1014_s0 + $0x78] sm:$0xff]  ;;  %v80_v30 = vsel %vm37_vm0, %v756_v28, 0.0 }
   0x7   :  { %42 = vadd.xlane.f32.xlu0 %v41_v6  ;;  %v83_v31 = vsel %vm37_vm0, %v761_v29, 0.0 }
   0x8   :  { %66 = vadd.xlane.f32.xlu1 %v65_v7 }
   0xb   :  { %45 = vadd.xlane.f32.xlu0 %v44_v10 }
   0xc   :  { %48 = vadd.xlane.f32.xlu1 %v47_v11 }
   0xf   :  { %69 = vadd.xlane.f32.xlu0 %v68_v14 }
  0x10   :  { %72 = vadd.xlane.f32.xlu1 %v71_v15 }
  0x13   :  { %51 = vadd.xlane.f32.xlu0 %v50_v18 }
  0x14   :  { %54 = vadd.xlane.f32.xlu1 %v53_v19 }
  0x17   :  { %75 = vadd.xlane.f32.xlu0 %v74_v22 }
  0x18   :  { %78 = vadd.xlane.f32.xlu1 %v77_v23 }
  0x1b   :  { %57 = vadd.xlane.f32.xlu0 %v56_v26 }
  0x1c   :  { %60 = vadd.xlane.f32.xlu1 %v59_v27 }
  0x1f   :  { %81 = vadd.xlane.f32.xlu0 %v80_v30 }
  0x20   :  { %84 = vadd.xlane.f32.xlu1 %v83_v31 }
  0x8c   :  { %v40_v32 = vpop.xlane.xlu0 %39 }
  0x8d   :  { %v64_v33 = vpop.xlane.xlu1 %63  ;;  %v87_v34 = vmul.f32 0.03125, %v40_v32 }
  0x8e   :  { %v95_v35 = vmul.f32 0.03125, %v64_v33 }
  0x8f   :  { %v767_v36 = vsub.f32 %v21_v0, %v87_v34 }
  0x90   :  { %v769_v37 = vsub.f32 %v29_v1, %v95_v35  ;;  %v43_v38 = vpop.xlane.xlu0 %42 }
  0x91   :  { %v67_v39 = vpop.xlane.xlu1 %66  ;;  %v88_v40 = vmul.f32 0.03125, %v43_v38  ;;  %v119_v42 = vmul.f32 %v767_v36, %v767_v36 }
  0x92   :  { %v96_v41 = vmul.f32 0.03125, %v67_v39  ;;  %v127_v43 = vmul.f32 %v769_v37, %v769_v37 }
  0x93   :  { %v775_v44 = vsub.f32 %v22_v2, %v88_v40  ;;  %v135_v46 = vsel %vm37_vm0, %v119_v42, 0.0 }
  0x94   :  { %v777_v45 = vsub.f32 %v30_v5, %v96_v41  ;;  %136 = vadd.xlane.f32.xlu0 %v135_v46  ;;  %v46_v47 = vpop.xlane.xlu0 %45  ;;  %v159_v49 = vsel %vm37_vm0, %v127_v43, 0.0 }
  0x95   :  { %v49_v48 = vpop.xlane.xlu1 %48  ;;  %v89_v50 = vmul.f32 0.03125, %v46_v47  ;;  %v120_v52 = vmul.f32 %v775_v44, %v775_v44 }
  0x96   :  { %v90_v51 = vmul.f32 0.03125, %v49_v48  ;;  %v128_v53 = vmul.f32 %v777_v45, %v777_v45 }
  0x97   :  { %v785_v54 = vsub.f32 %v23_v8, %v89_v50  ;;  %v138_v56 = vsel %vm37_vm0, %v120_v52, 0.0 }
  0x98   :  { %v787_v55 = vsub.f32 %v24_v9, %v90_v51  ;;  %160 = vadd.xlane.f32.xlu0 %v159_v49  ;;  %139 = vadd.xlane.f32.xlu1 %v138_v56  ;;  %v70_v57 = vpop.xlane.xlu0 %69  ;;  %v162_v59 = vsel %vm37_vm0, %v128_v53, 0.0  ;;  %v610_v53 = vld [vmem:[%s1015_s3] sm:$0xff]  }
  0x99   :  { %v73_v58 = vpop.xlane.xlu1 %72  ;;  %v97_v60 = vmul.f32 0.03125, %v70_v57  ;;  %v121_v62 = vmul.f32 %v785_v54, %v785_v54 }
  0x9a   :  { %v98_v61 = vmul.f32 0.03125, %v73_v58  ;;  %v122_v63 = vmul.f32 %v787_v55, %v787_v55 }
  0x9b   :  { %v796_v0 = vsub.f32 %v700_v12, %v97_v60  ;;  %v141_v2 = vsel %vm37_vm0, %v121_v62, 0.0 }
  0x9c   :  { %v799_v1 = vsub.f32 %v705_v13, %v98_v61  ;;  %163 = vadd.xlane.f32.xlu1 %v162_v59  ;;  %142 = vadd.xlane.f32.xlu0 %v141_v2  ;;  %v52_v3 = vpop.xlane.xlu0 %51  ;;  %v144_v5 = vsel %vm37_vm0, %v122_v63, 0.0 }
  0x9d   :  { %v55_v4 = vpop.xlane.xlu1 %54  ;;  %v91_v6 = vmul.f32 0.03125, %v52_v3  ;;  %v129_v8 = vmul.f32 %v796_v0, %v796_v0 }
  0x9e   :  { %v92_v7 = vmul.f32 0.03125, %v55_v4  ;;  %v130_v9 = vmul.f32 %v799_v1, %v799_v1 }
  0x9f   :  { %v808_v10 = vsub.f32 %v714_v16, %v91_v6  ;;  %v165_v12 = vsel %vm37_vm0, %v129_v8, 0.0 }
  0xa0   :  { %v811_v11 = vsub.f32 %v719_v17, %v92_v7  ;;  %145 = vadd.xlane.f32.xlu1 %v144_v5  ;;  %166 = vadd.xlane.f32.xlu0 %v165_v12  ;;  %v76_v13 = vpop.xlane.xlu0 %75  ;;  %v168_v15 = vsel %vm37_vm0, %v130_v9, 0.0 }
  0xa1   :  { %v79_v14 = vpop.xlane.xlu1 %78  ;;  %v99_v18 = vmul.f32 0.03125, %v76_v13  ;;  %v123_v22 = vmul.f32 %v808_v10, %v808_v10 }
  0xa2   :  { %v100_v19 = vmul.f32 0.03125, %v79_v14  ;;  %v124_v16 = vmul.f32 %v811_v11, %v811_v11 }
  0xa3   :  { %v820_v23 = vsub.f32 %v728_v20, %v99_v18  ;;  %v147_v26 = vsel %vm37_vm0, %v123_v22, 0.0 }
  0xa4   :  { %v823_v17 = vsub.f32 %v733_v21, %v100_v19  ;;  %169 = vadd.xlane.f32.xlu1 %v168_v15  ;;  %148 = vadd.xlane.f32.xlu0 %v147_v26  ;;  %v58_v27 = vpop.xlane.xlu0 %57  ;;  %v150_v31 = vsel %vm37_vm0, %v124_v16, 0.0 }
  0xa5   :  { %v61_v30 = vpop.xlane.xlu1 %60  ;;  %v93_v32 = vmul.f32 0.03125, %v58_v27  ;;  %v131_v34 = vmul.f32 %v820_v23, %v820_v23 }
  0xa6   :  { %v94_v33 = vmul.f32 0.03125, %v61_v30  ;;  %v132_v20 = vmul.f32 %v823_v17, %v823_v17 }
  0xa7   :  { %v832_v35 = vsub.f32 %v742_v24, %v93_v32  ;;  %v171_v38 = vsel %vm37_vm0, %v131_v34, 0.0 }
  0xa8   :  { %v835_v21 = vsub.f32 %v747_v25, %v94_v33  ;;  %151 = vadd.xlane.f32.xlu1 %v150_v31  ;;  %172 = vadd.xlane.f32.xlu0 %v171_v38  ;;  %v82_v39 = vpop.xlane.xlu0 %81  ;;  %v174_v41 = vsel %vm37_vm0, %v132_v20, 0.0  ;;  %v867_v33 = vld [vmem:[%s1016_s1] ss:$0 sm:$0xff] }
  0xa9   :  { %v85_v40 = vpop.xlane.xlu1 %84  ;;  %v101_v42 = vmul.f32 0.03125, %v82_v39  ;;  %v125_v46 = vmul.f32 %v832_v35, %v832_v35 }
  0xaa   :  { %v102_v43 = vmul.f32 0.03125, %v85_v40  ;;  %v126_v24 = vmul.f32 %v835_v21, %v835_v21 }
  0xab   :  { %v844_v47 = vsub.f32 %v756_v28, %v101_v42  ;;  %v153_v48 = vsel %vm37_vm0, %v125_v46, 0.0 }
  0xac   :  { %v847_v25 = vsub.f32 %v761_v29, %v102_v43  ;;  %175 = vadd.xlane.f32.xlu1 %v174_v41  ;;  %154 = vadd.xlane.f32.xlu0 %v153_v48  ;;  %v156_v49 = vsel %vm37_vm0, %v126_v24, 0.0  ;;  %v609_v29 = vld [vmem:[%s1015_s3 + $0x8] sm:$0xff]  }
  0xad   :  { %v133_v50 = vmul.f32 %v844_v47, %v844_v47  ;;  %585 = vmatprep.subr.bf16.mxu0 %v609_v29  ;;  %605 = vmatprep.subr.bf16.mxu1 %v609_v29 }
  0xae   :  { %v134_v51 = vmul.f32 %v847_v25, %v847_v25  ;;  %586 = vmatpush3.bf16.msra.mxu0 %v609_v29  ;;  %607 = vmatpush3.bf16.msra.mxu1 %v609_v29 }
  0xaf   :  { %v177_v52 = vsel %vm37_vm0, %v133_v50, 0.0  ;;  %587 = vmatprep.subr.bf16.mxu0 %v610_v53  ;;  %606 = vmatprep.subr.bf16.mxu1 %v610_v53 }
  0xb0   :  { %157 = vadd.xlane.f32.xlu1 %v156_v49  ;;  %178 = vadd.xlane.f32.xlu0 %v177_v52  ;;  %v180_v28 = vsel %vm37_vm0, %v134_v51, 0.0 }
  0xb2   :  { %588 = vmatpush3.bf16.msra.mxu0 %v610_v53  ;;  %608 = vmatpush3.bf16.msra.mxu1 %v610_v53 }
  0xb4   :  { %181 = vadd.xlane.f32.xlu1 %v180_v28 }
 0x11d   :  { %v137_v56 = vpop.xlane.xlu0 %136 }
 0x11e   :  { %v183_v57 = vmul.f32 0.03125, %v137_v56 }
 0x120   :  { %v199_v58 = vadd.f32 1e-05, %v183_v57 }
 0x121   :  { %v140_v59 = vpop.xlane.xlu1 %139  ;;  %v161_v60 = vpop.xlane.xlu0 %160 }
 0x122   :  { %611 = vrsqrt.f32 %v199_v58  ;;  %v184_v61 = vmul.f32 0.03125, %v140_v59  ;;  %v191_v62 = vmul.f32 0.03125, %v161_v60 }
 0x124   :  { %v200_v63 = vadd.f32 1e-05, %v184_v61  ;;  %v207_v2 = vadd.f32 1e-05, %v191_v62 }
 0x125   :  { %v164_v3 = vpop.xlane.xlu1 %163  ;;  %v143_v4 = vpop.xlane.xlu0 %142 }
 0x126   :  { %613 = vrsqrt.f32 %v200_v63  ;;  %v192_v5 = vmul.f32 0.03125, %v164_v3  ;;  %v185_v6 = vmul.f32 0.03125, %v143_v4 }
 0x127   :  { %615 = vrsqrt.f32 %v207_v2 }
 0x128   :  { %v208_v7 = vadd.f32 1e-05, %v192_v5  ;;  %v201_v8 = vadd.f32 1e-05, %v185_v6 }
 0x129   :  { %v146_v9 = vpop.xlane.xlu1 %145  ;;  %v167_v12 = vpop.xlane.xlu0 %166 }
 0x12a   :  { %617 = vrsqrt.f32 %v208_v7  ;;  %v186_v13 = vmul.f32 0.03125, %v146_v9  ;;  %v193_v14 = vmul.f32 0.03125, %v167_v12 }
 0x12b   :  { %619 = vrsqrt.f32 %v201_v8 }
 0x12c   :  { %v202_v15 = vadd.f32 1e-05, %v186_v13  ;;  %v209_v18 = vadd.f32 1e-05, %v193_v14 }
 0x12d   :  { %v170_v19 = vpop.xlane.xlu1 %169  ;;  %v149_v22 = vpop.xlane.xlu0 %148 }
 0x12e   :  { %621 = vrsqrt.f32 %v202_v15  ;;  %v194_v16 = vmul.f32 0.03125, %v170_v19  ;;  %v187_v26 = vmul.f32 0.03125, %v149_v22 }
 0x12f   :  { %v612_v27 = vpop.eup %611  ;;  %623 = vrsqrt.f32 %v209_v18 }
 0x130   :  { %v210_v30 = vadd.f32 1e-05, %v194_v16  ;;  %v203_v31 = vadd.f32 1e-05, %v187_v26  ;;  %v231_v32 = vmul.f32 %v612_v27, %v767_v36  ;;  %v874_v36 = vld [vmem:[%s1017_s2] ss:$0 sm:$0xff] }
 0x131   :  { %v152_v34 = vpop.xlane.xlu1 %151  ;;  %v173_v20 = vpop.xlane.xlu0 %172 }
 0x132   :  { %625 = vrsqrt.f32 %v210_v30  ;;  %v188_v38 = vmul.f32 0.03125, %v152_v34  ;;  %v195_v39 = vmul.f32 0.03125, %v173_v20  ;;  %v254_v41 = vmul.f32 %v867_v33, %v231_v32 }
 0x133   :  { %v614_v40 = vpop.eup %613  ;;  %627 = vrsqrt.f32 %v203_v31 }
 0x134   :  { %v616_v42 = vpop.eup %615  ;;  %v204_v43 = vadd.f32 1e-05, %v188_v38  ;;  %v211_v46 = vadd.f32 1e-05, %v195_v39  ;;  %v232_v24 = vmul.f32 %v614_v40, %v775_v44  ;;  %v277_v53 = vadd.f32 %v874_v36, %v254_v41 }
 0x135   :  { %v176_v48 = vpop.xlane.xlu1 %175  ;;  %v155_v49 = vpop.xlane.xlu0 %154  ;;  %v239_v50 = vmul.f32 %v616_v42, %v769_v37 }
 0x136   :  { %629 = vrsqrt.f32 %v204_v43  ;;  %v196_v51 = vmul.f32 0.03125, %v176_v48  ;;  %v189_v52 = vmul.f32 0.03125, %v155_v49  ;;  %v255_v28 = vmul.f32 %v867_v33, %v232_v24 }
 0x137   :  { %v618_v29 = vpop.eup %617  ;;  %631 = vrsqrt.f32 %v211_v46  ;;  %v262_v37 = vmul.f32 %v867_v33, %v239_v50 }
 0x138   :  { %v620_v56 = vpop.eup %619  ;;  %v212_v44 = vadd.f32 1e-05, %v196_v51  ;;  %v205_v57 = vadd.f32 1e-05, %v189_v52  ;;  %v278_v58 = vadd.f32 %v874_v36, %v255_v28  ;;  %v240_v59 = vmul.f32 %v618_v29, %v777_v45 }
 0x139   :  { %v158_v60 = vpop.xlane.xlu1 %157  ;;  %v179_v61 = vpop.xlane.xlu0 %178  ;;  %v233_v62 = vmul.f32 %v620_v56, %v785_v54  ;;  %v285_v54 = vadd.f32 %v874_v36, %v262_v37 }
 0x13a   :  { %633 = vrsqrt.f32 %v212_v44  ;;  %v190_v63 = vmul.f32 0.03125, %v158_v60  ;;  %v197_v2 = vmul.f32 0.03125, %v179_v61  ;;  %v293_v3 = vpack.c.bf16 %v278_v58, %v277_v53 }
 0x13b   :  { %v622_v4 = vpop.eup %621  ;;  %635 = vrsqrt.f32 %v205_v57  ;;  %v263_v5 = vmul.f32 %v867_v33, %v240_v59  ;;  %v256_v6 = vmul.f32 %v867_v33, %v233_v62 }
 0x13c   :  { %v624_v7 = vpop.eup %623  ;;  %v206_v8 = vadd.f32 1e-05, %v190_v63  ;;  %v213_v9 = vadd.f32 1e-05, %v197_v2  ;;  %589 = vmatprep.mubr.msk.bf16.mxu0 %vm37_vm0, %v293_v3  ;;  %v234_v45 = vmul.f32 %v622_v4, %v787_v55  ;;  %v932_v4 = vld [vmem:[%s1018_s4] ss:$0 sm:$0xff] }
 0x13d   :  { %v182_v12 = vpop.xlane.xlu1 %181  ;;  %v286_v13 = vadd.f32 %v874_v36, %v263_v5  ;;  %v241_v14 = vmul.f32 %v624_v7, %v796_v0  ;;  %v279_v16 = vadd.f32 %v874_v36, %v256_v6 }
 0x13e   :  { %637 = vrsqrt.f32 %v206_v8  ;;  %v198_v15 = vmul.f32 0.03125, %v182_v12  ;;  %v257_v18 = vmul.f32 %v867_v33, %v234_v45 }
 0x13f   :  { %v626_v19 = vpop.eup %625  ;;  %639 = vrsqrt.f32 %v213_v9  ;;  %v297_v22 = vpack.c.bf16 %v286_v13, %v285_v54  ;;  %v264_v31 = vmul.f32 %v867_v33, %v241_v14 }
 0x140   :  { %v628_v26 = vpop.eup %627  ;;  %v214_v27 = vadd.f32 1e-05, %v198_v15  ;;  %v280_v55 = vadd.f32 %v874_v36, %v257_v18  ;;  %v242_v30 = vmul.f32 %v626_v19, %v799_v1 }
 0x141   :  { %597 = vmatprep.mubr.msk.bf16.mxu1 %vm37_vm0, %v297_v22  ;;  %v235_v0 = vmul.f32 %v628_v26, %v808_v10  ;;  %v287_v39 = vadd.f32 %v874_v36, %v264_v31 }
 0x142   :  { %641 = vrsqrt.f32 %v214_v27  ;;  %v294_v32 = vpack.c.bf16 %v280_v55, %v279_v16  ;;  %v265_v34 = vmul.f32 %v867_v33, %v242_v30 }
 0x143   :  { %v630_v20 = vpop.eup %629  ;;  %v258_v41 = vmul.f32 %v867_v33, %v235_v0 }
 0x144   :  { %v632_v38 = vpop.eup %631  ;;  %590 = vmatmul.mubr.msk.bf16.vlgmr.msra.gmra.mxu0 %vm37_vm0, %v294_v32  ;;  %v288_v40 = vadd.f32 %v874_v36, %v265_v34  ;;  %v236_v1 = vmul.f32 %v630_v20, %v811_v11 }
 0x145   :  { %v243_v42 = vmul.f32 %v632_v38, %v820_v23  ;;  %v281_v48 = vadd.f32 %v874_v36, %v258_v41 }
 0x146   :  { %v298_v43 = vpack.c.bf16 %v288_v40, %v287_v39  ;;  %v259_v10 = vmul.f32 %v867_v33, %v236_v1 }
 0x147   :  { %v634_v46 = vpop.eup %633  ;;  %v266_v51 = vmul.f32 %v867_v33, %v243_v42 }
 0x148   :  { %v636_v24 = vpop.eup %635  ;;  %598 = vmatmul.mubr.msk.bf16.vlgmr.msra.gmra.mxu1 %vm37_vm0, %v298_v43  ;;  %v282_v49 = vadd.f32 %v874_v36, %v259_v10  ;;  %v244_v50 = vmul.f32 %v634_v46, %v823_v17 }
 0x149   :  { %v237_v11 = vmul.f32 %v636_v24, %v832_v35  ;;  %v289_v53 = vadd.f32 %v874_v36, %v266_v51 }
 0x14a   :  { %v295_v52 = vpack.c.bf16 %v282_v49, %v281_v48  ;;  %v267_v23 = vmul.f32 %v867_v33, %v244_v50 }
 0x14b   :  { %v638_v28 = vpop.eup %637  ;;  %v260_v57 = vmul.f32 %v867_v33, %v237_v11 }
 0x14c   :  { %v640_v29 = vpop.eup %639  ;;  %593 = vmatprep.mubr.msk.bf16.mxu0 %vm37_vm0, %v295_v52  ;;  %v290_v56 = vadd.f32 %v874_v36, %v267_v23  ;;  %v238_v44 = vmul.f32 %v638_v28, %v835_v21 }
 0x14d   :  { %v245_v17 = vmul.f32 %v640_v29, %v844_v47  ;;  %v283_v60 = vadd.f32 %v874_v36, %v260_v57 }
 0x14e   :  { %v299_v58 = vpack.c.bf16 %v290_v56, %v289_v53  ;;  %v261_v35 = vmul.f32 %v867_v33, %v238_v44 }
 0x14f   :  { %v642_v59 = vpop.eup %641  ;;  %v268_v62 = vmul.f32 %v867_v33, %v245_v17 }
 0x150   :  { %601 = vmatprep.mubr.msk.bf16.mxu1 %vm37_vm0, %v299_v58  ;;  %v284_v61 = vadd.f32 %v874_v36, %v261_v35  ;;  %v246_v37 = vmul.f32 %v642_v59, %v847_v25 }
 0x151   :  { %v291_v47 = vadd.f32 %v874_v36, %v268_v62 }
 0x152   :  { %v296_v63 = vpack.c.bf16 %v284_v61, %v283_v60  ;;  %v269_v21 = vmul.f32 %v867_v33, %v246_v37 }
 0x154   :  { %594 = vmatmul.mubr.msk.bf16.gmra.mxu0 %vm37_vm0, %v296_v63  ;;  %v292_v2 = vadd.f32 %v874_v36, %v269_v21 }
 0x156   :  { %v300_v3 = vpack.c.bf16 %v292_v2, %v291_v47 }
 0x158   :  { %602 = vmatmul.mubr.msk.bf16.gmra.mxu1 %vm37_vm0, %v300_v3 }
 0x204   :  { %v591_v25 = vpop.f32.mrf.mxu0 }
 0x205   :  { %v391_v5 = vadd.f32 %v591_v25, %v932_v4 }
 0x206   :  { %v382_v6 = vpop.f32.mrf.mxu0 }
 0x207   :  { %v561_v33 = vpack.c.bf16 %v391_v5, %v391_v5  ;;  %v383_v7 = vadd.f32 %v932_v4, %v382_v6 }
 0x208   :  { %v592_v8 = vpop.f32.mrf.mxu0  ;;  %v599_v9 = vpop.f32.mrf.mxu1 }
 0x209   :  { %512 = vst.msk [vmem:[%s1019_s5 + $0x8] sm:$0xf] %vm509_vm1, %v561_v33  ;;  %v559_v36 = vpack.c.bf16 %v383_v7, %v383_v7  ;;  %v394_v45 = vadd.f32 %v592_v8, %v932_v4  ;;  %v423_v12 = vadd.f32 %v599_v9, %v932_v4 }
 0x20a   :  { %v385_v54 = vpop.f32.mrf.mxu0  ;;  %v414_v13 = vpop.f32.mrf.mxu1 }
 0x20b   :  { %510 = vst.msk [vmem:[%s1019_s5] sm:$0xf] %vm509_vm1, %v559_v36  ;;  %v562_v14 = vpack.c.bf16 %v394_v45, %v394_v45  ;;  %v569_v15 = vpack.c.bf16 %v423_v12, %v423_v12  ;;  %v386_v18 = vadd.f32 %v932_v4, %v385_v54  ;;  %v415_v19 = vadd.f32 %v932_v4, %v414_v13 }
 0x20c   :  { %v600_v22 = vpop.f32.mrf.mxu1 }
 0x20d   :  { %513 = vst.msk [vmem:[%s1019_s5 + $0xc] sm:$0xf] %vm509_vm1, %v562_v14  ;;  %520 = vst.msk [vmem:[%s1019_s5 + $0x28] sm:$0xf] %vm509_vm1, %v569_v15  ;;  %v560_v16 = vpack.c.bf16 %v386_v18, %v386_v18  ;;  %v567_v26 = vpack.c.bf16 %v415_v19, %v415_v19  ;;  %v426_v27 = vadd.f32 %v600_v22, %v932_v4 }
 0x20e   :  { %v417_v55 = vpop.f32.mrf.mxu1 }
 0x20f   :  { %511 = vst.msk [vmem:[%s1019_s5 + $0x4] sm:$0xf] %vm509_vm1, %v560_v16  ;;  %518 = vst.msk [vmem:[%s1019_s5 + $0x20] sm:$0xf] %vm509_vm1, %v567_v26  ;;  %v570_v30 = vpack.c.bf16 %v426_v27, %v426_v27  ;;  %v418_v31 = vadd.f32 %v932_v4, %v417_v55 }
 0x211   :  { %521 = vst.msk [vmem:[%s1019_s5 + $0x2c] sm:$0xf] %vm509_vm1, %v570_v30  ;;  %v568_v0 = vpack.c.bf16 %v418_v31, %v418_v31 }
 0x213   :  { %519 = vst.msk [vmem:[%s1019_s5 + $0x24] sm:$0xf] %vm509_vm1, %v568_v0 }
 0x214   :  { %v595_v32 = vpop.f32.mrf.mxu0 }
 0x215   :  { %v407_v34 = vadd.f32 %v595_v32, %v932_v4 }
 0x216   :  { %v398_v20 = vpop.f32.mrf.mxu0 }
 0x217   :  { %v565_v38 = vpack.c.bf16 %v407_v34, %v407_v34  ;;  %v399_v39 = vadd.f32 %v932_v4, %v398_v20 }
 0x218   :  { %v596_v40 = vpop.f32.mrf.mxu0  ;;  %v603_v1 = vpop.f32.mrf.mxu1 }
 0x219   :  { %516 = vst.msk [vmem:[%s1019_s5 + $0x18] sm:$0xf] %vm509_vm1, %v565_v38  ;;  %v563_v41 = vpack.c.bf16 %v399_v39, %v399_v39  ;;  %v410_v42 = vadd.f32 %v596_v40, %v932_v4  ;;  %v439_v43 = vadd.f32 %v603_v1, %v932_v4 }
 0x21a   :  { %v401_v10 = vpop.f32.mrf.mxu0  ;;  %v430_v46 = vpop.f32.mrf.mxu1 }
 0x21b   :  { %514 = vst.msk [vmem:[%s1019_s5 + $0x10] sm:$0xf] %vm509_vm1, %v563_v41  ;;  %v566_v24 = vpack.c.bf16 %v410_v42, %v410_v42  ;;  %v573_v48 = vpack.c.bf16 %v439_v43, %v439_v43  ;;  %v402_v49 = vadd.f32 %v932_v4, %v401_v10  ;;  %v431_v50 = vadd.f32 %v932_v4, %v430_v46 }
 0x21c   :  { %v604_v51 = vpop.f32.mrf.mxu1 }
 0x21d   :  { %517 = vst.msk [vmem:[%s1019_s5 + $0x1c] sm:$0xf] %vm509_vm1, %v566_v24  ;;  %524 = vst.msk [vmem:[%s1019_s5 + $0x38] sm:$0xf] %vm509_vm1, %v573_v48  ;;  %v564_v11 = vpack.c.bf16 %v402_v49, %v402_v49  ;;  %v571_v52 = vpack.c.bf16 %v431_v50, %v431_v50  ;;  %v442_v23 = vadd.f32 %v604_v51, %v932_v4 }
 0x21e   :  { %v433_v28 = vpop.f32.mrf.mxu1 }
 0x21f   :  { %515 = vst.msk [vmem:[%s1019_s5 + $0x14] sm:$0xf] %vm509_vm1, %v564_v11  ;;  %522 = vst.msk [vmem:[%s1019_s5 + $0x30] sm:$0xf] %vm509_vm1, %v571_v52  ;;  %v574_v29 = vpack.c.bf16 %v442_v23, %v442_v23  ;;  %v434_v53 = vadd.f32 %v932_v4, %v433_v28 }
 0x221   :  { %525 = vst.msk [vmem:[%s1019_s5 + $0x3c] sm:$0xf] %vm509_vm1, %v574_v29  ;;  %v572_v56 = vpack.c.bf16 %v434_v53, %v434_v53 }
 0x223   :  { %523 = vst.msk [vmem:[%s1019_s5 + $0x34] sm:$0xf] %vm509_vm1, %v572_v56 }

// kernel: _lambda_.7
= control target key start
LH: loop header
LB: loop body
LE: loop exit
PB: predicated region body
PF: predicated region fallthrough
CT: control target
= control target key end

     0   :  { %s1275_s15 = smov 0   ;;  %s1277_s16 = smov 0   ;;  %s1436_s0 = inlined_call_operand.vmem [shape: bf16[2,4,16,96], index: 0, kind: input, shape index: {}]   ;;  %s1437_s1 = inlined_call_operand.vmem [shape: f32[4,16,16], index: 1, kind: input, shape index: {}]   ;;  %s1438_s2 = inlined_call_operand.vmem [shape: bf16[32,32], index: 2, kind: input, shape index: {}]   ;;  %s1439_s3 = inlined_call_operand.vmem [shape: f32[1,32], index: 3, kind: input, shape index: {}]   ;;  %s1440_s4 = inlined_call_operand.vmem [shape: bf16[2,4,16,32], index: 4, kind: output, shape index: {}]  }
   0x1   :  { %s1279_s17 = smov 0   ;;  %s1281_s18 = smov 0  }
   0x2   :  { %s1283_s19 = smov 0  }
   0x3 LB: > { %s23_s20 = sadd.s32 1, %s1224_s17  ;;  %s26_s21 = sadd.s32 1, %s1228_s18  ;;  %s1232_s19 = sphi %s1283_s19, %s14_s19   ;;  %s1228_s18 = sphi %s1281_s18, %s1444_s18   ;;  %s1224_s17 = sphi %s1279_s17, %s1443_s17   ;;  %s1220_s16 = sphi %s1277_s16, %s1442_s16   ;;  %s1216_s15 = sphi %s1275_s15, %s1441_s15  }
   0x4   : > { %p24_p0 = scmp.ge.s32.totalorder %s23_s20, 4  ;;  %p978_p1 = scmp.ge.s32.totalorder %s1232_s19, 1 }
   0x5   : > { %p182_p2 = scmp.lt.s32.totalorder %s1232_s19, 9 }
   0x6   : > { %s1446_s20 = smov (%p24_p0, %s23_s20), 0  ;;  %s1448_s21 = smov (!%p24_p0, %s26_s21), %s1228_s18 }
   0x7   : > { %p183_p3 = pnand %p978_p1, %p182_p2  ;;  %p28_p4 = scmp.ge.s32.totalorder %s1448_s21, 2 }
   0x8   : > { %p216_p5 = scmp.lt.s32.totalorder (!%p183_p3), %s1220_s16, 1  ;;  %p218_p6 = scmp.lt.s32.totalorder (!%p183_p3), %s1216_s15, 3 }
   0x9   : > { %s1450_s21 = smov (%p28_p4, %s1448_s21), 0  ;;  %186 = sbr.rel (%p183_p3) target bundleno = 1717 (0x6b5), region = 36 }
   0xa   : > { %s1236_s29 = smov (!%p183_p3), 96   ;;  %s1237_s8 = smov (!%p183_p3), 64  }
   0xb   : > { %s1238_s9 = smov (!%p183_p3), 80   ;;  %s1239_s10 = smov (!%p183_p3), 88  }
   0xc   : > { %s1240_s11 = smov (!%p183_p3), 120   ;;  %s1241_s12 = smov (!%p183_p3), 112  }
   0xd   : > { %s1242_s13 = smov (!%p183_p3), 72   ;;  %s1243_s14 = smov (!%p183_p3), 104  }
   0xe   : > { %v1234_v0 = vmov 0.0   ;;  %vm1235_vm0 = vmmov 0   ;;  %s1452_s16 = smov (!%p216_p5, %s1220_s16), 1  ;;  %s1454_s15 = smov (!%p218_p6, %s1216_s15), 3  ;;  %vm246_vm1 = vcmask 64512   ;;  %v237_v4 = vld [vmem:[%s1437_s1] sm:$0xff] }
   0xf   : > { %1046 = vmatprep.subr.bf16.mxu0 %v1234_v0  ;;  %1048 = vmatprep.mubr.msk.bf16.mxu0 %vm1235_vm0, %v1234_v0  ;;  %s980_s22 = sshll.u32 %s1452_s16, 3  ;;  %s979_s23 = sshll.u32 %s1454_s15, 1  ;;  %vm294_vm2 = vcmask 130048   ;;  %v238_v8 = vld [vmem:[%s1437_s1 + $0x8] sm:$0xff]  ;;  %vm373_vm3 = vcmask 60416   ;;  %v990_v47 = vld [vmem:[%s1437_s1 + $0x10] sm:$0xff] }
  0x10   : > { %1052 = vmatprep.subr.bf16.mxu1 %v1234_v0  ;;  %1054 = vmatprep.mubr.msk.bf16.mxu1 %vm1235_vm0, %v1234_v0  ;;  %s1311_s24 = sadd.s32 %s980_s22, %s979_s23  ;;  %v991_v51 = vld [vmem:[%s1437_s1 + $0x18] sm:$0xff]  ;;  %v996_v56 = vld [vmem:[%s1437_s1 + $0x20] sm:$0xff]  ;;  %v997_v61 = vld [vmem:[%s1437_s1 + $0x28] sm:$0xff]  ;;  %s1249_s22 = smov 24   ;;  %vm512_vm4 = vcmask 126016   ;;  %vm651_vm5 = vcmask 191616  }
  0x11   : > { %s981_s25 = sshll.u32 %s1311_s24, 2  ;;  %vm790_vm6 = vcmask 257216   ;;  %vm823_vm7 = vcmask 261120   ;;  %vm876_vm8 = vcmask 257024  }
  0x12   : > { %s224_s28 = scalar_lea.vmem %s1436_s0, %s981_s25 }
  0x13   : > { %v1319_v1 = vld [vmem:[%s224_s28] sm:$0xff]  }
  0x14   : > { %244 = vrot.lane.b32.xlu0 %v1319_v1, %s1236_s29  ;;  %s233_s29 = scalar_lea.vmem %s1440_s4, %s981_s25 }
  0x86   : > { %v245_v2 = vpop.permute.xlu0 %244 }
  0x87   : > { %v251_v3 = vsel %vm246_vm1, %v245_v2, 0 }
  0x88   : > { %1047 = vmatpush3.bf16.xpose.msra.mxu0 %v251_v3 }
  0x89   : > { %1064 = vmatprep.subr.bf16.mxu0 %v1234_v0 }
  0x8f   : > { %1049 = vmatmul.mubr.msk.bf16.vlgmr.msra.gmra.mxu0 %vm246_vm1, %v1319_v1 }
  0x90   : > { %1066 = vmatprep.mubr.msk.bf16.mxu0 %vm1235_vm0, %v1234_v0 }
 0x14f   : > { %v287_v5 = vpop.f32.mrf.mxu0 }
 0x150   : > { %v288_v6 = vadd.f32 %v287_v5, %v237_v4  ;;  %v1002_v4 = vld [vmem:[%s1437_s1 + $0x30] sm:$0xff] }
 0x151   : > { %v1050_v7 = vpop.f32.mrf.mxu0 }
 0x152   : > { %v295_v9 = vsel %vm294_vm2, %v288_v6, -inf }
 0x153   : > { %296 = vmax.xlane.f32.xlu0 %v295_v9  ;;  %v290_v10 = vpop.f32.mrf.mxu0  ;;  %v1003_v9 = vld [vmem:[%s1437_s1 + $0x38] sm:$0xff] }
 0x154   : > { %v291_v11 = vadd.f32 %v290_v10, %v238_v8 }
 0x155   : > { %v1051_v12 = vpop.f32.mrf.mxu0 }
 0x156   : > { %v298_v13 = vsel %vm294_vm2, %v291_v11, -inf }
 0x157   : > { %299 = vmax.xlane.f32.xlu1 %v298_v13 }
 0x168   : > { %318 = vrot.lane.b32.xlu1 %v1319_v1, %s1237_s8  ;;  %s1244_s8 = smov 56  }
 0x169   : > { %520 = vrot.lane.b32.xlu0 %v1319_v1, %s1238_s9  ;;  %s1245_s9 = smov 40  }
 0x1dc   : > { %v297_v14 = vpop.xlane.xlu0 %296 }
 0x1dd   : > { %v301_v15 = vsub.f32 %v288_v6, %v297_v14 }
 0x1df   : > { %v303_v16 = vmul.f32 1.442695, %v301_v15 }
 0x1e0   : > { %v300_v17 = vpop.xlane.xlu1 %299  ;;  %v521_v35 = vpop.permute.xlu0 %520 }
 0x1e1   : > { %1162 = vpow2.f32 %v303_v16  ;;  %v302_v18 = vsub.f32 %v291_v11, %v300_v17  ;;  %v526_v37 = vsel %vm246_vm1, %v521_v35, 0 }
 0x1e3   : > { %v305_v19 = vmul.f32 1.442695, %v302_v18 }
 0x1e4   : > { %v319_v20 = vpop.permute.xlu1 %318 }
 0x1e5   : > { %1164 = vpow2.f32 %v305_v19  ;;  %1053 = vmatpush3.bf16.msra.mxu1 %v319_v20 }
 0x1e6   : > { %1058 = vmatprep.subr.bf16.mxu1 %v1234_v0 }
 0x1ee   : > { %v1163_v21 = vpop.eup %1162 }
 0x1ef   : > { %v307_v22 = vsel %vm294_vm2, %v1163_v21, 0.0 }
 0x1f0   : > { %308 = vadd.xlane.f32.xlu1 %v307_v22 }
 0x1f2   : > { %v1165_v23 = vpop.eup %1164 }
 0x1f3   : > { %v310_v24 = vsel %vm294_vm2, %v1165_v23, 0.0 }
 0x1f4   : > { %311 = vadd.xlane.f32.xlu1 %v310_v24 }
 0x205   : > { %381 = vrot.lane.b32.xlu1 %v1319_v1, %s1239_s10  ;;  %s1246_s10 = smov 48  }
 0x209   : > { %379 = vrot.lane.b32.xlu1 %v1319_v1, %s1240_s11  ;;  %s1247_s11 = smov 8  }
 0x20d   : > { %518 = vrot.lane.b32.xlu1 %v1319_v1, %s1241_s12 }
 0x211   : > { %659 = vrot.lane.b32.xlu1 %v1319_v1, %s1242_s13 }
 0x215   : > { %657 = vrot.lane.b32.xlu1 %v1319_v1, %s1243_s14  ;;  %s1248_s14 = smov 16  }
 0x279   : > { %v309_v25 = vpop.xlane.xlu1 %308 }
 0x27a   : > { %1166 = vrcp.f32 %v309_v25 }
 0x27d   : > { %v312_v26 = vpop.xlane.xlu1 %311 }
 0x27e   : > { %1168 = vrcp.f32 %v312_v26 }
 0x281   : > { %v382_v29 = vpop.permute.xlu1 %381 }
 0x282   : > { %v387_v32 = vsel %vm246_vm1, %v382_v29, 0 }
 0x285   : > { %v380_v34 = vpop.permute.xlu1 %379 }
 0x287   : > { %v1167_v27 = vpop.eup %1166 }
 0x288   : > { %v315_v30 = vmul.f32 %v1167_v27, %v1163_v21 }
 0x289   : > { %v519_v36 = vpop.permute.xlu1 %518 }
 0x28b   : > { %v1169_v28 = vpop.eup %1168 }
 0x28c   : > { %v316_v31 = vmul.f32 %v1169_v28, %v1165_v23 }
 0x28d   : > { %v660_v38 = vpop.permute.xlu1 %659 }
 0x28e   : > { %v317_v33 = vpack.c.bf16 %v316_v31, %v315_v30  ;;  %v665_v39 = vsel %vm246_vm1, %v660_v38, 0 }
 0x290   : > { %1055 = vmatmul.mubr.msk.bf16.vlgmr.msra.gmra.mxu1 %vm294_vm2, %v317_v33 }
 0x291   : > { %1059 = vmatpush3.bf16.xpose.msra.mxu1 %v387_v32  ;;  %1060 = vmatprep.mubr.msk.bf16.mxu1 %vm1235_vm0, %v1234_v0  ;;  %v658_v40 = vpop.permute.xlu1 %657 }
 0x292   : > { %1070 = vmatprep.subr.bf16.mxu1 %v1234_v0 }
 0x298   : > { %1061 = vmatmul.mubr.msk.bf16.vlgmr.msra.gmra.mxu1 %vm246_vm1, %v380_v34 }
 0x299   : > { %1071 = vmatpush3.bf16.xpose.msra.mxu1 %v526_v37  ;;  %1072 = vmatprep.mubr.msk.bf16.mxu1 %vm1235_vm0, %v1234_v0 }
 0x29a   : > { %1082 = vmatprep.subr.bf16.mxu1 %v1234_v0 }
 0x2a0   : > { %1073 = vmatmul.mubr.msk.bf16.vlgmr.msra.gmra.mxu1 %vm246_vm1, %v519_v36 }
 0x2a1   : > { %1083 = vmatpush3.bf16.xpose.msra.mxu1 %v665_v39  ;;  %1084 = vmatprep.mubr.msk.bf16.mxu1 %vm1235_vm0, %v1234_v0 }
 0x2a2   : > { %1094 = vmatprep.subr.bf16.mxu1 %v1234_v0 }
 0x2a8   : > { %1085 = vmatmul.mubr.msk.bf16.vlgmr.msra.gmra.mxu1 %vm246_vm1, %v658_v40 }
 0x2a9   : > { %1098 = vmatprep.mubr.msk.bf16.mxu1 %vm1235_vm0, %v1234_v0 }
 0x350   : > { %v358_v41 = vpop.f32.mrf.mxu1 }
 0x351   : > { %v1017_v42 = vpack.c.bf16 %v358_v41, %v358_v41 }
 0x352   : > { %v1056_v43 = vpop.f32.mrf.mxu1 }
 0x353   : > { %374 = vst.msk [vmem:[#allocation2] sm:$0xf] %vm373_vm3, %v1017_v42 }
 0x354   : > { %v361_v44 = vpop.f32.mrf.mxu1 }
 0x355   : > { %v1018_v45 = vpack.c.bf16 %v361_v44, %v361_v44 }
 0x356   : > { %v1057_v46 = vpop.f32.mrf.mxu1 }
 0x357   : > { %375 = vst.msk [vmem:[#allocation2 + $0x4] sm:$0xf] %vm373_vm3, %v1018_v45 }
 0x358   : > { %v423_v48 = vpop.f32.mrf.mxu1 }
 0x359   : > { %v424_v49 = vadd.f32 %v990_v47, %v423_v48 }
 0x35a   : > { %v1062_v50 = vpop.f32.mrf.mxu1 }
 0x35b   : > { %v430_v52 = vsel %vm294_vm2, %v424_v49, -inf }
 0x35c   : > { %431 = vmax.xlane.f32.xlu1 %v430_v52  ;;  %v426_v53 = vpop.f32.mrf.mxu1 }
 0x35d   : > { %v427_v54 = vadd.f32 %v991_v51, %v426_v53 }
 0x35e   : > { %v1063_v55 = vpop.f32.mrf.mxu1 }
 0x35f   : > { %v433_v57 = vsel %vm294_vm2, %v427_v54, -inf }
 0x360   : > { %434 = vmax.xlane.f32.xlu0 %v433_v57  ;;  %v562_v58 = vpop.f32.mrf.mxu1 }
 0x361   : > { %v563_v59 = vadd.f32 %v996_v56, %v562_v58 }
 0x362   : > { %v1074_v60 = vpop.f32.mrf.mxu1 }
 0x363   : > { %v569_v62 = vsel %vm294_vm2, %v563_v59, -inf }
 0x364   : > { %570 = vmax.xlane.f32.xlu1 %v569_v62  ;;  %v565_v63 = vpop.f32.mrf.mxu1 }
 0x365   : > { %v566_v2 = vadd.f32 %v997_v61, %v565_v63 }
 0x366   : > { %v1075_v3 = vpop.f32.mrf.mxu1 }
 0x367   : > { %v572_v5 = vsel %vm294_vm2, %v566_v2, -inf }
 0x368   : > { %573 = vmax.xlane.f32.xlu0 %v572_v5  ;;  %v701_v6 = vpop.f32.mrf.mxu1 }
 0x369   : > { %v702_v7 = vadd.f32 %v1002_v4, %v701_v6 }
 0x36a   : > { %v1086_v8 = vpop.f32.mrf.mxu1 }
 0x36b   : > { %v708_v10 = vsel %vm294_vm2, %v702_v7, -inf }
 0x36c   : > { %709 = vmax.xlane.f32.xlu1 %v708_v10  ;;  %v704_v11 = vpop.f32.mrf.mxu1 }
 0x36d   : > { %v705_v12 = vadd.f32 %v1003_v9, %v704_v11 }
 0x36e   : > { %v1087_v13 = vpop.f32.mrf.mxu1 }
 0x36f   : > { %v711_v14 = vsel %vm294_vm2, %v705_v12, -inf }
 0x370   : > { %712 = vmax.xlane.f32.xlu0 %v711_v14 }
 0x37d   : > { %453 = vrot.lane.b32.xlu1 %v1319_v1, %s1244_s8 }
 0x3e5   : > { %v432_v15 = vpop.xlane.xlu1 %431 }
 0x3e6   : > { %v436_v16 = vsub.f32 %v424_v49, %v432_v15  ;;  %v1159_v15 = vld [vmem:[%s1438_s2 + $0x8] sm:$0xff]  }
 0x3e7   : > { %1095 = vmatpush3.bf16.msra.mxu1 %v1159_v15 }
 0x3e8   : > { %v438_v17 = vmul.f32 1.442695, %v436_v16  ;;  %1096 = vmatprep.subr.bf16.mxu1 %v1234_v0 }
 0x3e9   : > { %v435_v18 = vpop.xlane.xlu0 %434 }
 0x3ea   : > { %1170 = vpow2.f32 %v438_v17  ;;  %v437_v19 = vsub.f32 %v427_v54, %v435_v18  ;;  %v1160_v17 = vld [vmem:[%s1438_s2] sm:$0xff]  }
 0x3eb   : > { %1097 = vmatpush3.bf16.msra.mxu1 %v1160_v17 }
 0x3ec   : > { %v440_v20 = vmul.f32 1.442695, %v437_v19 }
 0x3ed   : > { %v571_v21 = vpop.xlane.xlu1 %570 }
 0x3ee   : > { %1172 = vpow2.f32 %v440_v20  ;;  %v575_v22 = vsub.f32 %v563_v59, %v571_v21 }
 0x3f0   : > { %v577_v23 = vmul.f32 1.442695, %v575_v22 }
 0x3f1   : > { %v574_v24 = vpop.xlane.xlu0 %573 }
 0x3f2   : > { %1174 = vpow2.f32 %v577_v23  ;;  %v576_v25 = vsub.f32 %v566_v2, %v574_v24 }
 0x3f4   : > { %v579_v26 = vmul.f32 1.442695, %v576_v25 }
 0x3f5   : > { %v710_v27 = vpop.xlane.xlu1 %709 }
 0x3f6   : > { %1176 = vpow2.f32 %v579_v26  ;;  %v714_v28 = vsub.f32 %v702_v7, %v710_v27 }
 0x3f7   : > { %v1171_v29 = vpop.eup %1170 }
 0x3f8   : > { %v716_v30 = vmul.f32 1.442695, %v714_v28  ;;  %v442_v31 = vsel %vm294_vm2, %v1171_v29, 0.0 }
 0x3f9   : > { %v713_v32 = vpop.xlane.xlu0 %712  ;;  %443 = vadd.xlane.f32.xlu1 %v442_v31  ;;  %v454_v33 = vpop.permute.xlu1 %453 }
 0x3fa   : > { %1178 = vpow2.f32 %v716_v30  ;;  %v715_v34 = vsub.f32 %v705_v12, %v713_v32  ;;  %1065 = vmatpush3.bf16.msra.mxu0 %v454_v33  ;;  %v1008_v32 = vld [vmem:[%s1439_s3] ss:$0 sm:$0xff] }
 0x3fb   : > { %v1173_v35 = vpop.eup %1172  ;;  %1076 = vmatprep.subr.bf16.mxu0 %v1234_v0 }
 0x3fc   : > { %v718_v36 = vmul.f32 1.442695, %v715_v34  ;;  %v445_v37 = vsel %vm294_vm2, %v1173_v35, 0.0 }
 0x3fd   : > { %446 = vadd.xlane.f32.xlu0 %v445_v37 }
 0x3fe   : > { %1180 = vpow2.f32 %v718_v36 }
 0x3ff   : > { %v1175_v38 = vpop.eup %1174 }
 0x400   : > { %v581_v39 = vsel %vm294_vm2, %v1175_v38, 0.0 }
 0x401   : > { %582 = vadd.xlane.f32.xlu1 %v581_v39 }
 0x403   : > { %v1177_v40 = vpop.eup %1176 }
 0x404   : > { %v584_v41 = vsel %vm294_vm2, %v1177_v40, 0.0 }
 0x405   : > { %585 = vadd.xlane.f32.xlu0 %v584_v41 }
 0x407   : > { %v1179_v42 = vpop.eup %1178 }
 0x408   : > { %v720_v43 = vsel %vm294_vm2, %v1179_v42, 0.0 }
 0x409   : > { %721 = vadd.xlane.f32.xlu1 %v720_v43 }
 0x40b   : > { %v1181_v44 = vpop.eup %1180 }
 0x40c   : > { %v723_v45 = vsel %vm294_vm2, %v1181_v44, 0.0 }
 0x40d   : > { %724 = vadd.xlane.f32.xlu0 %v723_v45 }
 0x41a   : > { %731 = vrot.lane.b32.xlu1 %v1319_v1, %s1245_s9 }
 0x423   : > { %592 = vrot.lane.b32.xlu0 %v1319_v1, %s1246_s10 }
 0x482   : > { %v444_v46 = vpop.xlane.xlu1 %443 }
 0x483   : > { %1182 = vrcp.f32 %v444_v46 }
 0x486   : > { %v447_v47 = vpop.xlane.xlu0 %446 }
 0x487   : > { %1184 = vrcp.f32 %v447_v47 }
 0x48a   : > { %v583_v48 = vpop.xlane.xlu1 %582 }
 0x48b   : > { %1186 = vrcp.f32 %v583_v48 }
 0x48e   : > { %v586_v49 = vpop.xlane.xlu0 %585 }
 0x48f   : > { %1188 = vrcp.f32 %v586_v49 }
 0x490   : > { %v1183_v50 = vpop.eup %1182 }
 0x491   : > { %v450_v53 = vmul.f32 %v1183_v50, %v1171_v29 }
 0x492   : > { %v722_v51 = vpop.xlane.xlu1 %721 }
 0x493   : > { %1190 = vrcp.f32 %v722_v51 }
 0x494   : > { %v1185_v52 = vpop.eup %1184 }
 0x495   : > { %v451_v54 = vmul.f32 %v1185_v52, %v1173_v35 }
 0x496   : > { %v725_v55 = vpop.xlane.xlu0 %724  ;;  %v732_v62 = vpop.permute.xlu1 %731 }
 0x497   : > { %1192 = vrcp.f32 %v725_v55  ;;  %v452_v56 = vpack.c.bf16 %v451_v54, %v450_v53 }
 0x498   : > { %v1187_v1 = vpop.eup %1186 }
 0x499   : > { %1067 = vmatmul.mubr.msk.bf16.vlgmr.msra.gmra.mxu0 %vm294_vm2, %v452_v56  ;;  %v589_v59 = vmul.f32 %v1187_v1, %v1175_v38 }
 0x49a   : > { %v593_v57 = vpop.permute.xlu0 %592  ;;  %1078 = vmatprep.mubr.msk.bf16.mxu0 %vm1235_vm0, %v1234_v0 }
 0x49b   : > { %1077 = vmatpush3.bf16.msra.mxu0 %v593_v57 }
 0x49c   : > { %v1189_v58 = vpop.eup %1188  ;;  %1088 = vmatprep.subr.bf16.mxu0 %v1234_v0 }
 0x49d   : > { %v590_v60 = vmul.f32 %v1189_v58, %v1177_v40 }
 0x49f   : > { %v591_v61 = vpack.c.bf16 %v590_v60, %v589_v59 }
 0x4a0   : > { %v1191_v63 = vpop.eup %1190 }
 0x4a1   : > { %1079 = vmatmul.mubr.msk.bf16.vlgmr.msra.gmra.mxu0 %vm294_vm2, %v591_v61  ;;  %v728_v3 = vmul.f32 %v1191_v63, %v1179_v42 }
 0x4a2   : > { %1089 = vmatpush3.bf16.msra.mxu0 %v732_v62  ;;  %1090 = vmatprep.mubr.msk.bf16.mxu0 %vm1235_vm0, %v1234_v0 }
 0x4a4   : > { %v1193_v2 = vpop.eup %1192 }
 0x4a5   : > { %v729_v4 = vmul.f32 %v1193_v2, %v1181_v44 }
 0x4a7   : > { %v730_v5 = vpack.c.bf16 %v729_v4, %v728_v3 }
 0x4a9   : > { %1091 = vmatmul.mubr.msk.bf16.vlgmr.msra.gmra.mxu0 %vm294_vm2, %v730_v5 }
 0x559   : > { %v493_v6 = vpop.f32.mrf.mxu0 }
 0x55a   : > { %v1019_v7 = vpack.c.bf16 %v493_v6, %v493_v6 }
 0x55b   : > { %v1068_v8 = vpop.f32.mrf.mxu0 }
 0x55c   : > { %506 = vrot.lane.b32.xlu1 %v1019_v7, %s1247_s11 }
 0x55d   : > { %v496_v9 = vpop.f32.mrf.mxu0 }
 0x55e   : > { %v1020_v10 = vpack.c.bf16 %v496_v9, %v496_v9 }
 0x55f   : > { %v1069_v11 = vpop.f32.mrf.mxu0 }
 0x560   : > { %508 = vrot.lane.b32.xlu0 %v1020_v10, %s1247_s11 }
 0x561   : > { %v632_v12 = vpop.f32.mrf.mxu0 }
 0x562   : > { %v1021_v13 = vpack.c.bf16 %v632_v12, %v632_v12 }
 0x563   : > { %v1080_v14 = vpop.f32.mrf.mxu0 }
 0x564   : > { %645 = vrot.lane.b32.xlu1 %v1021_v13, %s1248_s14 }
 0x565   : > { %v635_v16 = vpop.f32.mrf.mxu0 }
 0x566   : > { %v1022_v18 = vpack.c.bf16 %v635_v16, %v635_v16 }
 0x567   : > { %v1081_v19 = vpop.f32.mrf.mxu0 }
 0x568   : > { %647 = vrot.lane.b32.xlu0 %v1022_v18, %s1248_s14 }
 0x569   : > { %v771_v20 = vpop.f32.mrf.mxu0 }
 0x56a   : > { %v1023_v21 = vpack.c.bf16 %v771_v20, %v771_v20 }
 0x56b   : > { %v1092_v22 = vpop.f32.mrf.mxu0 }
 0x56c   : > { %784 = vrot.lane.b32.xlu1 %v1023_v21, %s1249_s22 }
 0x56d   : > { %v774_v23 = vpop.f32.mrf.mxu0 }
 0x56e   : > { %v1024_v24 = vpack.c.bf16 %v774_v23, %v774_v23 }
 0x56f   : > { %v1093_v25 = vpop.f32.mrf.mxu0 }
 0x570   : > { %786 = vrot.lane.b32.xlu0 %v1024_v24, %s1249_s22 }
 0x5ce   : > { %v507_v26 = vpop.permute.xlu1 %506 }
 0x5cf   : > { %513 = vst.msk [vmem:[#allocation2] sm:$0xf] %vm512_vm4, %v507_v26 }
 0x5d2   : > { %v509_v27 = vpop.permute.xlu0 %508 }
 0x5d3   : > { %514 = vst.msk [vmem:[#allocation2 + $0x4] sm:$0xf] %vm512_vm4, %v509_v27 }
 0x5d6   : > { %v646_v0 = vpop.permute.xlu1 %645 }
 0x5d7   : > { %652 = vst.msk [vmem:[#allocation2] sm:$0xf] %vm651_vm5, %v646_v0 }
 0x5da   : > { %v648_v28 = vpop.permute.xlu0 %647 }
 0x5db   : > { %653 = vst.msk [vmem:[#allocation2 + $0x4] sm:$0xf] %vm651_vm5, %v648_v28 }
 0x5de   : > { %v785_v29 = vpop.permute.xlu1 %784 }
 0x5df   : > { %791 = vst.msk [vmem:[#allocation2] sm:$0xf] %vm790_vm6, %v785_v29 }
 0x5e2   : > { %v787_v30 = vpop.permute.xlu0 %786 }
 0x5e3   : > { %792 = vst.msk [vmem:[#allocation2 + $0x4] sm:$0xf] %vm790_vm6, %v787_v30 }
 0x5ea   : > { %v1161_v31 = vld [vmem:[#allocation2] sm:$0xff]  }
 0x5eb   : > { %1099 = vmatmul.mubr.msk.bf16.vlgmr.msra.gmra.mxu1 %vm823_vm7, %v1161_v31 }
 0x6ab   : > { %v861_v33 = vpop.f32.mrf.mxu1 }
 0x6ac   : > { %v862_v34 = vadd.f32 %v1008_v32, %v861_v33 }
 0x6ad   : > { %v1100_v35 = vpop.f32.mrf.mxu1 }
 0x6ae   : > { %v1025_v36 = vpack.c.bf16 %v862_v34, %v862_v34 }
 0x6af   : > { %v864_v37 = vpop.f32.mrf.mxu1 }
 0x6b0   : > { %877 = vst.msk [vmem:[%s233_s29] sm:$0xf] %vm876_vm8, %v1025_v36  ;;  %v865_v38 = vadd.f32 %v1008_v32, %v864_v37 }
 0x6b1   : > { %v1101_v39 = vpop.f32.mrf.mxu1 }
 0x6b2   : > { %v1026_v40 = vpack.c.bf16 %v865_v38, %v865_v38 }
 0x6b4   : > { %878 = vst.msk [vmem:[%s233_s29 + $0x4] sm:$0xf] %vm876_vm8, %v1026_v40 }
 0x6b5 PF: > { %s14_s19 = sadd.s32 1, %s1232_s19   ;;  %s1441_s15 = smov %s1224_s17 }
 0x6b6   : > { %p11_p7 = scmp.ge.s32.totalorder %s14_s19, 10   ;;  %s1442_s16 = smov %s1228_s18 }
 0x6b7   : > { %s1443_s17 = smov %s1446_s20  ;;  %s1444_s18 = smov %s1450_s21 }
 0x6b8   :  { %13 = sbr.rel (!%p11_p7) target bundleno = 3 (0x3), region = 69 }

// kernel: _lambda_.8
= control target key start
LH: loop header
LB: loop body
LE: loop exit
PB: predicated region body
PF: predicated region fallthrough
CT: control target
= control target key end

     0   :  { %vm94_vm0 = vcmask 261120   ;;  %s1710_s0 = inlined_call_operand.vmem [shape: f32[128,32], index: 0, kind: input, shape index: {}]   ;;  %s1711_s1 = inlined_call_operand.vmem [shape: bf16[128,32], index: 1, kind: input, shape index: {}]   ;;  %s1712_s4 = inlined_call_operand.vmem [shape: bf16[32,128], index: 4, kind: input, shape index: {}]   ;;  %s1713_s2 = inlined_call_operand.vmem [shape: f32[1,32], index: 2, kind: input, shape index: {}]   ;;  %s1714_s3 = inlined_call_operand.vmem [shape: f32[1,32], index: 3, kind: input, shape index: {}, may-alias: {3,7}]   ;;  %s1715_s6 = inlined_call_operand.vmem [shape: bf16[128,32], index: 6, kind: input, shape index: {}]   ;;  %s1716_s5 = inlined_call_operand.vmem [shape: f32[1,128], index: 5, kind: input, shape index: {}]   ;;  %s1717_s7 = inlined_call_operand.vmem [shape: f32[1,32], index: 7, kind: input, shape index: {}, may-alias: {3,7}]   ;;  %s1718_s8 = inlined_call_operand.vmem [shape: f32[128,32], index: 8, kind: output, shape index: {}]  }
   0x1   :  { %v30_v0 = vld [vmem:[%s1710_s0] sm:$0xff]  ;;  %v32_v2 = vld [vmem:[%s1710_s0 + $0x10] sm:$0xff]  ;;  %v928_v4 = vld [vmem:[%s1711_s1 + $0x8] sm:$0xff]  }
   0x2   :  { %v897_v1 = vld [vmem:[%s1711_s1] sm:$0xff]   ;;  %v31_v5 = vld [vmem:[%s1710_s0 + $0x8] sm:$0xff]  ;;  %v33_v7 = vld [vmem:[%s1710_s0 + $0x18] sm:$0xff]  ;;  %v902_v8 = vunpack.c.l.bf16 %v928_v4  ;;  %v903_v9 = vunpack.c.h.bf16 %v928_v4 }
   0x3   :  { %v898_v3 = vunpack.c.l.bf16 %v897_v1  ;;  %v899_v6 = vunpack.c.h.bf16 %v897_v1  ;;  %v929_v10 = vld [vmem:[%s1711_s1 + $0x10] sm:$0xff]   ;;  %v34_v16 = vld [vmem:[%s1710_s0 + $0x20] sm:$0xff]  ;;  %v930_v18 = vld [vmem:[%s1711_s1 + $0x18] sm:$0xff]  }
   0x4   :  { %v906_v13 = vunpack.c.l.bf16 %v929_v10  ;;  %v1173_v14 = vadd.f32 %v902_v8, %v32_v2  ;;  %v1175_v15 = vadd.f32 %v903_v9, %v33_v7  ;;  %v907_v17 = vunpack.c.h.bf16 %v929_v10  ;;  %v35_v20 = vld [vmem:[%s1710_s0 + $0x28] sm:$0xff]  ;;  %v36_v27 = vld [vmem:[%s1710_s0 + $0x30] sm:$0xff]  ;;  %v931_v29 = vld [vmem:[%s1711_s1 + $0x20] sm:$0xff]  }
   0x5   :  { %v1169_v11 = vadd.f32 %v898_v3, %v30_v0  ;;  %v1171_v12 = vadd.f32 %v899_v6, %v31_v5  ;;  %v910_v24 = vunpack.c.l.bf16 %v930_v18  ;;  %v911_v28 = vunpack.c.h.bf16 %v930_v18  ;;  %v37_v30 = vld [vmem:[%s1710_s0 + $0x38] sm:$0xff]  ;;  %v38_v36 = vld [vmem:[%s1710_s0 + $0x40] sm:$0xff]  ;;  %v932_v38 = vld [vmem:[%s1711_s1 + $0x28] sm:$0xff]  }
   0x6   :  { %v101_v21 = vsel %vm94_vm0, %v1173_v14, 0.0  ;;  %v1192_v23 = vadd.f32 %v906_v13, %v34_v16  ;;  %v104_v25 = vsel %vm94_vm0, %v1175_v15, 0.0  ;;  %v1196_v26 = vadd.f32 %v907_v17, %v35_v20  ;;  %v39_v39 = vld [vmem:[%s1710_s0 + $0x48] sm:$0xff]  ;;  %v40_v45 = vld [vmem:[%s1710_s0 + $0x50] sm:$0xff]  ;;  %v41_v48 = vld [vmem:[%s1710_s0 + $0x58] sm:$0xff] }
   0x7   :  { %v95_v19 = vsel %vm94_vm0, %v1169_v11, 0.0  ;;  %102 = vadd.xlane.f32.xlu1 %v101_v21  ;;  %v98_v22 = vsel %vm94_vm0, %v1171_v12, 0.0  ;;  %v1209_v32 = vadd.f32 %v910_v24, %v36_v27  ;;  %v914_v33 = vunpack.c.l.bf16 %v931_v29  ;;  %v933_v47 = vld [vmem:[%s1711_s1 + $0x30] sm:$0xff]   ;;  %v42_v54 = vld [vmem:[%s1710_s0 + $0x60] sm:$0xff]  ;;  %v934_v56 = vld [vmem:[%s1711_s1 + $0x38] sm:$0xff]  }
   0x8   :  { %96 = vadd.xlane.f32.xlu0 %v95_v19  ;;  %v107_v31 = vsel %vm94_vm0, %v1192_v23, 0.0  ;;  %v110_v34 = vsel %vm94_vm0, %v1196_v26, 0.0  ;;  %v1213_v35 = vadd.f32 %v911_v28, %v37_v30  ;;  %v915_v37 = vunpack.c.h.bf16 %v931_v29  ;;  %v43_v57 = vld [vmem:[%s1710_s0 + $0x68] sm:$0xff]  ;;  %v44_v63 = vld [vmem:[%s1710_s0 + $0x70] sm:$0xff]  ;;  %v45_v1 = vld [vmem:[%s1710_s0 + $0x78] sm:$0xff] }
   0x9   :  { %v113_v40 = vsel %vm94_vm0, %v1209_v32, 0.0  ;;  %v1226_v41 = vadd.f32 %v914_v33, %v38_v36  ;;  %v918_v42 = vunpack.c.l.bf16 %v932_v38  ;;  %v919_v46 = vunpack.c.h.bf16 %v932_v38 }
   0xa   :  { %v116_v43 = vsel %vm94_vm0, %v1213_v35, 0.0  ;;  %v1230_v44 = vadd.f32 %v915_v37, %v39_v39  ;;  %v922_v51 = vunpack.c.l.bf16 %v933_v47  ;;  %v923_v55 = vunpack.c.h.bf16 %v933_v47 }
   0xb   :  { %105 = vadd.xlane.f32.xlu1 %v104_v25  ;;  %v119_v49 = vsel %vm94_vm0, %v1226_v41, 0.0  ;;  %v1243_v50 = vadd.f32 %v918_v42, %v40_v45  ;;  %v1247_v53 = vadd.f32 %v919_v46, %v41_v48  ;;  %v926_v60 = vunpack.c.l.bf16 %v934_v56 }
   0xc   :  { %99 = vadd.xlane.f32.xlu0 %v98_v22  ;;  %v122_v52 = vsel %vm94_vm0, %v1230_v44, 0.0  ;;  %v1260_v59 = vadd.f32 %v922_v51, %v42_v54  ;;  %v1264_v62 = vadd.f32 %v923_v55, %v43_v57  ;;  %v927_v0 = vunpack.c.h.bf16 %v934_v56 }
   0xd   :  { %v125_v58 = vsel %vm94_vm0, %v1243_v50, 0.0  ;;  %v128_v61 = vsel %vm94_vm0, %v1247_v53, 0.0  ;;  %v1274_v3 = vadd.f32 %v926_v60, %v44_v63 }
   0xe   :  { %v131_v2 = vsel %vm94_vm0, %v1260_v59, 0.0  ;;  %v134_v4 = vsel %vm94_vm0, %v1264_v62, 0.0  ;;  %v1278_v5 = vadd.f32 %v927_v0, %v45_v1 }
   0xf   :  { %111 = vadd.xlane.f32.xlu1 %v110_v34  ;;  %v137_v6 = vsel %vm94_vm0, %v1274_v3, 0.0 }
  0x10   :  { %108 = vadd.xlane.f32.xlu0 %v107_v31  ;;  %v140_v7 = vsel %vm94_vm0, %v1278_v5, 0.0 }
  0x13   :  { %117 = vadd.xlane.f32.xlu1 %v116_v43 }
  0x14   :  { %114 = vadd.xlane.f32.xlu0 %v113_v40 }
  0x17   :  { %123 = vadd.xlane.f32.xlu1 %v122_v52 }
  0x18   :  { %120 = vadd.xlane.f32.xlu0 %v119_v49 }
  0x1b   :  { %129 = vadd.xlane.f32.xlu1 %v128_v61 }
  0x1c   :  { %126 = vadd.xlane.f32.xlu0 %v125_v58 }
  0x1f   :  { %135 = vadd.xlane.f32.xlu1 %v134_v4 }
  0x20   :  { %132 = vadd.xlane.f32.xlu0 %v131_v2 }
  0x23   :  { %141 = vadd.xlane.f32.xlu1 %v140_v7 }
  0x24   :  { %138 = vadd.xlane.f32.xlu0 %v137_v6 }
  0x90   :  { %v103_v10 = vpop.xlane.xlu1 %102 }
  0x91   :  { %v97_v8 = vpop.xlane.xlu0 %96  ;;  %v146_v13 = vmul.f32 0.03125, %v103_v10 }
  0x92   :  { %v144_v9 = vmul.f32 0.03125, %v97_v8 }
  0x93   :  { %v1288_v17 = vsub.f32 %v1173_v14, %v146_v13 }
  0x94   :  { %v1285_v16 = vsub.f32 %v1169_v11, %v144_v9  ;;  %v106_v20 = vpop.xlane.xlu1 %105 }
  0x95   :  { %v100_v18 = vpop.xlane.xlu0 %99  ;;  %v147_v22 = vmul.f32 0.03125, %v106_v20  ;;  %v178_v24 = vmul.f32 %v1288_v17, %v1288_v17 }
  0x96   :  { %v145_v19 = vmul.f32 0.03125, %v100_v18  ;;  %v176_v21 = vmul.f32 %v1285_v16, %v1285_v16 }
  0x97   :  { %v1299_v28 = vsub.f32 %v1175_v15, %v147_v22  ;;  %v198_v33 = vsel %vm94_vm0, %v178_v24, 0.0 }
  0x98   :  { %v1295_v25 = vsub.f32 %v1171_v12, %v145_v19  ;;  %v192_v27 = vsel %vm94_vm0, %v176_v21, 0.0  ;;  %v112_v31 = vpop.xlane.xlu1 %111 }
  0x99   :  { %193 = vadd.xlane.f32.xlu0 %v192_v27  ;;  %v109_v29 = vpop.xlane.xlu0 %108  ;;  %v149_v36 = vmul.f32 0.03125, %v112_v31  ;;  %v179_v37 = vmul.f32 %v1299_v28, %v1299_v28 }
  0x9a   :  { %v148_v30 = vmul.f32 0.03125, %v109_v29  ;;  %v177_v34 = vmul.f32 %v1295_v25, %v1295_v25 }
  0x9b   :  { %v1311_v40 = vsub.f32 %v1196_v26, %v149_v36  ;;  %v201_v46 = vsel %vm94_vm0, %v179_v37, 0.0 }
  0x9c   :  { %v1307_v38 = vsub.f32 %v1192_v23, %v148_v30  ;;  %v195_v39 = vsel %vm94_vm0, %v177_v34, 0.0  ;;  %v118_v45 = vpop.xlane.xlu1 %117 }
  0x9d   :  { %199 = vadd.xlane.f32.xlu0 %v198_v33  ;;  %196 = vadd.xlane.f32.xlu1 %v195_v39  ;;  %v115_v42 = vpop.xlane.xlu0 %114  ;;  %v151_v48 = vmul.f32 0.03125, %v118_v45  ;;  %v181_v49 = vmul.f32 %v1311_v40, %v1311_v40 }
  0x9e   :  { %v150_v43 = vmul.f32 0.03125, %v115_v42  ;;  %v180_v47 = vmul.f32 %v1307_v38, %v1307_v38 }
  0x9f   :  { %v1323_v54 = vsub.f32 %v1213_v35, %v151_v48  ;;  %v207_v58 = vsel %vm94_vm0, %v181_v49, 0.0 }
  0xa0   :  { %v1319_v51 = vsub.f32 %v1209_v32, %v150_v43  ;;  %v204_v52 = vsel %vm94_vm0, %v180_v47, 0.0  ;;  %v124_v57 = vpop.xlane.xlu1 %123 }
  0xa1   :  { %202 = vadd.xlane.f32.xlu1 %v201_v46  ;;  %205 = vadd.xlane.f32.xlu0 %v204_v52  ;;  %v121_v55 = vpop.xlane.xlu0 %120  ;;  %v153_v61 = vmul.f32 0.03125, %v124_v57  ;;  %v183_v63 = vmul.f32 %v1323_v54, %v1323_v54 }
  0xa2   :  { %v152_v56 = vmul.f32 0.03125, %v121_v55  ;;  %v182_v60 = vmul.f32 %v1319_v51, %v1319_v51 }
  0xa3   :  { %v1335_v2 = vsub.f32 %v1230_v44, %v153_v61  ;;  %v213_v8 = vsel %vm94_vm0, %v183_v63, 0.0  ;;  %v1029_v61 = vld [vmem:[%s1712_s4 + $0x8] sm:$0xff]   ;;  %v1030_v63 = vld [vmem:[%s1712_s4] sm:$0xff]  }
  0xa4   :  { %v1331_v0 = vsub.f32 %v1226_v41, %v152_v56  ;;  %v210_v1 = vsel %vm94_vm0, %v182_v60, 0.0  ;;  %v130_v7 = vpop.xlane.xlu1 %129  ;;  %961 = vmatprep.subr.bf16.mxu0 %v1029_v61 }
  0xa5   :  { %208 = vadd.xlane.f32.xlu1 %v207_v58  ;;  %211 = vadd.xlane.f32.xlu0 %v210_v1  ;;  %v127_v4 = vpop.xlane.xlu0 %126  ;;  %v155_v10 = vmul.f32 0.03125, %v130_v7  ;;  %v185_v13 = vmul.f32 %v1335_v2, %v1335_v2 }
  0xa6   :  { %v154_v6 = vmul.f32 0.03125, %v127_v4  ;;  %v184_v9 = vmul.f32 %v1331_v0, %v1331_v0  ;;  %962 = vmatpush3.bf16.msra.mxu0 %v1029_v61 }
  0xa7   :  { %v1347_v20 = vsub.f32 %v1247_v53, %v155_v10  ;;  %v219_v27 = vsel %vm94_vm0, %v185_v13, 0.0  ;;  %963 = vmatprep.subr.bf16.mxu0 %v1030_v63 }
  0xa8   :  { %v1343_v18 = vsub.f32 %v1243_v50, %v154_v6  ;;  %v216_v19 = vsel %vm94_vm0, %v184_v9, 0.0  ;;  %v136_v24 = vpop.xlane.xlu1 %135 }
  0xa9   :  { %214 = vadd.xlane.f32.xlu1 %v213_v8  ;;  %217 = vadd.xlane.f32.xlu0 %v216_v19  ;;  %v133_v21 = vpop.xlane.xlu0 %132  ;;  %v157_v30 = vmul.f32 0.03125, %v136_v24  ;;  %v187_v31 = vmul.f32 %v1347_v20, %v1347_v20 }
  0xaa   :  { %v156_v22 = vmul.f32 0.03125, %v133_v21  ;;  %v186_v29 = vmul.f32 %v1343_v18, %v1343_v18  ;;  %964 = vmatpush3.bf16.msra.mxu0 %v1030_v63 }
  0xab   :  { %v1359_v36 = vsub.f32 %v1264_v62, %v157_v30  ;;  %v225_v43 = vsel %vm94_vm0, %v187_v31, 0.0 }
  0xac   :  { %v1355_v33 = vsub.f32 %v1260_v59, %v156_v22  ;;  %v222_v34 = vsel %vm94_vm0, %v186_v29, 0.0  ;;  %v142_v42 = vpop.xlane.xlu1 %141 }
  0xad   :  { %220 = vadd.xlane.f32.xlu1 %v219_v27  ;;  %223 = vadd.xlane.f32.xlu0 %v222_v34  ;;  %v139_v37 = vpop.xlane.xlu0 %138  ;;  %v159_v46 = vmul.f32 0.03125, %v142_v42  ;;  %v189_v47 = vmul.f32 %v1359_v36, %v1359_v36 }
  0xae   :  { %v158_v39 = vmul.f32 0.03125, %v139_v37  ;;  %v188_v45 = vmul.f32 %v1355_v33, %v1355_v33 }
  0xaf   :  { %v1371_v52 = vsub.f32 %v1278_v5, %v159_v46  ;;  %v231_v55 = vsel %vm94_vm0, %v189_v47, 0.0 }
  0xb0   :  { %v1367_v48 = vsub.f32 %v1274_v3, %v158_v39  ;;  %v228_v49 = vsel %vm94_vm0, %v188_v45, 0.0 }
  0xb1   :  { %226 = vadd.xlane.f32.xlu1 %v225_v43  ;;  %229 = vadd.xlane.f32.xlu0 %v228_v49  ;;  %v191_v57 = vmul.f32 %v1371_v52, %v1371_v52 }
  0xb2   :  { %v190_v56 = vmul.f32 %v1367_v48, %v1367_v48 }
  0xb3   :  { %v237_v60 = vsel %vm94_vm0, %v191_v57, 0.0 }
  0xb4   :  { %v234_v58 = vsel %vm94_vm0, %v190_v56, 0.0 }
  0xb5   :  { %232 = vadd.xlane.f32.xlu1 %v231_v55  ;;  %235 = vadd.xlane.f32.xlu0 %v234_v58 }
  0xb9   :  { %238 = vadd.xlane.f32.xlu1 %v237_v60  ;;  %v1390_v60 = vld [vmem:[%s1713_s2] ss:$0 sm:$0xff] }
 0x122   :  { %v194_v1 = vpop.xlane.xlu0 %193 }
 0x123   :  { %v240_v4 = vmul.f32 0.03125, %v194_v1 }
 0x125   :  { %v256_v6 = vadd.f32 1e-05, %v240_v4 }
 0x126   :  { %v197_v7 = vpop.xlane.xlu1 %196  ;;  %v200_v8 = vpop.xlane.xlu0 %199 }
 0x127   :  { %1039 = vrsqrt.f32 %v256_v6  ;;  %v241_v9 = vmul.f32 0.03125, %v197_v7  ;;  %v242_v10 = vmul.f32 0.03125, %v200_v8 }
 0x129   :  { %v257_v13 = vadd.f32 1e-05, %v241_v9  ;;  %v258_v19 = vadd.f32 1e-05, %v242_v10 }
 0x12a   :  { %v203_v21 = vpop.xlane.xlu1 %202  ;;  %v206_v22 = vpop.xlane.xlu0 %205 }
 0x12b   :  { %1041 = vrsqrt.f32 %v257_v13  ;;  %v243_v24 = vmul.f32 0.03125, %v203_v21  ;;  %v244_v27 = vmul.f32 0.03125, %v206_v22 }
 0x12c   :  { %1043 = vrsqrt.f32 %v258_v19 }
 0x12d   :  { %v259_v29 = vadd.f32 1e-05, %v243_v24  ;;  %v260_v30 = vadd.f32 1e-05, %v244_v27 }
 0x12e   :  { %v209_v31 = vpop.xlane.xlu1 %208  ;;  %v212_v34 = vpop.xlane.xlu0 %211 }
 0x12f   :  { %1045 = vrsqrt.f32 %v259_v29  ;;  %v245_v37 = vmul.f32 0.03125, %v209_v31  ;;  %v246_v39 = vmul.f32 0.03125, %v212_v34 }
 0x130   :  { %1047 = vrsqrt.f32 %v260_v30 }
 0x131   :  { %v261_v42 = vadd.f32 1e-05, %v245_v37  ;;  %v262_v43 = vadd.f32 1e-05, %v246_v39 }
 0x132   :  { %v215_v45 = vpop.xlane.xlu1 %214  ;;  %v218_v46 = vpop.xlane.xlu0 %217 }
 0x133   :  { %1049 = vrsqrt.f32 %v261_v42  ;;  %v247_v47 = vmul.f32 0.03125, %v215_v45  ;;  %v248_v49 = vmul.f32 0.03125, %v218_v46 }
 0x134   :  { %v1040_v55 = vpop.eup %1039  ;;  %1051 = vrsqrt.f32 %v262_v43 }
 0x135   :  { %v263_v56 = vadd.f32 1e-05, %v247_v47  ;;  %v264_v57 = vadd.f32 1e-05, %v248_v49  ;;  %v288_v58 = vmul.f32 %v1040_v55, %v1285_v16  ;;  %v1397_v16 = vld [vmem:[%s1714_s3] ss:$0 sm:$0xff] }
 0x136   :  { %v221_v61 = vpop.xlane.xlu1 %220  ;;  %v224_v63 = vpop.xlane.xlu0 %223 }
 0x137   :  { %1053 = vrsqrt.f32 %v263_v56  ;;  %v249_v1 = vmul.f32 0.03125, %v221_v61  ;;  %v250_v4 = vmul.f32 0.03125, %v224_v63  ;;  %v311_v7 = vmul.f32 %v1390_v60, %v288_v58 }
 0x138   :  { %v1042_v6 = vpop.eup %1041  ;;  %1055 = vrsqrt.f32 %v264_v57 }
 0x139   :  { %v1044_v8 = vpop.eup %1043  ;;  %v265_v9 = vadd.f32 1e-05, %v249_v1  ;;  %v266_v10 = vadd.f32 1e-05, %v250_v4  ;;  %v289_v13 = vmul.f32 %v1042_v6, %v1295_v25  ;;  %v334_v31 = vadd.f32 %v1397_v16, %v311_v7 }
 0x13a   :  { %v227_v19 = vpop.xlane.xlu1 %226  ;;  %v230_v21 = vpop.xlane.xlu0 %229  ;;  %v290_v22 = vmul.f32 %v1044_v8, %v1288_v17 }
 0x13b   :  { %1057 = vrsqrt.f32 %v265_v9  ;;  %v251_v24 = vmul.f32 0.03125, %v227_v19  ;;  %v252_v27 = vmul.f32 0.03125, %v230_v21  ;;  %v312_v29 = vmul.f32 %v1390_v60, %v289_v13 }
 0x13c   :  { %v1046_v30 = vpop.eup %1045  ;;  %1059 = vrsqrt.f32 %v266_v10  ;;  %v313_v17 = vmul.f32 %v1390_v60, %v290_v22 }
 0x13d   :  { %v1048_v34 = vpop.eup %1047  ;;  %v267_v25 = vadd.f32 1e-05, %v251_v24  ;;  %v268_v37 = vadd.f32 1e-05, %v252_v27  ;;  %v335_v39 = vadd.f32 %v1397_v16, %v312_v29  ;;  %v291_v42 = vmul.f32 %v1046_v30, %v1299_v28 }
 0x13e   :  { %v233_v43 = vpop.xlane.xlu1 %232  ;;  %v236_v45 = vpop.xlane.xlu0 %235  ;;  %v292_v46 = vmul.f32 %v1048_v34, %v1307_v38  ;;  %v336_v38 = vadd.f32 %v1397_v16, %v313_v17 }
 0x13f   :  { %1061 = vrsqrt.f32 %v267_v25  ;;  %v253_v47 = vmul.f32 0.03125, %v233_v43  ;;  %v254_v49 = vmul.f32 0.03125, %v236_v45  ;;  %v350_v55 = vpack.c.bf16 %v335_v39, %v334_v31 }
 0x140   :  { %v1050_v56 = vpop.eup %1049  ;;  %1063 = vrsqrt.f32 %v268_v37  ;;  %v314_v57 = vmul.f32 %v1390_v60, %v291_v42  ;;  %v315_v58 = vmul.f32 %v1390_v60, %v292_v46 }
 0x141   :  { %v1052_v61 = vpop.eup %1051  ;;  %v269_v63 = vadd.f32 1e-05, %v253_v47  ;;  %v270_v1 = vadd.f32 1e-05, %v254_v49  ;;  %965 = vmatprep.mubr.msk.bf16.mxu0 %vm94_vm0, %v350_v55  ;;  %v293_v28 = vmul.f32 %v1050_v56, %v1311_v40 }
 0x142   :  { %v239_v4 = vpop.xlane.xlu1 %238  ;;  %v337_v6 = vadd.f32 %v1397_v16, %v314_v57  ;;  %v294_v7 = vmul.f32 %v1052_v61, %v1319_v51  ;;  %v338_v19 = vadd.f32 %v1397_v16, %v315_v58 }
 0x143   :  { %1065 = vrsqrt.f32 %v269_v63  ;;  %v255_v8 = vmul.f32 0.03125, %v239_v4  ;;  %v316_v9 = vmul.f32 %v1390_v60, %v293_v28 }
 0x144   :  { %v1054_v10 = vpop.eup %1053  ;;  %1067 = vrsqrt.f32 %v270_v1  ;;  %v351_v13 = vpack.c.bf16 %v337_v6, %v336_v38  ;;  %v317_v27 = vmul.f32 %v1390_v60, %v294_v7 }
 0x145   :  { %v1056_v21 = vpop.eup %1055  ;;  %v271_v22 = vadd.f32 1e-05, %v255_v8  ;;  %v339_v40 = vadd.f32 %v1397_v16, %v316_v9  ;;  %v295_v24 = vmul.f32 %v1054_v10, %v1323_v54 }
 0x146   :  { %966 = vmatmul.mubr.msk.bf16.vlgmr.msra.gmra.mxu0 %vm94_vm0, %v351_v13  ;;  %v296_v51 = vmul.f32 %v1056_v21, %v1331_v0  ;;  %v340_v25 = vadd.f32 %v1397_v16, %v317_v27  ;;  %v1034_v21 = vld [vmem:[%s1715_s6 + $0x20] sm:$0xff]  }
 0x147   :  { %1069 = vrsqrt.f32 %v271_v22  ;;  %v352_v29 = vpack.c.bf16 %v339_v40, %v338_v19  ;;  %v318_v30 = vmul.f32 %v1390_v60, %v295_v24  ;;  %v1035_v22 = vld [vmem:[%s1715_s6 + $0x18] sm:$0xff]   ;;  %v1036_v40 = vld [vmem:[%s1715_s6 + $0x10] sm:$0xff]   ;;  %v1037_v24 = vld [vmem:[%s1715_s6 + $0x8] sm:$0xff]  }
 0x148   :  { %v1058_v31 = vpop.eup %1057  ;;  %v319_v39 = vmul.f32 %v1390_v60, %v296_v51  ;;  %v1038_v27 = vld [vmem:[%s1715_s6] sm:$0xff]  }
 0x149   :  { %v1060_v34 = vpop.eup %1059  ;;  %969 = vmatprep.mubr.msk.bf16.mxu0 %vm94_vm0, %v352_v29  ;;  %v341_v37 = vadd.f32 %v1397_v16, %v318_v30  ;;  %v297_v54 = vmul.f32 %v1058_v31, %v1335_v2  ;;  %v1479_v51 = vld [vmem:[%s1716_s5] ss:$0 sm:$0xff] }
 0x14a   :  { %v298_v42 = vmul.f32 %v1060_v34, %v1343_v18  ;;  %v342_v46 = vadd.f32 %v1397_v16, %v319_v39 }
 0x14b   :  { %v353_v43 = vpack.c.bf16 %v341_v37, %v340_v25  ;;  %v320_v0 = vmul.f32 %v1390_v60, %v297_v54 }
 0x14c   :  { %v1062_v45 = vpop.eup %1061  ;;  %v321_v55 = vmul.f32 %v1390_v60, %v298_v42 }
 0x14d   :  { %v1064_v17 = vpop.eup %1063  ;;  %v343_v47 = vadd.f32 %v1397_v16, %v320_v0  ;;  %v299_v49 = vmul.f32 %v1062_v45, %v1347_v20 }
 0x14e   :  { %970 = vmatmul.mubr.msk.bf16.gmra.mxu0 %vm94_vm0, %v353_v43  ;;  %v300_v2 = vmul.f32 %v1064_v17, %v1355_v33  ;;  %v344_v61 = vadd.f32 %v1397_v16, %v321_v55 }
 0x14f   :  { %v354_v56 = vpack.c.bf16 %v343_v47, %v342_v46  ;;  %v322_v18 = vmul.f32 %v1390_v60, %v299_v49 }
 0x150   :  { %v1066_v57 = vpop.eup %1065  ;;  %v323_v20 = vmul.f32 %v1390_v60, %v300_v2 }
 0x151   :  { %v1068_v58 = vpop.eup %1067  ;;  %973 = vmatprep.mubr.msk.bf16.mxu0 %vm94_vm0, %v354_v56  ;;  %v345_v63 = vadd.f32 %v1397_v16, %v322_v18  ;;  %v301_v1 = vmul.f32 %v1066_v57, %v1359_v36 }
 0x152   :  { %v302_v28 = vmul.f32 %v1068_v58, %v1367_v48  ;;  %v346_v6 = vadd.f32 %v1397_v16, %v323_v20 }
 0x153   :  { %v355_v4 = vpack.c.bf16 %v345_v63, %v344_v61  ;;  %v324_v33 = vmul.f32 %v1390_v60, %v301_v1 }
 0x154   :  { %v1070_v38 = vpop.eup %1069  ;;  %v325_v9 = vmul.f32 %v1390_v60, %v302_v28 }
 0x155   :  { %v347_v7 = vadd.f32 %v1397_v16, %v324_v33  ;;  %v303_v8 = vmul.f32 %v1070_v38, %v1371_v52  ;;  %v1031_v52 = vld [vmem:[%s1715_s6 + $0x38] sm:$0xff]  }
 0x156   :  { %974 = vmatmul.mubr.msk.bf16.gmra.mxu0 %vm94_vm0, %v355_v4  ;;  %v348_v48 = vadd.f32 %v1397_v16, %v325_v9  ;;  %981 = vmatprep.subr.bf16.mxu0 %v1031_v52 }
 0x157   :  { %v356_v10 = vpack.c.bf16 %v347_v7, %v346_v6  ;;  %v326_v36 = vmul.f32 %v1390_v60, %v303_v8  ;;  %1013 = vmatprep.subr.bf16.mxu1 %v1031_v52  ;;  %982 = vmatpush3.bf16.msra.mxu0 %v1031_v52  ;;  %v1032_v60 = vld [vmem:[%s1715_s6 + $0x30] sm:$0xff]  }
 0x158   :  { %1021 = vmatpush3.bf16.msra.mxu1 %v1031_v52  ;;  %983 = vmatprep.subr.bf16.mxu0 %v1032_v60 }
 0x159   :  { %977 = vmatprep.mubr.msk.bf16.mxu0 %vm94_vm0, %v356_v10  ;;  %v349_v13 = vadd.f32 %v1397_v16, %v326_v36  ;;  %1014 = vmatprep.subr.bf16.mxu1 %v1032_v60  ;;  %v1033_v16 = vld [vmem:[%s1715_s6 + $0x28] sm:$0xff]  }
 0x15b   :  { %v357_v19 = vpack.c.bf16 %v349_v13, %v348_v48  ;;  %984 = vmatpush3.bf16.msra.mxu0 %v1032_v60 }
 0x15c   :  { %1022 = vmatpush3.bf16.msra.mxu1 %v1032_v60  ;;  %985 = vmatprep.subr.bf16.mxu0 %v1033_v16 }
 0x15d   :  { %1015 = vmatprep.subr.bf16.mxu1 %v1033_v16 }
 0x15e   :  { %978 = vmatmul.mubr.msk.bf16.gmra.mxu0 %vm94_vm0, %v357_v19 }
 0x15f   :  { %986 = vmatpush3.bf16.msra.mxu0 %v1033_v16 }
 0x160   :  { %1023 = vmatpush3.bf16.msra.mxu1 %v1033_v16  ;;  %987 = vmatprep.subr.bf16.mxu0 %v1034_v21 }
 0x161   :  { %1016 = vmatprep.subr.bf16.mxu1 %v1034_v21 }
 0x163   :  { %988 = vmatpush3.bf16.msra.mxu0 %v1034_v21 }
 0x164   :  { %1024 = vmatpush3.bf16.msra.mxu1 %v1034_v21  ;;  %989 = vmatprep.subr.bf16.mxu0 %v1035_v22 }
 0x165   :  { %1017 = vmatprep.subr.bf16.mxu1 %v1035_v22 }
 0x167   :  { %990 = vmatpush3.bf16.msra.mxu0 %v1035_v22 }
 0x168   :  { %1025 = vmatpush3.bf16.msra.mxu1 %v1035_v22  ;;  %991 = vmatprep.subr.bf16.mxu0 %v1036_v40 }
 0x169   :  { %1018 = vmatprep.subr.bf16.mxu1 %v1036_v40 }
 0x16b   :  { %992 = vmatpush3.bf16.msra.mxu0 %v1036_v40 }
 0x16c   :  { %1026 = vmatpush3.bf16.msra.mxu1 %v1036_v40  ;;  %993 = vmatprep.subr.bf16.mxu0 %v1037_v24 }
 0x16d   :  { %1019 = vmatprep.subr.bf16.mxu1 %v1037_v24 }
 0x16f   :  { %994 = vmatpush3.bf16.msra.mxu0 %v1037_v24 }
 0x170   :  { %1027 = vmatpush3.bf16.msra.mxu1 %v1037_v24  ;;  %995 = vmatprep.subr.bf16.mxu0 %v1038_v27 }
 0x171   :  { %1020 = vmatprep.subr.bf16.mxu1 %v1038_v27 }
 0x173   :  { %996 = vmatpush3.bf16.msra.mxu0 %v1038_v27 }
 0x174   :  { %1028 = vmatpush3.bf16.msra.mxu1 %v1038_v27 }
 0x206   :  { %v967_v29 = vpop.f32.mrf.mxu0 }
 0x207   :  { %v1482_v30 = vadd.f32 %v967_v29, %v1479_v51 }
 0x208   :  { %v439_v31 = vpop.f32.mrf.mxu0 }
 0x209   :  { %v520_v34 = vmul.f32 0.044715, %v1482_v30  ;;  %v1486_v25 = vadd.f32 %v1479_v51, %v439_v31 }
 0x20a   :  { %v968_v37 = vpop.f32.mrf.mxu0 }
 0x20b   :  { %v536_v54 = vmul.f32 %v520_v34, %v1482_v30  ;;  %v518_v39 = vmul.f32 0.044715, %v1486_v25  ;;  %v1491_v42 = vadd.f32 %v968_v37, %v1479_v51 }
 0x20c   :  { %v442_v43 = vpop.f32.mrf.mxu0 }
 0x20d   :  { %v552_v0 = vmul.f32 %v536_v54, %v1482_v30  ;;  %v534_v45 = vmul.f32 %v518_v39, %v1486_v25  ;;  %v521_v17 = vmul.f32 0.044715, %v1491_v42  ;;  %v1497_v46 = vadd.f32 %v1479_v51, %v442_v43 }
 0x20e   :  { %v971_v47 = vpop.f32.mrf.mxu0 }
 0x20f   :  { %v568_v49 = vadd.f32 %v552_v0, %v1482_v30  ;;  %v550_v55 = vmul.f32 %v534_v45, %v1486_v25  ;;  %v537_v2 = vmul.f32 %v521_v17, %v1491_v42  ;;  %v1503_v56 = vadd.f32 %v971_v47, %v1479_v51 }
 0x210   :  { %v519_v18 = vmul.f32 0.044715, %v1497_v46  ;;  %v455_v57 = vpop.f32.mrf.mxu0 }
 0x211   :  { %v584_v58 = vmul.f32 0.7978846, %v568_v49  ;;  %v553_v61 = vmul.f32 %v537_v2, %v1491_v42  ;;  %v524_v63 = vmul.f32 0.044715, %v1503_v56  ;;  %v1509_v1 = vadd.f32 %v1479_v51, %v455_v57 }
 0x212   :  { %v535_v20 = vmul.f32 %v519_v18, %v1497_v46  ;;  %v972_v28 = vpop.f32.mrf.mxu0  ;;  %v566_v4 = vadd.f32 %v550_v55, %v1486_v25 }
 0x213   :  { %v569_v33 = vadd.f32 %v553_v61, %v1491_v42  ;;  %v540_v38 = vmul.f32 %v524_v63, %v1503_v56  ;;  %v522_v6 = vmul.f32 0.044715, %v1509_v1  ;;  %1071 = vtanh.f32 %v584_v58 }
 0x214   :  { %v551_v7 = vmul.f32 %v535_v20, %v1497_v46  ;;  %v1518_v8 = vadd.f32 %v972_v28, %v1479_v51  ;;  %v458_v9 = vpop.f32.mrf.mxu0  ;;  %v582_v10 = vmul.f32 0.7978846, %v566_v4 }
 0x215   :  { %v585_v36 = vmul.f32 0.7978846, %v569_v33  ;;  %v556_v48 = vmul.f32 %v540_v38, %v1503_v56  ;;  %v1522_v13 = vadd.f32 %v1479_v51, %v458_v9  ;;  %v538_v19 = vmul.f32 %v522_v6, %v1509_v1 }
 0x216   :  { %v525_v52 = vmul.f32 0.044715, %v1518_v8  ;;  %v975_v60 = vpop.f32.mrf.mxu0  ;;  %v567_v16 = vadd.f32 %v551_v7, %v1497_v46  ;;  %1073 = vtanh.f32 %v582_v10  ;;  %v504_v10 = vmul.f32 0.5, %v1482_v30 }
 0x217   :  { %1075 = vtanh.f32 %v585_v36  ;;  %v523_v21 = vmul.f32 0.044715, %v1522_v13  ;;  %v1529_v22 = vadd.f32 %v975_v60, %v1479_v51  ;;  %v554_v29 = vmul.f32 %v538_v19, %v1509_v1 }
 0x218   :  { %v541_v40 = vmul.f32 %v525_v52, %v1518_v8  ;;  %v471_v24 = vpop.f32.mrf.mxu0  ;;  %v583_v27 = vmul.f32 0.7978846, %v567_v16  ;;  %v572_v31 = vadd.f32 %v556_v48, %v1503_v56  ;;  %v502_v30 = vmul.f32 0.5, %v1486_v25 }
 0x219   :  { %v528_v34 = vmul.f32 0.044715, %v1529_v22  ;;  %v1536_v37 = vadd.f32 %v1479_v51, %v471_v24  ;;  %v539_v54 = vmul.f32 %v523_v21, %v1522_v13  ;;  %v570_v0 = vadd.f32 %v554_v29, %v1509_v1 }
 0x21a   :  { %v557_v39 = vmul.f32 %v541_v40, %v1518_v8  ;;  %v976_v43 = vpop.f32.mrf.mxu0  ;;  %1077 = vtanh.f32 %v583_v27  ;;  %v588_v45 = vmul.f32 0.7978846, %v572_v31  ;;  %v505_v24 = vmul.f32 0.5, %v1491_v42 }
 0x21b   :  { %v544_v17 = vmul.f32 %v528_v34, %v1529_v22  ;;  %v526_v47 = vmul.f32 0.044715, %v1536_v37  ;;  %v1544_v49 = vadd.f32 %v976_v43, %v1479_v51  ;;  %v555_v55 = vmul.f32 %v539_v54, %v1522_v13 }
 0x21c   :  { %v474_v2 = vpop.f32.mrf.mxu0  ;;  %v586_v18 = vmul.f32 0.7978846, %v570_v0  ;;  %v573_v57 = vadd.f32 %v557_v39, %v1518_v8  ;;  %1079 = vtanh.f32 %v588_v45  ;;  %v503_v43 = vmul.f32 0.5, %v1497_v46 }
 0x21d   :  { %v560_v58 = vmul.f32 %v544_v17, %v1529_v22  ;;  %v542_v61 = vmul.f32 %v526_v47, %v1536_v37  ;;  %v529_v63 = vmul.f32 0.044715, %v1544_v49  ;;  %v1552_v20 = vadd.f32 %v1479_v51, %v474_v2 }
 0x21e   :  { %v979_v28 = vpop.f32.mrf.mxu0  ;;  %v571_v4 = vadd.f32 %v555_v55, %v1522_v13  ;;  %1081 = vtanh.f32 %v586_v18  ;;  %v589_v33 = vmul.f32 0.7978846, %v573_v57 }
 0x21f   :  { %v558_v38 = vmul.f32 %v542_v61, %v1536_v37  ;;  %v545_v6 = vmul.f32 %v529_v63, %v1544_v49  ;;  %v527_v7 = vmul.f32 0.044715, %v1552_v20  ;;  %v1559_v9 = vadd.f32 %v979_v28, %v1479_v51 }
 0x220   :  { %v487_v36 = vpop.f32.mrf.mxu0  ;;  %v587_v48 = vmul.f32 0.7978846, %v571_v4  ;;  %1083 = vtanh.f32 %v589_v33  ;;  %v576_v19 = vadd.f32 %v560_v58, %v1529_v22  ;;  %v1072_v52 = vpop.eup %1071 }
 0x221   :  { %v561_v60 = vmul.f32 %v545_v6, %v1544_v49  ;;  %v543_v16 = vmul.f32 %v527_v7, %v1552_v20  ;;  %v532_v21 = vmul.f32 0.044715, %v1559_v9  ;;  %v1567_v40 = vadd.f32 %v1479_v51, %v487_v36 }
 0x222   :  { %v980_v27 = vpop.f32.mrf.mxu0  ;;  %1085 = vtanh.f32 %v587_v48  ;;  %v574_v29 = vadd.f32 %v558_v38, %v1536_v37  ;;  %v616_v17 = vadd.f32 1.0, %v1072_v52  ;;  %v592_v25 = vmul.f32 0.7978846, %v576_v19 }
 0x223   :  { %v1074_v31 = vpop.eup %1073  ;;  %v559_v34 = vmul.f32 %v543_v16, %v1552_v20  ;;  %v530_v54 = vmul.f32 0.044715, %v1567_v40  ;;  %v1575_v39 = vadd.f32 %v980_v27, %v1479_v51  ;;  %v577_v47 = vadd.f32 %v561_v60, %v1544_v49 }
 0x224   :  { %v1076_v0 = vpop.eup %1075  ;;  %v490_v45 = vpop.f32.mrf.mxu0  ;;  %v590_v42 = vmul.f32 0.7978846, %v574_v29  ;;  %v548_v55 = vmul.f32 %v532_v21, %v1559_v9  ;;  %v614_v58 = vadd.f32 1.0, %v1074_v31  ;;  %v632_v21 = vmul.f32 %v616_v17, %v504_v10 }
 0x225   :  { %v546_v2 = vmul.f32 %v530_v54, %v1567_v40  ;;  %v533_v18 = vmul.f32 0.044715, %v1575_v39  ;;  %v1583_v57 = vadd.f32 %v1479_v51, %v490_v45  ;;  %v617_v61 = vadd.f32 1.0, %v1076_v0 }
 0x226   :  { %v575_v46 = vadd.f32 %v559_v34, %v1552_v20  ;;  %1087 = vtanh.f32 %v590_v42  ;;  %v593_v38 = vmul.f32 0.7978846, %v577_v47  ;;  %v564_v51 = vmul.f32 %v548_v55, %v1559_v9 }
 0x227   :  { %v1078_v63 = vpop.eup %1077  ;;  %v562_v28 = vmul.f32 %v546_v2, %v1567_v40  ;;  %v549_v4 = vmul.f32 %v533_v18, %v1575_v39  ;;  %v531_v33 = vmul.f32 0.044715, %v1583_v57  ;;  %v633_v7 = vmul.f32 %v617_v61, %v505_v24 }
 0x228   :  { %v615_v6 = vadd.f32 1.0, %v1078_v63  ;;  %v591_v36 = vmul.f32 0.7978846, %v575_v46  ;;  %1089 = vtanh.f32 %v592_v25  ;;  %v630_v60 = vmul.f32 %v614_v58, %v502_v30 }
 0x229   :  { %v1080_v48 = vpop.eup %1079  ;;  %v565_v19 = vmul.f32 %v549_v4, %v1575_v39  ;;  %v547_v52 = vmul.f32 %v531_v33, %v1583_v57  ;;  %1091 = vtanh.f32 %v593_v38  ;;  %v578_v31 = vadd.f32 %v562_v28, %v1567_v40 }
 0x22a   :  { %v631_v16 = vmul.f32 %v615_v6, %v503_v43  ;;  %1093 = vtanh.f32 %v591_v36  ;;  %v647_v34 = vpack.c.bf16 %v633_v7, %v632_v21  ;;  %v580_v42 = vadd.f32 %v564_v51, %v1559_v9 }
 0x22b   :  { %v1082_v27 = vpop.eup %1081  ;;  %v563_v29 = vmul.f32 %v547_v52, %v1583_v57  ;;  %v594_v45 = vmul.f32 0.7978846, %v578_v31  ;;  %v581_v47 = vadd.f32 %v565_v19, %v1575_v39  ;;  %v509_v10 = vmul.f32 0.5, %v1518_v8 }
 0x22c   :  { %v646_v24 = vpack.c.bf16 %v631_v16, %v630_v60  ;;  %v618_v30 = vadd.f32 1.0, %v1082_v27  ;;  %v620_v43 = vadd.f32 1.0, %v1080_v48  ;;  %v596_v2 = vmul.f32 0.7978846, %v580_v42 }
 0x22d   :  { %v1084_v54 = vpop.eup %1083  ;;  %v579_v0 = vadd.f32 %v563_v29, %v1583_v57  ;;  %1095 = vtanh.f32 %v594_v45  ;;  %v597_v18 = vmul.f32 0.7978846, %v581_v47  ;;  %v506_v58 = vmul.f32 0.5, %v1509_v1 }
 0x22e   :  { %997 = vmatprep.mubr.bf16.mxu0 %v646_v24  ;;  %v621_v17 = vadd.f32 1.0, %v1084_v54  ;;  %v507_v61 = vmul.f32 0.5, %v1522_v13  ;;  %v508_v63 = vmul.f32 0.5, %v1503_v56  ;;  %v513_v13 = vmul.f32 0.5, %v1544_v49 }
 0x22f   :  { %v1086_v25 = vpop.eup %1085  ;;  %998 = vmatmul.mubr.bf16.vlgmr.msra.gmra.mxu0 %v647_v34  ;;  %v595_v55 = vmul.f32 0.7978846, %v579_v0  ;;  %v634_v4 = vmul.f32 %v618_v30, %v506_v58  ;;  %v510_v52 = vmul.f32 0.5, %v1536_v37  ;;  %v511_v60 = vmul.f32 0.5, %v1552_v20 }
 0x230   :  { %v619_v46 = vadd.f32 1.0, %v1086_v25  ;;  %v637_v28 = vmul.f32 %v621_v17, %v509_v10  ;;  %v636_v38 = vmul.f32 %v620_v43, %v508_v63  ;;  %v512_v21 = vmul.f32 0.5, %v1529_v22 }
 0x231   :  { %1097 = vtanh.f32 %v595_v55  ;;  %v514_v47 = vmul.f32 0.5, %v1567_v40  ;;  %v515_v37 = vmul.f32 0.5, %v1583_v57  ;;  %v516_v22 = vmul.f32 0.5, %v1559_v9  ;;  %v1612_v40 = vld [vmem:[%s1717_s7] ss:$0 sm:$0xff] }
 0x232   :  { %v635_v33 = vmul.f32 %v619_v46, %v507_v61  ;;  %1099 = vtanh.f32 %v596_v2  ;;  %v649_v36 = vpack.c.bf16 %v637_v28, %v636_v38  ;;  %v517_v25 = vmul.f32 0.5, %v1575_v39 }
 0x233   :  { %v1088_v8 = vpop.eup %1087  ;;  %1101 = vtanh.f32 %v597_v18 }
 0x234   :  { %v648_v6 = vpack.c.bf16 %v635_v33, %v634_v4  ;;  %v622_v51 = vadd.f32 1.0, %v1088_v8 }
 0x235   :  { %v1090_v7 = vpop.eup %1089 }
 0x236   :  { %v1092_v48 = vpop.eup %1091  ;;  %1001 = vmatprep.mubr.bf16.mxu1 %v648_v6  ;;  %v624_v19 = vadd.f32 1.0, %v1090_v7  ;;  %v638_v29 = vmul.f32 %v622_v51, %v510_v52 }
 0x237   :  { %v1094_v1 = vpop.eup %1093  ;;  %1002 = vmatmul.mubr.bf16.vlgmr.msra.gmra.mxu1 %v649_v36  ;;  %v625_v56 = vadd.f32 1.0, %v1092_v48 }
 0x238   :  { %v623_v16 = vadd.f32 1.0, %v1094_v1  ;;  %v640_v24 = vmul.f32 %v624_v19, %v512_v21 }
 0x239   :  { %v641_v27 = vmul.f32 %v625_v56, %v513_v13 }
 0x23a   :  { %v639_v31 = vmul.f32 %v623_v16, %v511_v60  ;;  %v1096_v34 = vpop.eup %1095 }
 0x23b   :  { %v651_v0 = vpack.c.bf16 %v641_v27, %v640_v24  ;;  %v626_v45 = vadd.f32 1.0, %v1096_v34 }
 0x23c   :  { %v650_v54 = vpack.c.bf16 %v639_v31, %v638_v29 }
 0x23d   :  { %v642_v43 = vmul.f32 %v626_v45, %v514_v47 }
 0x23e   :  { %v1098_v42 = vpop.eup %1097  ;;  %1005 = vmatprep.mubr.bf16.mxu1 %v650_v54 }
 0x23f   :  { %v1100_v49 = vpop.eup %1099  ;;  %1006 = vmatmul.mubr.bf16.gmra.mxu1 %v651_v0  ;;  %v627_v20 = vadd.f32 1.0, %v1098_v42 }
 0x240   :  { %v1102_v30 = vpop.eup %1101  ;;  %v628_v10 = vadd.f32 1.0, %v1100_v49 }
 0x241   :  { %v643_v17 = vmul.f32 %v627_v20, %v515_v37  ;;  %v629_v55 = vadd.f32 1.0, %v1102_v30 }
 0x242   :  { %v644_v18 = vmul.f32 %v628_v10, %v516_v22 }
 0x243   :  { %v652_v2 = vpack.c.bf16 %v643_v17, %v642_v43  ;;  %v645_v58 = vmul.f32 %v629_v55, %v517_v25 }
 0x245   :  { %1009 = vmatprep.mubr.bf16.mxu1 %v652_v2  ;;  %v653_v61 = vpack.c.bf16 %v645_v58, %v644_v18 }
 0x247   :  { %1010 = vmatmul.mubr.bf16.gmra.mxu1 %v653_v61 }
 0x2ef   :  { %v999_v46 = vpop.f32.mrf.mxu0 }
 0x2f0   :  { %v817_v9 = vadd.f32 %v999_v46, %v1173_v14 }
 0x2f1   :  { %v752_v57 = vpop.f32.mrf.mxu0 }
 0x2f2   :  { %v840_v63 = vadd.f32 %v1612_v40, %v817_v9  ;;  %v815_v39 = vadd.f32 %v752_v57, %v1169_v11 }
 0x2f3   :  { %v1000_v28 = vpop.f32.mrf.mxu0 }
 0x2f4   :  { %856 = vst.msk [vmem:[%s1718_s8 + $0x10] sm:$0xff] %vm94_vm0, %v840_v63  ;;  %v838_v4 = vadd.f32 %v1612_v40, %v815_v39  ;;  %v818_v33 = vadd.f32 %v1000_v28, %v1175_v15 }
 0x2f5   :  { %v755_v8 = vpop.f32.mrf.mxu0 }
 0x2f6   :  { %854 = vst.msk [vmem:[%s1718_s8] sm:$0xff] %vm94_vm0, %v838_v4  ;;  %v841_v14 = vadd.f32 %v1612_v40, %v818_v33  ;;  %v816_v11 = vadd.f32 %v755_v8, %v1171_v12 }
 0x2f7   :  { %v1003_v38 = vpop.f32.mrf.mxu1 }
 0x2f8   :  { %857 = vst.msk [vmem:[%s1718_s8 + $0x18] sm:$0xff] %vm94_vm0, %v841_v14  ;;  %v839_v6 = vadd.f32 %v1612_v40, %v816_v11  ;;  %v821_v15 = vadd.f32 %v1003_v38, %v1209_v32 }
 0x2f9   :  { %v768_v7 = vpop.f32.mrf.mxu1 }
 0x2fa   :  { %855 = vst.msk [vmem:[%s1718_s8 + $0x8] sm:$0xff] %vm94_vm0, %v839_v6  ;;  %v844_v36 = vadd.f32 %v1612_v40, %v821_v15  ;;  %v819_v12 = vadd.f32 %v768_v7, %v1192_v23 }
 0x2fb   :  { %v1004_v48 = vpop.f32.mrf.mxu1 }
 0x2fc   :  { %860 = vst.msk [vmem:[%s1718_s8 + $0x30] sm:$0xff] %vm94_vm0, %v844_v36  ;;  %v842_v51 = vadd.f32 %v1612_v40, %v819_v12  ;;  %v822_v32 = vadd.f32 %v1004_v48, %v1213_v35 }
 0x2fd   :  { %v771_v1 = vpop.f32.mrf.mxu1 }
 0x2fe   :  { %858 = vst.msk [vmem:[%s1718_s8 + $0x20] sm:$0xff] %vm94_vm0, %v842_v51  ;;  %v845_v13 = vadd.f32 %v1612_v40, %v822_v32  ;;  %v820_v23 = vadd.f32 %v771_v1, %v1196_v26 }
 0x2ff   :  { %v1007_v19 = vpop.f32.mrf.mxu1 }
 0x300   :  { %861 = vst.msk [vmem:[%s1718_s8 + $0x38] sm:$0xff] %vm94_vm0, %v845_v13  ;;  %v843_v56 = vadd.f32 %v1612_v40, %v820_v23  ;;  %v825_v35 = vadd.f32 %v1007_v19, %v1243_v50 }
 0x301   :  { %v784_v52 = vpop.f32.mrf.mxu1 }
 0x302   :  { %859 = vst.msk [vmem:[%s1718_s8 + $0x28] sm:$0xff] %vm94_vm0, %v843_v56  ;;  %v848_v60 = vadd.f32 %v1612_v40, %v825_v35  ;;  %v823_v26 = vadd.f32 %v784_v52, %v1226_v41 }
 0x303   :  { %v1008_v16 = vpop.f32.mrf.mxu1 }
 0x304   :  { %864 = vst.msk [vmem:[%s1718_s8 + $0x50] sm:$0xff] %vm94_vm0, %v848_v60  ;;  %v846_v21 = vadd.f32 %v1612_v40, %v823_v26  ;;  %v826_v50 = vadd.f32 %v1008_v16, %v1247_v53 }
 0x305   :  { %v787_v27 = vpop.f32.mrf.mxu1 }
 0x306   :  { %862 = vst.msk [vmem:[%s1718_s8 + $0x40] sm:$0xff] %vm94_vm0, %v846_v21  ;;  %v849_v29 = vadd.f32 %v1612_v40, %v826_v50  ;;  %v824_v41 = vadd.f32 %v787_v27, %v1230_v44 }
 0x307   :  { %v1011_v31 = vpop.f32.mrf.mxu1 }
 0x308   :  { %865 = vst.msk [vmem:[%s1718_s8 + $0x58] sm:$0xff] %vm94_vm0, %v849_v29  ;;  %v847_v24 = vadd.f32 %v1612_v40, %v824_v41  ;;  %v829_v53 = vadd.f32 %v1011_v31, %v1274_v3 }
 0x309   :  { %v800_v34 = vpop.f32.mrf.mxu1 }
 0x30a   :  { %863 = vst.msk [vmem:[%s1718_s8 + $0x48] sm:$0xff] %vm94_vm0, %v847_v24  ;;  %v852_v54 = vadd.f32 %v1612_v40, %v829_v53  ;;  %v827_v44 = vadd.f32 %v800_v34, %v1260_v59 }
 0x30b   :  { %v1012_v0 = vpop.f32.mrf.mxu1 }
 0x30c   :  { %868 = vst.msk [vmem:[%s1718_s8 + $0x70] sm:$0xff] %vm94_vm0, %v852_v54  ;;  %v850_v45 = vadd.f32 %v1612_v40, %v827_v44  ;;  %v830_v3 = vadd.f32 %v1012_v0, %v1278_v5 }
 0x30d   :  { %v803_v42 = vpop.f32.mrf.mxu1 }
 0x30e   :  { %866 = vst.msk [vmem:[%s1718_s8 + $0x60] sm:$0xff] %vm94_vm0, %v850_v45  ;;  %v853_v49 = vadd.f32 %v1612_v40, %v830_v3  ;;  %v828_v59 = vadd.f32 %v803_v42, %v1264_v62 }
 0x310   :  { %869 = vst.msk [vmem:[%s1718_s8 + $0x78] sm:$0xff] %vm94_vm0, %v853_v49  ;;  %v851_v47 = vadd.f32 %v1612_v40, %v828_v59 }
 0x312   :  { %867 = vst.msk [vmem:[%s1718_s8 + $0x68] sm:$0xff] %vm94_vm0, %v851_v47 }

// kernel: _lambda_.10
= control target key start
LH: loop header
LB: loop body
LE: loop exit
PB: predicated region body
PF: predicated region fallthrough
CT: control target
= control target key end

     0   :  { %s1352_s18 = smov 0   ;;  %s1354_s19 = smov 0   ;;  %s1528_s0 = inlined_call_operand.vmem [shape: bf16[2,4,16,96], index: 0, kind: input, shape index: {}]   ;;  %s1529_s1 = inlined_call_operand.vmem [shape: f32[4,16,16], index: 1, kind: input, shape index: {}]   ;;  %s1530_s2 = inlined_call_operand.vmem [shape: f32[4,16,16], index: 2, kind: input, shape index: {}]   ;;  %s1531_s3 = inlined_call_operand.vmem [shape: bf16[32,32], index: 3, kind: input, shape index: {}]   ;;  %s1532_s4 = inlined_call_operand.vmem [shape: f32[1,32], index: 4, kind: input, shape index: {}]   ;;  %s1533_s5 = inlined_call_operand.vmem [shape: bf16[2,4,16,32], index: 5, kind: output, shape index: {}]  }
   0x1   :  { %s1356_s20 = smov 0   ;;  %s1358_s21 = smov 0  }
   0x2   :  { %s1360_s22 = smov 0  }
   0x3 LB: > { %s24_s23 = sadd.s32 1, %s1296_s20  ;;  %s27_s24 = sadd.s32 1, %s1300_s21  ;;  %s1304_s22 = sphi %s1360_s22, %s15_s22   ;;  %s1300_s21 = sphi %s1358_s21, %s1537_s21   ;;  %s1296_s20 = sphi %s1356_s20, %s1536_s20   ;;  %s1292_s19 = sphi %s1354_s19, %s1535_s19   ;;  %s1288_s18 = sphi %s1352_s18, %s1534_s18  }
   0x4   : > { %p25_p0 = scmp.ge.s32.totalorder %s24_s23, 4  ;;  %p1047_p1 = scmp.ge.s32.totalorder %s1304_s22, 1 }
   0x5   : > { %p217_p2 = scmp.lt.s32.totalorder %s1304_s22, 9 }
   0x6   : > { %s1539_s23 = smov (%p25_p0, %s24_s23), 0  ;;  %s1541_s24 = smov (!%p25_p0, %s27_s24), %s1300_s21 }
   0x7   : > { %p218_p3 = pnand %p1047_p1, %p217_p2  ;;  %p29_p4 = scmp.ge.s32.totalorder %s1541_s24, 2 }
   0x8   : > { %p258_p5 = scmp.lt.s32.totalorder (!%p218_p3), %s1292_s19, 1  ;;  %p260_p6 = scmp.lt.s32.totalorder (!%p218_p3), %s1288_s18, 3 }
   0x9   : > { %s1543_s24 = smov (%p29_p4, %s1541_s24), 0  ;;  %221 = sbr.rel (%p218_p3) target bundleno = 1721 (0x6b9), region = 40 }
   0xa   : > { %s1308_s7 = smov (!%p218_p3), 96   ;;  %s1309_s16 = smov (!%p218_p3), 64  }
   0xb   : > { %s1310_s17 = smov (!%p218_p3), 80   ;;  %s1315_s29 = smov (!%p218_p3), 104  }
   0xc   : > { %s1320_s30 = smov (!%p218_p3), 16  }
   0xe   : > { %v1306_v0 = vmov 0.0   ;;  %vm1307_vm0 = vmmov 0   ;;  %s1545_s19 = smov (!%p258_p5, %s1292_s19), 1  ;;  %s1547_s18 = smov (!%p260_p6, %s1288_s18), 3  ;;  %vm295_vm1 = vcmask 64512   ;;  %v286_v4 = vld [vmem:[%s1529_s1] sm:$0xff] }
   0xf   : > { %1118 = vmatprep.subr.bf16.mxu0 %v1306_v0  ;;  %1120 = vmatprep.mubr.msk.bf16.mxu0 %vm1307_vm0, %v1306_v0  ;;  %s1049_s25 = sshll.u32 %s1545_s19, 3  ;;  %s1048_s26 = sshll.u32 %s1547_s18, 1  ;;  %v287_v9 = vld [vmem:[%s1529_s1 + $0x8] sm:$0xff]  ;;  %vm345_vm2 = vcmask 130048   ;;  %vm424_vm3 = vcmask 60416   ;;  %v1061_v51 = vld [vmem:[%s1529_s1 + $0x10] sm:$0xff] }
  0x10   : > { %1124 = vmatprep.subr.bf16.mxu1 %v1306_v0  ;;  %1126 = vmatprep.mubr.msk.bf16.mxu1 %vm1307_vm0, %v1306_v0  ;;  %s1388_s27 = sadd.s32 %s1049_s25, %s1048_s26  ;;  %s1088_s8 = sshll.u32 %s1547_s18, 4  ;;  %v1062_v55 = vld [vmem:[%s1529_s1 + $0x18] sm:$0xff]  ;;  %v1067_v61 = vld [vmem:[%s1529_s1 + $0x20] sm:$0xff]  ;;  %vm565_vm4 = vcmask 126016   ;;  %vm706_vm5 = vcmask 191616   ;;  %vm847_vm6 = vcmask 257216  }
  0x11   : > { %s1050_s28 = sshll.u32 %s1388_s27, 2  ;;  %s271_s11 = scalar_lea.vmem %s1530_s2, %s1088_s8  ;;  %vm880_vm7 = vcmask 261120   ;;  %vm933_vm8 = vcmask 257024  }
  0x12   : > { %s266_s6 = scalar_lea.vmem %s1528_s0, %s1050_s28  ;;  %v1411_v6 = vld [vmem:[%s271_s11] sm:$0xff]  ;;  %v1417_v12 = vld [vmem:[%s271_s11 + $0x8] sm:$0xff]  ;;  %s1311_s18 = smov 88  }
  0x13   : > { %v1396_v1 = vld [vmem:[%s266_s6] sm:$0xff]   ;;  %s1312_s19 = smov 120   ;;  %s1313_s25 = smov 112  }
  0x14   : > { %293 = vrot.lane.b32.xlu0 %v1396_v1, %s1308_s7  ;;  %s1314_s26 = smov 72   ;;  %s1321_s8 = smov 24  }
  0x15   : > { %s280_s13 = scalar_lea.vmem %s1533_s5, %s1050_s28 }
  0x86   : > { %v294_v2 = vpop.permute.xlu0 %293 }
  0x87   : > { %v300_v3 = vsel %vm295_vm1, %v294_v2, 0 }
  0x88   : > { %1119 = vmatpush3.bf16.xpose.msra.mxu0 %v300_v3 }
  0x89   : > { %1136 = vmatprep.subr.bf16.mxu0 %v1306_v0 }
  0x8f   : > { %1121 = vmatmul.mubr.msk.bf16.vlgmr.msra.gmra.mxu0 %vm295_vm1, %v1396_v1 }
  0x90   : > { %1138 = vmatprep.mubr.msk.bf16.mxu0 %vm1307_vm0, %v1306_v0 }
 0x14f   : > { %v336_v5 = vpop.f32.mrf.mxu0 }
 0x150   : > { %v337_v7 = vadd.f32 %v336_v5, %v286_v4  ;;  %v1068_v5 = vld [vmem:[%s1529_s1 + $0x28] sm:$0xff] }
 0x151   : > { %v1122_v8 = vpop.f32.mrf.mxu0 }
 0x152   : > { %v343_v10 = vadd.f32 %v337_v7, %v1411_v6 }
 0x153   : > { %v339_v11 = vpop.f32.mrf.mxu0 }
 0x154   : > { %v340_v13 = vadd.f32 %v339_v11, %v287_v9  ;;  %v346_v14 = vsel %vm345_vm2, %v343_v10, -inf }
 0x155   : > { %347 = vmax.xlane.f32.xlu0 %v346_v14  ;;  %v1123_v15 = vpop.f32.mrf.mxu0 }
 0x156   : > { %v344_v16 = vadd.f32 %v340_v13, %v1417_v12  ;;  %v1073_v13 = vld [vmem:[%s1529_s1 + $0x30] sm:$0xff] }
 0x158   : > { %v349_v17 = vsel %vm345_vm2, %v344_v16, -inf }
 0x159   : > { %350 = vmax.xlane.f32.xlu1 %v349_v17 }
 0x16a   : > { %369 = vrot.lane.b32.xlu1 %v1396_v1, %s1309_s16 }
 0x16b   : > { %573 = vrot.lane.b32.xlu0 %v1396_v1, %s1310_s17  ;;  %s1316_s17 = smov 56  }
 0x1de   : > { %v348_v18 = vpop.xlane.xlu0 %347 }
 0x1df   : > { %v352_v19 = vsub.f32 %v343_v10, %v348_v18 }
 0x1e1   : > { %v354_v20 = vmul.f32 1.442695, %v352_v19  ;;  %v1074_v19 = vld [vmem:[%s1529_s1 + $0x38] sm:$0xff] }
 0x1e2   : > { %v351_v21 = vpop.xlane.xlu1 %350  ;;  %v574_v39 = vpop.permute.xlu0 %573 }
 0x1e3   : > { %1234 = vpow2.f32 %v354_v20  ;;  %v353_v22 = vsub.f32 %v344_v16, %v351_v21  ;;  %v579_v41 = vsel %vm295_vm1, %v574_v39, 0 }
 0x1e5   : > { %v356_v23 = vmul.f32 1.442695, %v353_v22 }
 0x1e6   : > { %v370_v24 = vpop.permute.xlu1 %369 }
 0x1e7   : > { %1236 = vpow2.f32 %v356_v23  ;;  %1125 = vmatpush3.bf16.msra.mxu1 %v370_v24 }
 0x1e8   : > { %1130 = vmatprep.subr.bf16.mxu1 %v1306_v0 }
 0x1f0   : > { %v1235_v25 = vpop.eup %1234 }
 0x1f1   : > { %v358_v26 = vsel %vm345_vm2, %v1235_v25, 0.0 }
 0x1f2   : > { %359 = vadd.xlane.f32.xlu1 %v358_v26 }
 0x1f4   : > { %v1237_v27 = vpop.eup %1236 }
 0x1f5   : > { %v361_v28 = vsel %vm345_vm2, %v1237_v27, 0.0 }
 0x1f6   : > { %362 = vadd.xlane.f32.xlu1 %v361_v28 }
 0x207   : > { %432 = vrot.lane.b32.xlu1 %v1396_v1, %s1311_s18  ;;  %s1317_s18 = smov 40  }
 0x20b   : > { %430 = vrot.lane.b32.xlu1 %v1396_v1, %s1312_s19  ;;  %s1318_s19 = smov 48  }
 0x20f   : > { %571 = vrot.lane.b32.xlu1 %v1396_v1, %s1313_s25  ;;  %s1319_s25 = smov 8  }
 0x213   : > { %714 = vrot.lane.b32.xlu1 %v1396_v1, %s1314_s26 }
 0x217   : > { %712 = vrot.lane.b32.xlu1 %v1396_v1, %s1315_s29 }
 0x27b   : > { %v360_v29 = vpop.xlane.xlu1 %359 }
 0x27c   : > { %1238 = vrcp.f32 %v360_v29 }
 0x27f   : > { %v363_v30 = vpop.xlane.xlu1 %362 }
 0x280   : > { %1240 = vrcp.f32 %v363_v30 }
 0x283   : > { %v433_v33 = vpop.permute.xlu1 %432 }
 0x284   : > { %v438_v36 = vsel %vm295_vm1, %v433_v33, 0 }
 0x287   : > { %v431_v38 = vpop.permute.xlu1 %430 }
 0x289   : > { %v1239_v31 = vpop.eup %1238 }
 0x28a   : > { %v366_v34 = vmul.f32 %v1239_v31, %v1235_v25 }
 0x28b   : > { %v572_v40 = vpop.permute.xlu1 %571 }
 0x28d   : > { %v1241_v32 = vpop.eup %1240 }
 0x28e   : > { %v367_v35 = vmul.f32 %v1241_v32, %v1237_v27 }
 0x28f   : > { %v715_v42 = vpop.permute.xlu1 %714 }
 0x290   : > { %v368_v37 = vpack.c.bf16 %v367_v35, %v366_v34  ;;  %v720_v43 = vsel %vm295_vm1, %v715_v42, 0 }
 0x292   : > { %1127 = vmatmul.mubr.msk.bf16.vlgmr.msra.gmra.mxu1 %vm345_vm2, %v368_v37 }
 0x293   : > { %1131 = vmatpush3.bf16.xpose.msra.mxu1 %v438_v36  ;;  %1132 = vmatprep.mubr.msk.bf16.mxu1 %vm1307_vm0, %v1306_v0  ;;  %v713_v44 = vpop.permute.xlu1 %712 }
 0x294   : > { %1142 = vmatprep.subr.bf16.mxu1 %v1306_v0 }
 0x29a   : > { %1133 = vmatmul.mubr.msk.bf16.vlgmr.msra.gmra.mxu1 %vm295_vm1, %v431_v38 }
 0x29b   : > { %1143 = vmatpush3.bf16.xpose.msra.mxu1 %v579_v41  ;;  %1144 = vmatprep.mubr.msk.bf16.mxu1 %vm1307_vm0, %v1306_v0 }
 0x29c   : > { %1154 = vmatprep.subr.bf16.mxu1 %v1306_v0 }
 0x2a2   : > { %1145 = vmatmul.mubr.msk.bf16.vlgmr.msra.gmra.mxu1 %vm295_vm1, %v572_v40 }
 0x2a3   : > { %1155 = vmatpush3.bf16.xpose.msra.mxu1 %v720_v43  ;;  %1156 = vmatprep.mubr.msk.bf16.mxu1 %vm1307_vm0, %v1306_v0 }
 0x2a4   : > { %1166 = vmatprep.subr.bf16.mxu1 %v1306_v0 }
 0x2aa   : > { %1157 = vmatmul.mubr.msk.bf16.vlgmr.msra.gmra.mxu1 %vm295_vm1, %v713_v44 }
 0x2ab   : > { %1170 = vmatprep.mubr.msk.bf16.mxu1 %vm1307_vm0, %v1306_v0 }
 0x352   : > { %v409_v45 = vpop.f32.mrf.mxu1 }
 0x353   : > { %v1089_v46 = vpack.c.bf16 %v409_v45, %v409_v45 }
 0x354   : > { %v1128_v47 = vpop.f32.mrf.mxu1 }
 0x355   : > { %425 = vst.msk [vmem:[#allocation2] sm:$0xf] %vm424_vm3, %v1089_v46 }
 0x356   : > { %v412_v48 = vpop.f32.mrf.mxu1 }
 0x357   : > { %v1090_v49 = vpack.c.bf16 %v412_v48, %v412_v48 }
 0x358   : > { %v1129_v50 = vpop.f32.mrf.mxu1 }
 0x359   : > { %426 = vst.msk [vmem:[#allocation2 + $0x4] sm:$0xf] %vm424_vm3, %v1090_v49 }
 0x35a   : > { %v474_v52 = vpop.f32.mrf.mxu1 }
 0x35b   : > { %v475_v53 = vadd.f32 %v1061_v51, %v474_v52 }
 0x35c   : > { %v1134_v54 = vpop.f32.mrf.mxu1 }
 0x35d   : > { %v481_v56 = vadd.f32 %v475_v53, %v1411_v6 }
 0x35e   : > { %v477_v57 = vpop.f32.mrf.mxu1 }
 0x35f   : > { %v478_v58 = vadd.f32 %v1062_v55, %v477_v57  ;;  %v483_v59 = vsel %vm345_vm2, %v481_v56, -inf }
 0x360   : > { %484 = vmax.xlane.f32.xlu1 %v483_v59  ;;  %v1135_v60 = vpop.f32.mrf.mxu1 }
 0x361   : > { %v482_v62 = vadd.f32 %v478_v58, %v1417_v12 }
 0x362   : > { %v615_v63 = vpop.f32.mrf.mxu1 }
 0x363   : > { %v616_v2 = vadd.f32 %v1067_v61, %v615_v63  ;;  %v486_v3 = vsel %vm345_vm2, %v482_v62, -inf }
 0x364   : > { %487 = vmax.xlane.f32.xlu0 %v486_v3  ;;  %v1146_v4 = vpop.f32.mrf.mxu1 }
 0x365   : > { %v622_v7 = vadd.f32 %v616_v2, %v1411_v6 }
 0x366   : > { %v618_v8 = vpop.f32.mrf.mxu1 }
 0x367   : > { %v619_v9 = vadd.f32 %v1068_v5, %v618_v8  ;;  %v624_v10 = vsel %vm345_vm2, %v622_v7, -inf }
 0x368   : > { %625 = vmax.xlane.f32.xlu1 %v624_v10  ;;  %v1147_v11 = vpop.f32.mrf.mxu1 }
 0x369   : > { %v623_v14 = vadd.f32 %v619_v9, %v1417_v12 }
 0x36a   : > { %v756_v15 = vpop.f32.mrf.mxu1 }
 0x36b   : > { %v757_v16 = vadd.f32 %v1073_v13, %v756_v15  ;;  %v627_v17 = vsel %vm345_vm2, %v623_v14, -inf }
 0x36c   : > { %628 = vmax.xlane.f32.xlu0 %v627_v17  ;;  %v1158_v18 = vpop.f32.mrf.mxu1 }
 0x36d   : > { %v763_v20 = vadd.f32 %v757_v16, %v1411_v6 }
 0x36e   : > { %v759_v21 = vpop.f32.mrf.mxu1 }
 0x36f   : > { %v760_v22 = vadd.f32 %v1074_v19, %v759_v21  ;;  %v765_v23 = vsel %vm345_vm2, %v763_v20, -inf }
 0x370   : > { %766 = vmax.xlane.f32.xlu1 %v765_v23  ;;  %v1159_v24 = vpop.f32.mrf.mxu1 }
 0x371   : > { %v764_v25 = vadd.f32 %v760_v22, %v1417_v12 }
 0x373   : > { %v768_v26 = vsel %vm345_vm2, %v764_v25, -inf }
 0x374   : > { %769 = vmax.xlane.f32.xlu0 %v768_v26 }
 0x381   : > { %506 = vrot.lane.b32.xlu1 %v1396_v1, %s1316_s17 }
 0x3e9   : > { %v485_v27 = vpop.xlane.xlu1 %484 }
 0x3ea   : > { %v489_v28 = vsub.f32 %v481_v56, %v485_v27  ;;  %v1231_v27 = vld [vmem:[%s1531_s3 + $0x8] sm:$0xff]  }
 0x3eb   : > { %1167 = vmatpush3.bf16.msra.mxu1 %v1231_v27 }
 0x3ec   : > { %v491_v29 = vmul.f32 1.442695, %v489_v28  ;;  %1168 = vmatprep.subr.bf16.mxu1 %v1306_v0 }
 0x3ed   : > { %v488_v30 = vpop.xlane.xlu0 %487 }
 0x3ee   : > { %1242 = vpow2.f32 %v491_v29  ;;  %v490_v6 = vsub.f32 %v482_v62, %v488_v30  ;;  %v1232_v29 = vld [vmem:[%s1531_s3] sm:$0xff]  }
 0x3ef   : > { %1169 = vmatpush3.bf16.msra.mxu1 %v1232_v29 }
 0x3f0   : > { %v493_v31 = vmul.f32 1.442695, %v490_v6 }
 0x3f1   : > { %v626_v32 = vpop.xlane.xlu1 %625 }
 0x3f2   : > { %1244 = vpow2.f32 %v493_v31  ;;  %v630_v33 = vsub.f32 %v622_v7, %v626_v32 }
 0x3f4   : > { %v632_v34 = vmul.f32 1.442695, %v630_v33 }
 0x3f5   : > { %v629_v35 = vpop.xlane.xlu0 %628 }
 0x3f6   : > { %1246 = vpow2.f32 %v632_v34  ;;  %v631_v12 = vsub.f32 %v623_v14, %v629_v35 }
 0x3f8   : > { %v634_v36 = vmul.f32 1.442695, %v631_v12 }
 0x3f9   : > { %v767_v37 = vpop.xlane.xlu1 %766 }
 0x3fa   : > { %1248 = vpow2.f32 %v634_v36  ;;  %v771_v38 = vsub.f32 %v763_v20, %v767_v37 }
 0x3fb   : > { %v1243_v39 = vpop.eup %1242 }
 0x3fc   : > { %v773_v40 = vmul.f32 1.442695, %v771_v38  ;;  %v495_v41 = vsel %vm345_vm2, %v1243_v39, 0.0 }
 0x3fd   : > { %v770_v42 = vpop.xlane.xlu0 %769  ;;  %496 = vadd.xlane.f32.xlu1 %v495_v41  ;;  %v507_v43 = vpop.permute.xlu1 %506 }
 0x3fe   : > { %1250 = vpow2.f32 %v773_v40  ;;  %v772_v44 = vsub.f32 %v764_v25, %v770_v42  ;;  %1137 = vmatpush3.bf16.msra.mxu0 %v507_v43  ;;  %v1079_v42 = vld [vmem:[%s1532_s4] ss:$0 sm:$0xff] }
 0x3ff   : > { %v1245_v45 = vpop.eup %1244  ;;  %1148 = vmatprep.subr.bf16.mxu0 %v1306_v0 }
 0x400   : > { %v775_v46 = vmul.f32 1.442695, %v772_v44  ;;  %v498_v47 = vsel %vm345_vm2, %v1245_v45, 0.0 }
 0x401   : > { %499 = vadd.xlane.f32.xlu0 %v498_v47 }
 0x402   : > { %1252 = vpow2.f32 %v775_v46 }
 0x403   : > { %v1247_v48 = vpop.eup %1246 }
 0x404   : > { %v636_v49 = vsel %vm345_vm2, %v1247_v48, 0.0 }
 0x405   : > { %637 = vadd.xlane.f32.xlu1 %v636_v49 }
 0x407   : > { %v1249_v50 = vpop.eup %1248 }
 0x408   : > { %v639_v51 = vsel %vm345_vm2, %v1249_v50, 0.0 }
 0x409   : > { %640 = vadd.xlane.f32.xlu0 %v639_v51 }
 0x40b   : > { %v1251_v52 = vpop.eup %1250 }
 0x40c   : > { %v777_v53 = vsel %vm345_vm2, %v1251_v52, 0.0 }
 0x40d   : > { %778 = vadd.xlane.f32.xlu1 %v777_v53 }
 0x40f   : > { %v1253_v54 = vpop.eup %1252 }
 0x410   : > { %v780_v55 = vsel %vm345_vm2, %v1253_v54, 0.0 }
 0x411   : > { %781 = vadd.xlane.f32.xlu0 %v780_v55 }
 0x41e   : > { %788 = vrot.lane.b32.xlu1 %v1396_v1, %s1317_s18 }
 0x427   : > { %647 = vrot.lane.b32.xlu0 %v1396_v1, %s1318_s19 }
 0x486   : > { %v497_v56 = vpop.xlane.xlu1 %496 }
 0x487   : > { %1254 = vrcp.f32 %v497_v56 }
 0x48a   : > { %v500_v57 = vpop.xlane.xlu0 %499 }
 0x48b   : > { %1256 = vrcp.f32 %v500_v57 }
 0x48e   : > { %v638_v58 = vpop.xlane.xlu1 %637 }
 0x48f   : > { %1258 = vrcp.f32 %v638_v58 }
 0x492   : > { %v641_v59 = vpop.xlane.xlu0 %640 }
 0x493   : > { %1260 = vrcp.f32 %v641_v59 }
 0x494   : > { %v1255_v60 = vpop.eup %1254 }
 0x495   : > { %v503_v63 = vmul.f32 %v1255_v60, %v1243_v39 }
 0x496   : > { %v779_v61 = vpop.xlane.xlu1 %778 }
 0x497   : > { %1262 = vrcp.f32 %v779_v61 }
 0x498   : > { %v1257_v62 = vpop.eup %1256 }
 0x499   : > { %v504_v2 = vmul.f32 %v1257_v62, %v1245_v45 }
 0x49a   : > { %v782_v3 = vpop.xlane.xlu0 %781  ;;  %v789_v11 = vpop.permute.xlu1 %788 }
 0x49b   : > { %1264 = vrcp.f32 %v782_v3  ;;  %v505_v4 = vpack.c.bf16 %v504_v2, %v503_v63 }
 0x49c   : > { %v1259_v1 = vpop.eup %1258 }
 0x49d   : > { %1139 = vmatmul.mubr.msk.bf16.vlgmr.msra.gmra.mxu0 %vm345_vm2, %v505_v4  ;;  %v644_v8 = vmul.f32 %v1259_v1, %v1247_v48 }
 0x49e   : > { %v648_v5 = vpop.permute.xlu0 %647  ;;  %1150 = vmatprep.mubr.msk.bf16.mxu0 %vm1307_vm0, %v1306_v0 }
 0x49f   : > { %1149 = vmatpush3.bf16.msra.mxu0 %v648_v5 }
 0x4a0   : > { %v1261_v7 = vpop.eup %1260  ;;  %1160 = vmatprep.subr.bf16.mxu0 %v1306_v0 }
 0x4a1   : > { %v645_v9 = vmul.f32 %v1261_v7, %v1249_v50 }
 0x4a3   : > { %v646_v10 = vpack.c.bf16 %v645_v9, %v644_v8 }
 0x4a4   : > { %v1263_v13 = vpop.eup %1262 }
 0x4a5   : > { %1151 = vmatmul.mubr.msk.bf16.vlgmr.msra.gmra.mxu0 %vm345_vm2, %v646_v10  ;;  %v785_v15 = vmul.f32 %v1263_v13, %v1251_v52 }
 0x4a6   : > { %1161 = vmatpush3.bf16.msra.mxu0 %v789_v11  ;;  %1162 = vmatprep.mubr.msk.bf16.mxu0 %vm1307_vm0, %v1306_v0 }
 0x4a8   : > { %v1265_v14 = vpop.eup %1264 }
 0x4a9   : > { %v786_v16 = vmul.f32 %v1265_v14, %v1253_v54 }
 0x4ab   : > { %v787_v17 = vpack.c.bf16 %v786_v16, %v785_v15 }
 0x4ad   : > { %1163 = vmatmul.mubr.msk.bf16.vlgmr.msra.gmra.mxu0 %vm345_vm2, %v787_v17 }
 0x55d   : > { %v546_v18 = vpop.f32.mrf.mxu0 }
 0x55e   : > { %v1091_v19 = vpack.c.bf16 %v546_v18, %v546_v18 }
 0x55f   : > { %v1140_v20 = vpop.f32.mrf.mxu0 }
 0x560   : > { %559 = vrot.lane.b32.xlu1 %v1091_v19, %s1319_s25 }
 0x561   : > { %v549_v21 = vpop.f32.mrf.mxu0 }
 0x562   : > { %v1092_v22 = vpack.c.bf16 %v549_v21, %v549_v21 }
 0x563   : > { %v1141_v23 = vpop.f32.mrf.mxu0 }
 0x564   : > { %561 = vrot.lane.b32.xlu0 %v1092_v22, %s1319_s25 }
 0x565   : > { %v687_v24 = vpop.f32.mrf.mxu0 }
 0x566   : > { %v1093_v25 = vpack.c.bf16 %v687_v24, %v687_v24 }
 0x567   : > { %v1152_v26 = vpop.f32.mrf.mxu0 }
 0x568   : > { %700 = vrot.lane.b32.xlu1 %v1093_v25, %s1320_s30 }
 0x569   : > { %v690_v28 = vpop.f32.mrf.mxu0 }
 0x56a   : > { %v1094_v30 = vpack.c.bf16 %v690_v28, %v690_v28 }
 0x56b   : > { %v1153_v6 = vpop.f32.mrf.mxu0 }
 0x56c   : > { %702 = vrot.lane.b32.xlu0 %v1094_v30, %s1320_s30 }
 0x56d   : > { %v828_v31 = vpop.f32.mrf.mxu0 }
 0x56e   : > { %v1095_v32 = vpack.c.bf16 %v828_v31, %v828_v31 }
 0x56f   : > { %v1164_v33 = vpop.f32.mrf.mxu0 }
 0x570   : > { %841 = vrot.lane.b32.xlu1 %v1095_v32, %s1321_s8 }
 0x571   : > { %v831_v34 = vpop.f32.mrf.mxu0 }
 0x572   : > { %v1096_v35 = vpack.c.bf16 %v831_v34, %v831_v34 }
 0x573   : > { %v1165_v12 = vpop.f32.mrf.mxu0 }
 0x574   : > { %843 = vrot.lane.b32.xlu0 %v1096_v35, %s1321_s8 }
 0x5d2   : > { %v560_v36 = vpop.permute.xlu1 %559 }
 0x5d3   : > { %566 = vst.msk [vmem:[#allocation2] sm:$0xf] %vm565_vm4, %v560_v36 }
 0x5d6   : > { %v562_v37 = vpop.permute.xlu0 %561 }
 0x5d7   : > { %567 = vst.msk [vmem:[#allocation2 + $0x4] sm:$0xf] %vm565_vm4, %v562_v37 }
 0x5da   : > { %v701_v0 = vpop.permute.xlu1 %700 }
 0x5db   : > { %707 = vst.msk [vmem:[#allocation2] sm:$0xf] %vm706_vm5, %v701_v0 }
 0x5de   : > { %v703_v38 = vpop.permute.xlu0 %702 }
 0x5df   : > { %708 = vst.msk [vmem:[#allocation2 + $0x4] sm:$0xf] %vm706_vm5, %v703_v38 }
 0x5e2   : > { %v842_v39 = vpop.permute.xlu1 %841 }
 0x5e3   : > { %848 = vst.msk [vmem:[#allocation2] sm:$0xf] %vm847_vm6, %v842_v39 }
 0x5e6   : > { %v844_v40 = vpop.permute.xlu0 %843 }
 0x5e7   : > { %849 = vst.msk [vmem:[#allocation2 + $0x4] sm:$0xf] %vm847_vm6, %v844_v40 }
 0x5ee   : > { %v1233_v41 = vld [vmem:[#allocation2] sm:$0xff]  }
 0x5ef   : > { %1171 = vmatmul.mubr.msk.bf16.vlgmr.msra.gmra.mxu1 %vm880_vm7, %v1233_v41 }
 0x6af   : > { %v918_v43 = vpop.f32.mrf.mxu1 }
 0x6b0   : > { %v919_v44 = vadd.f32 %v1079_v42, %v918_v43 }
 0x6b1   : > { %v1172_v45 = vpop.f32.mrf.mxu1 }
 0x6b2   : > { %v1097_v46 = vpack.c.bf16 %v919_v44, %v919_v44 }
 0x6b3   : > { %v921_v47 = vpop.f32.mrf.mxu1 }
 0x6b4   : > { %934 = vst.msk [vmem:[%s280_s13] sm:$0xf] %vm933_vm8, %v1097_v46  ;;  %v922_v48 = vadd.f32 %v1079_v42, %v921_v47 }
 0x6b5   : > { %v1173_v49 = vpop.f32.mrf.mxu1 }
 0x6b6   : > { %v1098_v50 = vpack.c.bf16 %v922_v48, %v922_v48 }
 0x6b8   : > { %935 = vst.msk [vmem:[%s280_s13 + $0x4] sm:$0xf] %vm933_vm8, %v1098_v50 }
 0x6b9 PF: > { %s15_s22 = sadd.s32 1, %s1304_s22   ;;  %s1534_s18 = smov %s1296_s20 }
 0x6ba   : > { %p12_p7 = scmp.ge.s32.totalorder %s15_s22, 10   ;;  %s1535_s19 = smov %s1300_s21 }
 0x6bb   : > { %s1536_s20 = smov %s1539_s23  ;;  %s1537_s21 = smov %s1543_s24 }
 0x6bc   :  { %14 = sbr.rel (!%p12_p7) target bundleno = 3 (0x3), region = 76 }

</bundles_post_ra>
